<compile_context>
chip_gen: v5e
topology: v5e:2x2
jax: 0.10.0
libtpu: 0.0.40
codegen_flags: <defaults>
</compile_context>

<pallas_src>
import functools

import numpy as np
import jax
import jax.numpy as jnp
from jax.experimental import pallas as pl
from jax.experimental.pallas import tpu as pltpu

LEAKY_SLOPE = 0.2
_VMEM_LIMIT = 48 * 1024 * 1024  # explicit scoped-VMEM limit (v5e default is 16 MiB)


def _pick_row_tile(h, target=8):
    t = min(h, target)
    while h % t:
        t -= 1
    return t


# ---------------------------------------------------------------------------
# Kernel 1: 3x3 conv, stride 2, pad 1, fused bias + LeakyReLU.
#
# The wrapper passes the input in a "column-pair" view (B, H, W//2, 2*Cin)
# (a free reshape), so the three kw taps of a stride-2 conv become plain
# contiguous slices -- no strided loads and no compute-then-subsample.
# The 3x3 taps are folded into the contraction dim (K = 9*Cin) for one MXU
# matmul per tile.  Padding + top halo are assembled in a VMEM scratch.
# ---------------------------------------------------------------------------
def _conv3x3_s2_kernel(x_ref, w_ref, b_ref, o_ref, xbuf_ref, *, leaky):
    # x_ref   : (1, H, W2, 2*Cin)  column-pair view, resident per batch image
    # w_ref   : (9*Cin, Cout) bf16
    # b_ref   : (1, Cout) f32
    # o_ref   : (1, To, Wo, Cout)
    # xbuf_ref: (2, 2*To+2, W2+1, Cin) f32  [phase, padded row, padded col-pair, c]
    t = pl.program_id(1)
    W2 = x_ref.shape[2]
    Cin = x_ref.shape[3] // 2
    To, Wo, Cout = o_ref.shape[1], o_ref.shape[2], o_ref.shape[3]
    r0 = pl.multiple_of(t * (2 * To), 2 * To)  # first original input row of this tile

    # ---- fused zero padding + halo assembly (no jnp.pad in the wrapper) ----
    xbuf_ref[...] = jnp.zeros_like(xbuf_ref)
    body = x_ref[0, pl.ds(r0, 2 * To), :, :].astype(xbuf_ref.dtype)  # (2To, W2, 2Cin)
    # padded column 2p   (phase 0 of pair p) == original (odd)  column 2p-1
    xbuf_ref[0, 1:2 * To + 1, 1:W2 + 1, :] = body[:, :, Cin:2 * Cin]
    # padded column 2p+1 (phase 1 of pair p) == original (even) column 2p
    xbuf_ref[1, 1:2 * To + 1, 0:W2, :] = body[:, :, 0:Cin]

    @pl.when(t > 0)
    def _top_halo():
        top = x_ref[0, pl.ds(r0 - 1, 1), :, :].astype(xbuf_ref.dtype)  # (1, W2, 2Cin)
        xbuf_ref[0, 0:1, 1:W2 + 1, :] = top[:, :, Cin:2 * Cin]
        xbuf_ref[1, 0:1, 0:W2, :] = top[:, :, 0:Cin]
    # bottom halo row is never read by a stride-2 / even-size conv.

    # ---- im2col with K = 9*Cin using only contiguous slices ----------------
    # row pairs: padded row 2q+u ; taps (kh) -> (q-offset, u); cols analogous.
    xp = xbuf_ref[...].reshape(2, To + 1, 2, W2 + 1, Cin)
    taps = []
    for (qo, u) in ((0, 0), (0, 1), (1, 0)):          # kh = 0, 1, 2
        for (po, s) in ((0, 0), (0, 1), (1, 0)):      # kw = 0, 1, 2
            taps.append(xp[s, qo:qo + To, u, po:po + Wo, :])   # (To, Wo, Cin)
    patch = jnp.concatenate(taps, axis=-1).reshape(To * Wo, 9 * Cin)
    patch = patch.astype(jnp.bfloat16)

    acc = jnp.dot(patch, w_ref[...], preferred_element_type=jnp.float32)
    acc = acc + b_ref[...]
    if leaky:
        acc = jnp.where(acc > 0, acc, LEAKY_SLOPE * acc)
    o_ref[0] = acc.reshape(To, Wo, Cout).astype(o_ref.dtype)


def conv3x3_s2(x, w9, b, *, leaky=True, row_tile=None):
    """x: (B, H, W, Cin) NHWC f32; w9: (9*Cin, Cout) bf16; b: (Cout,)."""
    B, H, W, Cin = x.shape
    assert H % 2 == 0 and W % 2 == 0, "stride-2 conv expects even H, W"
    Cout = w9.shape[-1]
    Ho, Wo, W2 = H // 2, W // 2, W // 2
    To = row_tile if row_tile is not None else _pick_row_tile(Ho)
    assert Ho % To == 0
    x_pairs = x.reshape(B, H, W2, 2 * Cin)  # free column-pair relabel (no copy pass)

    return pl.pallas_call(
        functools.partial(_conv3x3_s2_kernel, leaky=leaky),
        out_shape=jax.ShapeDtypeStruct((B, Ho, Wo, Cout), jnp.float32),
        grid=(B, Ho // To),
        in_specs=[
            # full image resident per batch; re-DMA'd only when the batch index changes
            pl.BlockSpec((1, H, W2, 2 * Cin), lambda b_, t_: (b_, 0, 0, 0)),
            pl.BlockSpec((9 * Cin, Cout), lambda b_, t_: (0, 0)),
            pl.BlockSpec((1, Cout), lambda b_, t_: (0, 0)),
        ],
        out_specs=pl.BlockSpec((1, To, Wo, Cout), lambda b_, t_: (b_, t_, 0, 0)),
        scratch_shapes=[pltpu.VMEM((2, 2 * To + 2, W2 + 1, Cin), jnp.float32)],
        compiler_params=pltpu.CompilerParams(
            dimension_semantics=("parallel", "parallel"),
            vmem_limit_bytes=_VMEM_LIMIT),
    )(x_pairs, w9, b.reshape(1, Cout))


# ---------------------------------------------------------------------------
# Kernel 2: fused ResnetBlock.
#   y1 = LeakyReLU(conv3x3_s1(y0) + b1);  out = conv3x3_s1(y1) + b2 + y0
#
# Row-tiled with a 2-row y0 halo: the one extra y1 row needed above/below the
# tile by conv2 is *recomputed* in-kernel, so y1 never touches HBM.  For each
# conv, the 3 kh taps are folded into the contraction dim (K = 3*C) and the 3
# kw taps become 3 MXU matmuls whose outputs are column-aligned with a cheap
# flat sublane shift.  Bias / LeakyReLU / residual are fused in the epilogues.
# ---------------------------------------------------------------------------
def _resnet_block_kernel(x_ref, w1_ref, b1_ref, w2_ref, b2_ref, o_ref,
                         xbuf_ref, ybuf_ref):
    # x_ref   : (1, H, W, C) f32    y0, resident per batch image
    # w1_ref  : (3, 3*C, C) bf16    conv1 weights, indexed by kw
    # b1_ref  : (1, C) f32
    # w2_ref  : (3, 3*C, C) bf16    conv2 weights, indexed by kw
    # b2_ref  : (1, C) f32
    # o_ref   : (1, T, W, C) f32
    # xbuf_ref: (T+4, W+2, C) f32   padded y0 tile (2-row halos)
    # ybuf_ref: (T+2, W+2, C) f32   padded y1 tile (1-row halos, recomputed)
    t = pl.program_id(1)
    nt = pl.num_programs(1)
    W, C = x_ref.shape[2], x_ref.shape[3]
    T = o_ref.shape[1]
    Wp = W + 2
    r0 = pl.multiple_of(t * T, T)

    # ---- padded y0 tile: zero padding + 2-row halos assembled in VMEM ------
    # xbuf row j holds y0[r0 - 2 + j] (zeros where out of range / conv padding)
    xbuf_ref[...] = jnp.zeros_like(xbuf_ref)
    xbuf_ref[2:T + 2, 1:W + 1, :] = x_ref[0, pl.ds(r0, T), :, :].astype(xbuf_ref.dtype)

    @pl.when(t > 0)
    def _top_halo():
        xbuf_ref[0:2, 1:W + 1, :] = (
            x_ref[0, pl.ds(r0 - 2, 2), :, :].astype(xbuf_ref.dtype))

    @pl.when(t < nt - 1)
    def _bottom_halo():
        xbuf_ref[T + 2:T + 4, 1:W + 1, :] = (
            x_ref[0, pl.ds(r0 + T, 2), :, :].astype(xbuf_ref.dtype))

    # ---- conv1 (+bias, LeakyReLU) over T+2 rows (y1 rows r0-1 .. r0+T) ------
    xp = xbuf_ref[...]                                                  # (T+4, Wp, C)
    prows1 = jnp.concatenate([xp[0:T + 2], xp[1:T + 3], xp[2:T + 4]], axis=-1)
    p1 = prows1.reshape((T + 2) * Wp, 3 * C).astype(jnp.bfloat16)

    acc1 = jnp.dot(p1, w1_ref[0], preferred_element_type=jnp.float32)
    for dw in (1, 2):
        y = jnp.dot(p1, w1_ref[dw], preferred_element_type=jnp.float32)
        # column alignment: acc[h*Wp + w] += y[h*Wp + w + dw]; the zero tail only
        # touches padded columns that are sliced off below.
        y = jnp.concatenate([y[dw:, :], jnp.zeros((dw, C), jnp.float32)], axis=0)
        acc1 = acc1 + y
    y1 = acc1.reshape(T + 2, Wp, C)[:, 0:W, :] + b1_ref[...]
    y1 = jnp.where(y1 > 0, y1, LEAKY_SLOPE * y1)

    # ybuf row j holds y1[r0 - 1 + j]; out-of-range rows are conv2's zero pad.
    ybuf_ref[...] = jnp.zeros_like(ybuf_ref)
    ybuf_ref[:, 1:W + 1, :] = y1.astype(ybuf_ref.dtype)

    @pl.when(t == 0)
    def _zero_top_pad_row():
        ybuf_ref[0:1, :, :] = jnp.zeros((1, Wp, C), ybuf_ref.dtype)

    @pl.when(t == nt - 1)
    def _zero_bottom_pad_row():
        ybuf_ref[T + 1:T + 2, :, :] = jnp.zeros((1, Wp, C), ybuf_ref.dtype)

    # ---- conv2 (+bias) + residual add (exact f32 y0) ------------------------
    yp = ybuf_ref[...]                                                  # (T+2, Wp, C)
    prows2 = jnp.concatenate([yp[0:T], yp[1:T + 1], yp[2:T + 2]], axis=-1)
    p2 = prows2.reshape(T * Wp, 3 * C).astype(jnp.bfloat16)

    acc2 = jnp.dot(p2, w2_ref[0], preferred_element_type=jnp.float32)
    for dw in (1, 2):
        y = jnp.dot(p2, w2_ref[dw], preferred_element_type=jnp.float32)
        y = jnp.concatenate([y[dw:, :], jnp.zeros((dw, C), jnp.float32)], axis=0)
        acc2 = acc2 + y
    out = acc2.reshape(T, Wp, C)[:, 0:W, :] + b2_ref[...]
    out = out + x_ref[0, pl.ds(r0, T), :, :]                            # residual skip
    o_ref[0] = out.astype(o_ref.dtype)


def resnet_block(x, w1f, b1, w2f, b2, *, row_tile=None):
    """x: (B, H, W, C) NHWC f32; w*f: (3, 3*C, C) bf16; b*: (C,)."""
    B, H, W, C = x.shape
    T = row_tile if row_tile is not None else _pick_row_tile(H)
    assert H % T == 0
    assert T >= 2 or H == T, "row tile must be >= 2 when multiple tiles are used"

    return pl.pallas_call(
        _resnet_block_kernel,
        out_shape=jax.ShapeDtypeStruct((B, H, W, C), jnp.float32),
        grid=(B, H // T),
        in_specs=[
            # full y0 image resident per batch; re-DMA'd only when batch changes
            pl.BlockSpec((1, H, W, C), lambda b_, t_: (b_, 0, 0, 0)),
            pl.BlockSpec((3, 3 * C, C), lambda b_, t_: (0, 0, 0)),
            pl.BlockSpec((1, C), lambda b_, t_: (0, 0)),
            pl.BlockSpec((3, 3 * C, C), lambda b_, t_: (0, 0, 0)),
            pl.BlockSpec((1, C), lambda b_, t_: (0, 0)),
        ],
        out_specs=pl.BlockSpec((1, T, W, C), lambda b_, t_: (b_, t_, 0, 0)),
        scratch_shapes=[pltpu.VMEM((T + 4, W + 2, C), jnp.float32),
                        pltpu.VMEM((T + 2, W + 2, C), jnp.float32)],
        compiler_params=pltpu.CompilerParams(
            dimension_semantics=("parallel", "parallel"),
            vmem_limit_bytes=_VMEM_LIMIT),
    )(x, w1f, b1.reshape(1, C), w2f, b2.reshape(1, C))


# ---------------------------------------------------------------------------
# Parameters + forward pass (mirrors encoder_layer4.forward).
# TODO(synk): only ks == 3 is implemented for the first (stride-2) conv; that
# is the kernel size SRN uses for this layer.
# ---------------------------------------------------------------------------
def init_params(key, in_dim, out_dim):
    def conv_init(k, cin, cout, ks=3):
        kw, kb = jax.random.split(k)
        scale = 1.0 / np.sqrt(cin * ks * ks)
        w = jax.random.normal(kw, (ks, ks, cin, cout), jnp.float32) * scale  # HWIO
        b = jax.random.normal(kb, (cout,), jnp.float32) * 0.01
        return w, b

    k0, k1, k2 = jax.random.split(key, 3)
    return {
        'conv0': conv_init(k0, in_dim, out_dim),       # stride-2 conv
        'res_conv0': conv_init(k1, out_dim, out_dim),  # ResnetBlock conv 1
        'res_conv1': conv_init(k2, out_dim, out_dim),  # ResnetBlock conv 2
    }


def encoder_layer4_forward(params, x_nchw, row_tile=None):
    """Input NCHW (B, in_dim, H, W) -> output NCHW (B, out_dim, H//2, W//2)."""
    x = jnp.transpose(x_nchw, (0, 2, 3, 1))            # NCHW -> NHWC

    w0, b0 = params['conv0']
    w1, b1 = params['res_conv0']
    w2, b2 = params['res_conv1']
    cin, cout = w0.shape[2], w0.shape[3]

    # Weights stored / fed to the MXU in bf16 (f32 accumulation in-kernel).
    # stride-2 conv: taps folded into K = 9*cin (kh-major, kw, ci).
    w0_9 = w0.astype(jnp.bfloat16).reshape(9 * cin, cout)
    # stride-1 convs: (kw, kh*ci) folded layout -> (3, 3*cout, cout).
    wf1 = jnp.transpose(w1, (1, 0, 2, 3)).astype(jnp.bfloat16).reshape(3, 3 * cout, cout)
    wf2 = jnp.transpose(w2, (1, 0, 2, 3)).astype(jnp.bfloat16).reshape(3, 3 * cout, cout)

    y0 = conv3x3_s2(x, w0_9, b0, leaky=True, row_tile=row_tile)   # conv + leaky
    y2 = resnet_block(y0, wf1, b1, wf2, b2, row_tile=row_tile)    # fused ResnetBlock
    return jnp.transpose(y2, (0, 3, 1, 2))              # NHWC -> NCHW


# ---------------------------------------------------------------------------
# Pure-JAX reference (f32 activations, bf16-rounded weights) for validation.
# ---------------------------------------------------------------------------
def _ref_conv(x, w, b, stride):
    w = w.astype(jnp.bfloat16).astype(jnp.float32)
    y = jax.lax.conv_general_dilated(
        x, w, window_strides=(stride, stride), padding=((1, 1), (1, 1)),
        dimension_numbers=('NHWC', 'HWIO', 'NHWC'))
    return y + b


def ref_forward(params, x_nchw):
    x = jnp.transpose(x_nchw, (0, 2, 3, 1))
    leaky = lambda v: jnp.where(v > 0, v, LEAKY_SLOPE * v)
    y0 = leaky(_ref_conv(x, *params['conv0'], 2))
    y1 = leaky(_ref_conv(y0, *params['res_conv0'], 1))
    y2 = _ref_conv(y1, *params['res_conv1'], 1) + y0
    return jnp.transpose(y2, (0, 3, 1, 2))


if __name__ == "__main__":
    B, IN_DIM, OUT_DIM, H, W = 2, 4, 32, 16, 32
    key = jax.random.PRNGKey(0)
    kx, kp = jax.random.split(key)
    x = jax.random.normal(kx, (B, IN_DIM, H, W), jnp.float32)
    params = init_params(kp, IN_DIM, OUT_DIM)

    # row_tile=4 -> 2 row tiles per image on the 8x16 feature map, exercising
    # the halo / padding / halo-recompute logic (grid = 2 batches x 2 tiles).
    fwd = jax.jit(functools.partial(encoder_layer4_forward, row_tile=4))
    out = fwd(params, x)
    jax.block_until_ready(out)
    assert out.shape == (B, OUT_DIM, H // 2, W // 2)

    ref = ref_forward(params, x)
    err = float(jnp.max(jnp.abs(out - ref)))
    assert err < 0.1, f"max abs error vs reference: {err}"
    print("KERNEL_OK")
</pallas_src>

<mosaic_0001>
module attributes {stable_mosaic.version = 11 : i64} {
  func.func @_conv3x3_s2_kernel(%arg0: i32, %arg1: i32, %arg2: memref<1x16x16x8xf32, #tpu.memory_space<vmem>>, %arg3: memref<36x32xbf16, #tpu.memory_space<vmem>>, %arg4: memref<1x32xf32, #tpu.memory_space<vmem>>, %arg5: memref<1x4x16x32xf32, #tpu.memory_space<vmem>>, %arg6: memref<2x10x17x4xf32, #tpu.memory_space<vmem>>) attributes {dimension_semantics = [#tpu.dimension_semantics<parallel>, #tpu.dimension_semantics<parallel>], iteration_bounds = array<i64: 2, 2>, scalar_prefetch = 0 : i64, scratch_operands = 1 : i64, tpu.core_type = #tpu.core_type<tc>, window_params = [{transform_indices = @transform_0, window_bounds = array<i64: 1, 16, 16, 8>}, {pipeline_mode = #tpu.pipeline_mode<synchronous>, transform_indices = @transform_1, window_bounds = array<i64: 36, 32>}, {pipeline_mode = #tpu.pipeline_mode<synchronous>, transform_indices = @transform_2, window_bounds = array<i64: 1, 32>}, {transform_indices = @transform_3, window_bounds = array<i64: 1, 4, 16, 32>}]} {
    %c8_i32 = arith.constant 8 : i32
    %0 = arith.muli %arg1, %c8_i32 : i32
    %1 = tpu.assume_multiple %0, 8 : i32
    %cst = arith.constant 0.000000e+00 : f32
    %2 = vector.broadcast %cst : f32 to vector<2x10x17x4xf32>
    %c0 = arith.constant 0 : index
    %c0_0 = arith.constant 0 : index
    %c0_1 = arith.constant 0 : index
    %c0_2 = arith.constant 0 : index
    %3 = vector.load %arg6[%c0, %c0_0, %c0_1, %c0_2] : memref<2x10x17x4xf32, #tpu.memory_space<vmem>>, vector<2x10x17x4xf32>
    tpu.vector_store %arg6[%c0, %c0_0, %c0_1, %c0_2], %2 {strides = array<i32>} : memref<2x10x17x4xf32, #tpu.memory_space<vmem>>, vector<2x10x17x4xf32>,
    %c0_3 = arith.constant 0 : index
    %4 = arith.index_cast %1 : i32 to index
    %c0_4 = arith.constant 0 : index
    %c0_5 = arith.constant 0 : index
    %5 = vector.load %arg2[%c0_3, %4, %c0_4, %c0_5] : memref<1x16x16x8xf32, #tpu.memory_space<vmem>>, vector<1x8x16x8xf32>
    %6 = vector.shape_cast %5 : vector<1x8x16x8xf32> to vector<8x16x8xf32>
    %7 = vector.extract_strided_slice %6 {offsets = [0, 0, 4], sizes = [8, 16, 4], strides = [1, 1, 1]} : vector<8x16x8xf32> to vector<8x16x4xf32>
    %c0_6 = arith.constant 0 : index
    %c1 = arith.constant 1 : index
    %c1_7 = arith.constant 1 : index
    %c0_8 = arith.constant 0 : index
    %8 = vector.load %arg6[%c0_6, %c1, %c1_7, %c0_8] : memref<2x10x17x4xf32, #tpu.memory_space<vmem>>, vector<1x8x16x4xf32>
    %9 = vector.shape_cast %8 : vector<1x8x16x4xf32> to vector<8x16x4xf32>
    %10 = vector.shape_cast %7 : vector<8x16x4xf32> to vector<1x8x16x4xf32>
    tpu.vector_store %arg6[%c0_6, %c1, %c1_7, %c0_8], %10 {strides = array<i32>} : memref<2x10x17x4xf32, #tpu.memory_space<vmem>>, vector<1x8x16x4xf32>,
    %11 = vector.extract_strided_slice %6 {offsets = [0, 0, 0], sizes = [8, 16, 4], strides = [1, 1, 1]} : vector<8x16x8xf32> to vector<8x16x4xf32>
    %c1_9 = arith.constant 1 : index
    %c1_10 = arith.constant 1 : index
    %c0_11 = arith.constant 0 : index
    %c0_12 = arith.constant 0 : index
    %12 = vector.load %arg6[%c1_9, %c1_10, %c0_11, %c0_12] : memref<2x10x17x4xf32, #tpu.memory_space<vmem>>, vector<1x8x16x4xf32>
    %13 = vector.shape_cast %12 : vector<1x8x16x4xf32> to vector<8x16x4xf32>
    %14 = vector.shape_cast %11 : vector<8x16x4xf32> to vector<1x8x16x4xf32>
    tpu.vector_store %arg6[%c1_9, %c1_10, %c0_11, %c0_12], %14 {strides = array<i32>} : memref<2x10x17x4xf32, #tpu.memory_space<vmem>>, vector<1x8x16x4xf32>,
    %c0_i32 = arith.constant 0 : i32
    %15 = arith.cmpi sgt, %arg1, %c0_i32 : i32
    %16 = arith.extui %15 : i1 to i32
    %c0_i32_13 = arith.constant 0 : i32
    %17 = arith.cmpi ne, %16, %c0_i32_13 : i32
    scf.if %17 {
      %c1_i32 = arith.constant 1 : i32
      %55 = arith.subi %1, %c1_i32 : i32
      %c0_29 = arith.constant 0 : index
      %56 = arith.index_cast %55 : i32 to index
      %c0_30 = arith.constant 0 : index
      %c0_31 = arith.constant 0 : index
      %57 = vector.load %arg2[%c0_29, %56, %c0_30, %c0_31] : memref<1x16x16x8xf32, #tpu.memory_space<vmem>>, vector<1x1x16x8xf32>
      %58 = vector.shape_cast %57 : vector<1x1x16x8xf32> to vector<1x16x8xf32>
      %59 = vector.extract_strided_slice %58 {offsets = [0, 0, 4], sizes = [1, 16, 4], strides = [1, 1, 1]} : vector<1x16x8xf32> to vector<1x16x4xf32>
      %c0_32 = arith.constant 0 : index
      %c0_33 = arith.constant 0 : index
      %c1_34 = arith.constant 1 : index
      %c0_35 = arith.constant 0 : index
      %60 = vector.load %arg6[%c0_32, %c0_33, %c1_34, %c0_35] : memref<2x10x17x4xf32, #tpu.memory_space<vmem>>, vector<1x1x16x4xf32>
      %61 = vector.shape_cast %60 : vector<1x1x16x4xf32> to vector<1x16x4xf32>
      %62 = vector.shape_cast %59 : vector<1x16x4xf32> to vector<1x1x16x4xf32>
      tpu.vector_store %arg6[%c0_32, %c0_33, %c1_34, %c0_35], %62 {strides = array<i32>} : memref<2x10x17x4xf32, #tpu.memory_space<vmem>>, vector<1x1x16x4xf32>,
      %63 = vector.extract_strided_slice %58 {offsets = [0, 0, 0], sizes = [1, 16, 4], strides = [1, 1, 1]} : vector<1x16x8xf32> to vector<1x16x4xf32>
      %c1_36 = arith.constant 1 : index
      %c0_37 = arith.constant 0 : index
      %c0_38 = arith.constant 0 : index
      %c0_39 = arith.constant 0 : index
      %64 = vector.load %arg6[%c1_36, %c0_37, %c0_38, %c0_39] : memref<2x10x17x4xf32, #tpu.memory_space<vmem>>, vector<1x1x16x4xf32>
      %65 = vector.shape_cast %64 : vector<1x1x16x4xf32> to vector<1x16x4xf32>
      %66 = vector.shape_cast %63 : vector<1x16x4xf32> to vector<1x1x16x4xf32>
      tpu.vector_store %arg6[%c1_36, %c0_37, %c0_38, %c0_39], %66 {strides = array<i32>} : memref<2x10x17x4xf32, #tpu.memory_space<vmem>>, vector<1x1x16x4xf32>,
    } else {
    }
    %c0_14 = arith.constant 0 : index
    %c0_15 = arith.constant 0 : index
    %c0_16 = arith.constant 0 : index
    %c0_17 = arith.constant 0 : index
    %18 = vector.load %arg6[%c0_14, %c0_15, %c0_16, %c0_17] : memref<2x10x17x4xf32, #tpu.memory_space<vmem>>, vector<2x10x17x4xf32>
    %19 = vector.shape_cast %18 : vector<2x10x17x4xf32> to vector<2x5x2x17x4xf32>
    %20 = vector.extract_strided_slice %19 {offsets = [0, 0, 0, 0, 0], sizes = [1, 4, 1, 16, 4], strides = [1, 1, 1, 1, 1]} : vector<2x5x2x17x4xf32> to vector<1x4x1x16x4xf32>
    %21 = vector.shape_cast %20 : vector<1x4x1x16x4xf32> to vector<4x16x4xf32>
    %22 = vector.extract_strided_slice %19 {offsets = [1, 0, 0, 0, 0], sizes = [1, 4, 1, 16, 4], strides = [1, 1, 1, 1, 1]} : vector<2x5x2x17x4xf32> to vector<1x4x1x16x4xf32>
    %23 = vector.shape_cast %22 : vector<1x4x1x16x4xf32> to vector<4x16x4xf32>
    %24 = vector.extract_strided_slice %19 {offsets = [0, 0, 0, 1, 0], sizes = [1, 4, 1, 16, 4], strides = [1, 1, 1, 1, 1]} : vector<2x5x2x17x4xf32> to vector<1x4x1x16x4xf32>
    %25 = vector.shape_cast %24 : vector<1x4x1x16x4xf32> to vector<4x16x4xf32>
    %26 = vector.extract_strided_slice %19 {offsets = [0, 0, 1, 0, 0], sizes = [1, 4, 1, 16, 4], strides = [1, 1, 1, 1, 1]} : vector<2x5x2x17x4xf32> to vector<1x4x1x16x4xf32>
    %27 = vector.shape_cast %26 : vector<1x4x1x16x4xf32> to vector<4x16x4xf32>
    %28 = vector.extract_strided_slice %19 {offsets = [1, 0, 1, 0, 0], sizes = [1, 4, 1, 16, 4], strides = [1, 1, 1, 1, 1]} : vector<2x5x2x17x4xf32> to vector<1x4x1x16x4xf32>
    %29 = vector.shape_cast %28 : vector<1x4x1x16x4xf32> to vector<4x16x4xf32>
    %30 = vector.extract_strided_slice %19 {offsets = [0, 0, 1, 1, 0], sizes = [1, 4, 1, 16, 4], strides = [1, 1, 1, 1, 1]} : vector<2x5x2x17x4xf32> to vector<1x4x1x16x4xf32>
    %31 = vector.shape_cast %30 : vector<1x4x1x16x4xf32> to vector<4x16x4xf32>
    %32 = vector.extract_strided_slice %19 {offsets = [0, 1, 0, 0, 0], sizes = [1, 4, 1, 16, 4], strides = [1, 1, 1, 1, 1]} : vector<2x5x2x17x4xf32> to vector<1x4x1x16x4xf32>
    %33 = vector.shape_cast %32 : vector<1x4x1x16x4xf32> to vector<4x16x4xf32>
    %34 = vector.extract_strided_slice %19 {offsets = [1, 1, 0, 0, 0], sizes = [1, 4, 1, 16, 4], strides = [1, 1, 1, 1, 1]} : vector<2x5x2x17x4xf32> to vector<1x4x1x16x4xf32>
    %35 = vector.shape_cast %34 : vector<1x4x1x16x4xf32> to vector<4x16x4xf32>
    %36 = vector.extract_strided_slice %19 {offsets = [0, 1, 0, 1, 0], sizes = [1, 4, 1, 16, 4], strides = [1, 1, 1, 1, 1]} : vector<2x5x2x17x4xf32> to vector<1x4x1x16x4xf32>
    %37 = vector.shape_cast %36 : vector<1x4x1x16x4xf32> to vector<4x16x4xf32>
    %38 = tpu.concatenate %21, %23, %25, %27, %29, %31, %33, %35, %37 in 2 : vector<4x16x4xf32>, vector<4x16x4xf32>, vector<4x16x4xf32>, vector<4x16x4xf32>, vector<4x16x4xf32>, vector<4x16x4xf32>, vector<4x16x4xf32>, vector<4x16x4xf32>, vector<4x16x4xf32> -> vector<4x16x36xf32>
    %39 = vector.shape_cast %38 : vector<4x16x36xf32> to vector<64x36xf32>
    %40 = arith.truncf %39 : vector<64x36xf32> to vector<64x36xbf16>
    %c0_18 = arith.constant 0 : index
    %c0_19 = arith.constant 0 : index
    %41 = vector.load %arg3[%c0_18, %c0_19] : memref<36x32xbf16, #tpu.memory_space<vmem>>, vector<36x32xbf16>
    %cst_20 = arith.constant dense<0.000000e+00> : vector<64x32xf32>
    %42 = tpu.matmul %40, %41, %cst_20 {dimension_numbers = #tpu.dot_dimension_numbers<[1], [0], [0], [1], [0, 0, 1, 1], [], []>} : vector<64x36xbf16>, vector<36x32xbf16>, vector<64x32xf32> -> vector<64x32xf32>
    %c0_21 = arith.constant 0 : index
    %c0_22 = arith.constant 0 : index
    %43 = vector.load %arg4[%c0_21, %c0_22] : memref<1x32xf32, #tpu.memory_space<vmem>>, vector<1x32xf32>
    %44 = vector.broadcast %43 : vector<1x32xf32> to vector<64x32xf32>
    %45 = arith.addf %42, %44 : vector<64x32xf32>
    %cst_23 = arith.constant 0.000000e+00 : f32
    %46 = vector.broadcast %cst_23 : f32 to vector<64x32xf32>
    %47 = arith.cmpf ogt, %45, %46 : vector<64x32xf32>
    %cst_24 = arith.constant 2.000000e-01 : f32
    %48 = vector.broadcast %cst_24 : f32 to vector<64x32xf32>
    %49 = arith.mulf %48, %45 : vector<64x32xf32>
    %50 = arith.select %47, %45, %49 : vector<64x32xi1>, vector<64x32xf32>
    %51 = vector.shape_cast %50 : vector<64x32xf32> to vector<4x16x32xf32>
    %c0_25 = arith.constant 0 : index
    %c0_26 = arith.constant 0 : index
    %c0_27 = arith.constant 0 : index
    %c0_28 = arith.constant 0 : index
    %52 = vector.load %arg5[%c0_25, %c0_26, %c0_27, %c0_28] : memref<1x4x16x32xf32, #tpu.memory_space<vmem>>, vector<1x4x16x32xf32>
    %53 = vector.shape_cast %52 : vector<1x4x16x32xf32> to vector<4x16x32xf32>
    %54 = vector.shape_cast %51 : vector<4x16x32xf32> to vector<1x4x16x32xf32>
    tpu.vector_store %arg5[%c0_25, %c0_26, %c0_27, %c0_28], %54 {strides = array<i32>} : memref<1x4x16x32xf32, #tpu.memory_space<vmem>>, vector<1x4x16x32xf32>,
    return
  }
  func.func @transform_0(%arg0: i32, %arg1: i32) -> (i32, i32, i32, i32) {
    %c0_i32 = arith.constant 0 : i32
    %c0_i32_0 = arith.constant 0 : i32
    %c0_i32_1 = arith.constant 0 : i32
    %c0_i32_2 = arith.constant 0 : i32
    return %arg0, %c0_i32, %c0_i32_0, %c0_i32_1 : i32, i32, i32, i32
  }
  func.func @transform_1(%arg0: i32, %arg1: i32) -> (i32, i32) {
    %c0_i32 = arith.constant 0 : i32
    %c0_i32_0 = arith.constant 0 : i32
    %c0_i32_1 = arith.constant 0 : i32
    return %c0_i32, %c0_i32_0 : i32, i32
  }
  func.func @transform_2(%arg0: i32, %arg1: i32) -> (i32, i32) {
    %c0_i32 = arith.constant 0 : i32
    %c0_i32_0 = arith.constant 0 : i32
    %c0_i32_1 = arith.constant 0 : i32
    return %c0_i32, %c0_i32_0 : i32, i32
  }
  func.func @transform_3(%arg0: i32, %arg1: i32) -> (i32, i32, i32, i32) {
    %c0_i32 = arith.constant 0 : i32
    %c0_i32_0 = arith.constant 0 : i32
    %c0_i32_1 = arith.constant 0 : i32
    return %arg0, %arg1, %c0_i32, %c0_i32_0 : i32, i32, i32, i32
  }
}

module attributes {stable_mosaic.version = 11 : i64} {
  func.func @_resnet_block_kernel(%arg0: i32, %arg1: i32, %arg2: memref<1x8x16x32xf32, #tpu.memory_space<vmem>>, %arg3: memref<3x96x32xbf16, #tpu.memory_space<vmem>>, %arg4: memref<1x32xf32, #tpu.memory_space<vmem>>, %arg5: memref<3x96x32xbf16, #tpu.memory_space<vmem>>, %arg6: memref<1x32xf32, #tpu.memory_space<vmem>>, %arg7: memref<1x4x16x32xf32, #tpu.memory_space<vmem>>, %arg8: memref<8x18x32xf32, #tpu.memory_space<vmem>>, %arg9: memref<6x18x32xf32, #tpu.memory_space<vmem>>) attributes {dimension_semantics = [#tpu.dimension_semantics<parallel>, #tpu.dimension_semantics<parallel>], iteration_bounds = array<i64: 2, 2>, scalar_prefetch = 0 : i64, scratch_operands = 2 : i64, tpu.core_type = #tpu.core_type<tc>, window_params = [{transform_indices = @transform_0, window_bounds = array<i64: 1, 8, 16, 32>}, {pipeline_mode = #tpu.pipeline_mode<synchronous>, transform_indices = @transform_1, window_bounds = array<i64: 3, 96, 32>}, {pipeline_mode = #tpu.pipeline_mode<synchronous>, transform_indices = @transform_2, window_bounds = array<i64: 1, 32>}, {pipeline_mode = #tpu.pipeline_mode<synchronous>, transform_indices = @transform_3, window_bounds = array<i64: 3, 96, 32>}, {pipeline_mode = #tpu.pipeline_mode<synchronous>, transform_indices = @transform_4, window_bounds = array<i64: 1, 32>}, {transform_indices = @transform_5, window_bounds = array<i64: 1, 4, 16, 32>}]} {
    %c4_i32 = arith.constant 4 : i32
    %0 = arith.muli %arg1, %c4_i32 : i32
    %1 = tpu.assume_multiple %0, 4 : i32
    %cst = arith.constant 0.000000e+00 : f32
    %2 = vector.broadcast %cst : f32 to vector<8x18x32xf32>
    %c0 = arith.constant 0 : index
    %c0_0 = arith.constant 0 : index
    %c0_1 = arith.constant 0 : index
    %3 = vector.load %arg8[%c0, %c0_0, %c0_1] : memref<8x18x32xf32, #tpu.memory_space<vmem>>, vector<8x18x32xf32>
    tpu.vector_store %arg8[%c0, %c0_0, %c0_1], %2 {strides = array<i32>} : memref<8x18x32xf32, #tpu.memory_space<vmem>>, vector<8x18x32xf32>,
    %c0_2 = arith.constant 0 : index
    %4 = arith.index_cast %1 : i32 to index
    %c0_3 = arith.constant 0 : index
    %c0_4 = arith.constant 0 : index
    %5 = vector.load %arg2[%c0_2, %4, %c0_3, %c0_4] : memref<1x8x16x32xf32, #tpu.memory_space<vmem>>, vector<1x4x16x32xf32>
    %6 = vector.shape_cast %5 : vector<1x4x16x32xf32> to vector<4x16x32xf32>
    %c2 = arith.constant 2 : index
    %c1 = arith.constant 1 : index
    %c0_5 = arith.constant 0 : index
    %7 = vector.load %arg8[%c2, %c1, %c0_5] : memref<8x18x32xf32, #tpu.memory_space<vmem>>, vector<4x16x32xf32>
    tpu.vector_store %arg8[%c2, %c1, %c0_5], %6 {strides = array<i32>} : memref<8x18x32xf32, #tpu.memory_space<vmem>>, vector<4x16x32xf32>,
    %c0_i32 = arith.constant 0 : i32
    %8 = arith.cmpi sgt, %arg1, %c0_i32 : i32
    %9 = arith.extui %8 : i1 to i32
    %c0_i32_6 = arith.constant 0 : i32
    %10 = arith.cmpi ne, %9, %c0_i32_6 : i32
    scf.if %10 {
      %c2_i32 = arith.constant 2 : i32
      %95 = arith.subi %1, %c2_i32 : i32
      %c0_66 = arith.constant 0 : index
      %96 = arith.index_cast %95 : i32 to index
      %c0_67 = arith.constant 0 : index
      %c0_68 = arith.constant 0 : index
      %97 = vector.load %arg2[%c0_66, %96, %c0_67, %c0_68] : memref<1x8x16x32xf32, #tpu.memory_space<vmem>>, vector<1x2x16x32xf32>
      %98 = vector.shape_cast %97 : vector<1x2x16x32xf32> to vector<2x16x32xf32>
      %c0_69 = arith.constant 0 : index
      %c1_70 = arith.constant 1 : index
      %c0_71 = arith.constant 0 : index
      %99 = vector.load %arg8[%c0_69, %c1_70, %c0_71] : memref<8x18x32xf32, #tpu.memory_space<vmem>>, vector<2x16x32xf32>
      tpu.vector_store %arg8[%c0_69, %c1_70, %c0_71], %98 {strides = array<i32>} : memref<8x18x32xf32, #tpu.memory_space<vmem>>, vector<2x16x32xf32>,
    } else {
    }
    %c1_i32 = arith.constant 1 : i32
    %11 = arith.cmpi slt, %arg1, %c1_i32 : i32
    %12 = arith.extui %11 : i1 to i32
    %c0_i32_7 = arith.constant 0 : i32
    %13 = arith.cmpi ne, %12, %c0_i32_7 : i32
    scf.if %13 {
      %c4_i32_66 = arith.constant 4 : i32
      %95 = arith.addi %1, %c4_i32_66 : i32
      %c0_67 = arith.constant 0 : index
      %96 = arith.index_cast %95 : i32 to index
      %c0_68 = arith.constant 0 : index
      %c0_69 = arith.constant 0 : index
      %97 = vector.load %arg2[%c0_67, %96, %c0_68, %c0_69] : memref<1x8x16x32xf32, #tpu.memory_space<vmem>>, vector<1x2x16x32xf32>
      %98 = vector.shape_cast %97 : vector<1x2x16x32xf32> to vector<2x16x32xf32>
      %c6 = arith.constant 6 : index
      %c1_70 = arith.constant 1 : index
      %c0_71 = arith.constant 0 : index
      %99 = vector.load %arg8[%c6, %c1_70, %c0_71] : memref<8x18x32xf32, #tpu.memory_space<vmem>>, vector<2x16x32xf32>
      tpu.vector_store %arg8[%c6, %c1_70, %c0_71], %98 {strides = array<i32>} : memref<8x18x32xf32, #tpu.memory_space<vmem>>, vector<2x16x32xf32>,
    } else {
    }
    %c0_8 = arith.constant 0 : index
    %c0_9 = arith.constant 0 : index
    %c0_10 = arith.constant 0 : index
    %14 = vector.load %arg8[%c0_8, %c0_9, %c0_10] : memref<8x18x32xf32, #tpu.memory_space<vmem>>, vector<8x18x32xf32>
    %15 = vector.extract_strided_slice %14 {offsets = [0, 0, 0], sizes = [6, 18, 32], strides = [1, 1, 1]} : vector<8x18x32xf32> to vector<6x18x32xf32>
    %16 = vector.extract_strided_slice %14 {offsets = [1, 0, 0], sizes = [6, 18, 32], strides = [1, 1, 1]} : vector<8x18x32xf32> to vector<6x18x32xf32>
    %17 = vector.extract_strided_slice %14 {offsets = [2, 0, 0], sizes = [6, 18, 32], strides = [1, 1, 1]} : vector<8x18x32xf32> to vector<6x18x32xf32>
    %18 = tpu.concatenate %15, %16, %17 in 2 : vector<6x18x32xf32>, vector<6x18x32xf32>, vector<6x18x32xf32> -> vector<6x18x96xf32>
    %19 = vector.shape_cast %18 : vector<6x18x96xf32> to vector<108x96xf32>
    %20 = arith.truncf %19 : vector<108x96xf32> to vector<108x96xbf16>
    %c0_11 = arith.constant 0 : index
    %c0_12 = arith.constant 0 : index
    %c0_13 = arith.constant 0 : index
    %21 = vector.load %arg3[%c0_11, %c0_12, %c0_13] : memref<3x96x32xbf16, #tpu.memory_space<vmem>>, vector<1x96x32xbf16>
    %22 = vector.shape_cast %21 : vector<1x96x32xbf16> to vector<96x32xbf16>
    %cst_14 = arith.constant dense<0.000000e+00> : vector<108x32xf32>
    %23 = tpu.matmul %20, %22, %cst_14 {dimension_numbers = #tpu.dot_dimension_numbers<[1], [0], [0], [1], [0, 0, 1, 1], [], []>} : vector<108x96xbf16>, vector<96x32xbf16>, vector<108x32xf32> -> vector<108x32xf32>
    %c1_15 = arith.constant 1 : index
    %c0_16 = arith.constant 0 : index
    %c0_17 = arith.constant 0 : index
    %24 = vector.load %arg3[%c1_15, %c0_16, %c0_17] : memref<3x96x32xbf16, #tpu.memory_space<vmem>>, vector<1x96x32xbf16>
    %25 = vector.shape_cast %24 : vector<1x96x32xbf16> to vector<96x32xbf16>
    %cst_18 = arith.constant dense<0.000000e+00> : vector<108x32xf32>
    %26 = tpu.matmul %20, %25, %cst_18 {dimension_numbers = #tpu.dot_dimension_numbers<[1], [0], [0], [1], [0, 0, 1, 1], [], []>} : vector<108x96xbf16>, vector<96x32xbf16>, vector<108x32xf32> -> vector<108x32xf32>
    %27 = vector.extract_strided_slice %26 {offsets = [1, 0], sizes = [107, 32], strides = [1, 1]} : vector<108x32xf32> to vector<107x32xf32>
    %cst_19 = arith.constant 0.000000e+00 : f32
    %28 = vector.broadcast %cst_19 : f32 to vector<1x32xf32>
    %29 = tpu.concatenate %27, %28 in 0 : vector<107x32xf32>, vector<1x32xf32> -> vector<108x32xf32>
    %30 = arith.addf %23, %29 : vector<108x32xf32>
    %c2_20 = arith.constant 2 : index
    %c0_21 = arith.constant 0 : index
    %c0_22 = arith.constant 0 : index
    %31 = vector.load %arg3[%c2_20, %c0_21, %c0_22] : memref<3x96x32xbf16, #tpu.memory_space<vmem>>, vector<1x96x32xbf16>
    %32 = vector.shape_cast %31 : vector<1x96x32xbf16> to vector<96x32xbf16>
    %cst_23 = arith.constant dense<0.000000e+00> : vector<108x32xf32>
    %33 = tpu.matmul %20, %32, %cst_23 {dimension_numbers = #tpu.dot_dimension_numbers<[1], [0], [0], [1], [0, 0, 1, 1], [], []>} : vector<108x96xbf16>, vector<96x32xbf16>, vector<108x32xf32> -> vector<108x32xf32>
    %34 = vector.extract_strided_slice %33 {offsets = [2, 0], sizes = [106, 32], strides = [1, 1]} : vector<108x32xf32> to vector<106x32xf32>
    %cst_24 = arith.constant 0.000000e+00 : f32
    %35 = vector.broadcast %cst_24 : f32 to vector<2x32xf32>
    %36 = tpu.concatenate %34, %35 in 0 : vector<106x32xf32>, vector<2x32xf32> -> vector<108x32xf32>
    %37 = arith.addf %30, %36 : vector<108x32xf32>
    %38 = vector.shape_cast %37 : vector<108x32xf32> to vector<6x18x32xf32>
    %39 = vector.extract_strided_slice %38 {offsets = [0, 0, 0], sizes = [6, 16, 32], strides = [1, 1, 1]} : vector<6x18x32xf32> to vector<6x16x32xf32>
    %c0_25 = arith.constant 0 : index
    %c0_26 = arith.constant 0 : index
    %40 = vector.load %arg4[%c0_25, %c0_26] : memref<1x32xf32, #tpu.memory_space<vmem>>, vector<1x32xf32>
    %41 = vector.shape_cast %40 : vector<1x32xf32> to vector<1x1x32xf32>
    %42 = vector.broadcast %41 : vector<1x1x32xf32> to vector<6x16x32xf32>
    %43 = arith.addf %39, %42 : vector<6x16x32xf32>
    %cst_27 = arith.constant 0.000000e+00 : f32
    %44 = vector.broadcast %cst_27 : f32 to vector<6x16x32xf32>
    %45 = arith.cmpf ogt, %43, %44 : vector<6x16x32xf32>
    %cst_28 = arith.constant 2.000000e-01 : f32
    %46 = vector.broadcast %cst_28 : f32 to vector<6x16x32xf32>
    %47 = arith.mulf %46, %43 : vector<6x16x32xf32>
    %48 = arith.select %45, %43, %47 : vector<6x16x32xi1>, vector<6x16x32xf32>
    %cst_29 = arith.constant 0.000000e+00 : f32
    %49 = vector.broadcast %cst_29 : f32 to vector<6x18x32xf32>
    %c0_30 = arith.constant 0 : index
    %c0_31 = arith.constant 0 : index
    %c0_32 = arith.constant 0 : index
    %50 = vector.load %arg9[%c0_30, %c0_31, %c0_32] : memref<6x18x32xf32, #tpu.memory_space<vmem>>, vector<6x18x32xf32>
    tpu.vector_store %arg9[%c0_30, %c0_31, %c0_32], %49 {strides = array<i32>} : memref<6x18x32xf32, #tpu.memory_space<vmem>>, vector<6x18x32xf32>,
    %c0_33 = arith.constant 0 : index
    %c1_34 = arith.constant 1 : index
    %c0_35 = arith.constant 0 : index
    %51 = vector.load %arg9[%c0_33, %c1_34, %c0_35] : memref<6x18x32xf32, #tpu.memory_space<vmem>>, vector<6x16x32xf32>
    tpu.vector_store %arg9[%c0_33, %c1_34, %c0_35], %48 {strides = array<i32>} : memref<6x18x32xf32, #tpu.memory_space<vmem>>, vector<6x16x32xf32>,
    %c0_i32_36 = arith.constant 0 : i32
    %52 = arith.cmpi eq, %arg1, %c0_i32_36 : i32
    %53 = arith.extui %52 : i1 to i32
    %c0_i32_37 = arith.constant 0 : i32
    %54 = arith.cmpi ne, %53, %c0_i32_37 : i32
    scf.if %54 {
      %cst_66 = arith.constant 0.000000e+00 : f32
      %95 = vector.broadcast %cst_66 : f32 to vector<1x18x32xf32>
      %c0_67 = arith.constant 0 : index
      %c0_68 = arith.constant 0 : index
      %c0_69 = arith.constant 0 : index
      %96 = vector.load %arg9[%c0_67, %c0_68, %c0_69] : memref<6x18x32xf32, #tpu.memory_space<vmem>>, vector<1x18x32xf32>
      tpu.vector_store %arg9[%c0_67, %c0_68, %c0_69], %95 {strides = array<i32>} : memref<6x18x32xf32, #tpu.memory_space<vmem>>, vector<1x18x32xf32>,
    } else {
    }
    %c1_i32_38 = arith.constant 1 : i32
    %55 = arith.cmpi eq, %arg1, %c1_i32_38 : i32
    %56 = arith.extui %55 : i1 to i32
    %c0_i32_39 = arith.constant 0 : i32
    %57 = arith.cmpi ne, %56, %c0_i32_39 : i32
    scf.if %57 {
      %cst_66 = arith.constant 0.000000e+00 : f32
      %95 = vector.broadcast %cst_66 : f32 to vector<1x18x32xf32>
      %c5 = arith.constant 5 : index
      %c0_67 = arith.constant 0 : index
      %c0_68 = arith.constant 0 : index
      %96 = vector.load %arg9[%c5, %c0_67, %c0_68] : memref<6x18x32xf32, #tpu.memory_space<vmem>>, vector<1x18x32xf32>
      tpu.vector_store %arg9[%c5, %c0_67, %c0_68], %95 {strides = array<i32>} : memref<6x18x32xf32, #tpu.memory_space<vmem>>, vector<1x18x32xf32>,
    } else {
    }
    %c0_40 = arith.constant 0 : index
    %c0_41 = arith.constant 0 : index
    %c0_42 = arith.constant 0 : index
    %58 = vector.load %arg9[%c0_40, %c0_41, %c0_42] : memref<6x18x32xf32, #tpu.memory_space<vmem>>, vector<6x18x32xf32>
    %59 = vector.extract_strided_slice %58 {offsets = [0, 0, 0], sizes = [4, 18, 32], strides = [1, 1, 1]} : vector<6x18x32xf32> to vector<4x18x32xf32>
    %60 = vector.extract_strided_slice %58 {offsets = [1, 0, 0], sizes = [4, 18, 32], strides = [1, 1, 1]} : vector<6x18x32xf32> to vector<4x18x32xf32>
    %61 = vector.extract_strided_slice %58 {offsets = [2, 0, 0], sizes = [4, 18, 32], strides = [1, 1, 1]} : vector<6x18x32xf32> to vector<4x18x32xf32>
    %62 = tpu.concatenate %59, %60, %61 in 2 : vector<4x18x32xf32>, vector<4x18x32xf32>, vector<4x18x32xf32> -> vector<4x18x96xf32>
    %63 = vector.shape_cast %62 : vector<4x18x96xf32> to vector<72x96xf32>
    %64 = arith.truncf %63 : vector<72x96xf32> to vector<72x96xbf16>
    %c0_43 = arith.constant 0 : index
    %c0_44 = arith.constant 0 : index
    %c0_45 = arith.constant 0 : index
    %65 = vector.load %arg5[%c0_43, %c0_44, %c0_45] : memref<3x96x32xbf16, #tpu.memory_space<vmem>>, vector<1x96x32xbf16>
    %66 = vector.shape_cast %65 : vector<1x96x32xbf16> to vector<96x32xbf16>
    %cst_46 = arith.constant dense<0.000000e+00> : vector<72x32xf32>
    %67 = tpu.matmul %64, %66, %cst_46 {dimension_numbers = #tpu.dot_dimension_numbers<[1], [0], [0], [1], [0, 0, 1, 1], [], []>} : vector<72x96xbf16>, vector<96x32xbf16>, vector<72x32xf32> -> vector<72x32xf32>
    %c1_47 = arith.constant 1 : index
    %c0_48 = arith.constant 0 : index
    %c0_49 = arith.constant 0 : index
    %68 = vector.load %arg5[%c1_47, %c0_48, %c0_49] : memref<3x96x32xbf16, #tpu.memory_space<vmem>>, vector<1x96x32xbf16>
    %69 = vector.shape_cast %68 : vector<1x96x32xbf16> to vector<96x32xbf16>
    %cst_50 = arith.constant dense<0.000000e+00> : vector<72x32xf32>
    %70 = tpu.matmul %64, %69, %cst_50 {dimension_numbers = #tpu.dot_dimension_numbers<[1], [0], [0], [1], [0, 0, 1, 1], [], []>} : vector<72x96xbf16>, vector<96x32xbf16>, vector<72x32xf32> -> vector<72x32xf32>
    %71 = vector.extract_strided_slice %70 {offsets = [1, 0], sizes = [71, 32], strides = [1, 1]} : vector<72x32xf32> to vector<71x32xf32>
    %cst_51 = arith.constant 0.000000e+00 : f32
    %72 = vector.broadcast %cst_51 : f32 to vector<1x32xf32>
    %73 = tpu.concatenate %71, %72 in 0 : vector<71x32xf32>, vector<1x32xf32> -> vector<72x32xf32>
    %74 = arith.addf %67, %73 : vector<72x32xf32>
    %c2_52 = arith.constant 2 : index
    %c0_53 = arith.constant 0 : index
    %c0_54 = arith.constant 0 : index
    %75 = vector.load %arg5[%c2_52, %c0_53, %c0_54] : memref<3x96x32xbf16, #tpu.memory_space<vmem>>, vector<1x96x32xbf16>
    %76 = vector.shape_cast %75 : vector<1x96x32xbf16> to vector<96x32xbf16>
    %cst_55 = arith.constant dense<0.000000e+00> : vector<72x32xf32>
    %77 = tpu.matmul %64, %76, %cst_55 {dimension_numbers = #tpu.dot_dimension_numbers<[1], [0], [0], [1], [0, 0, 1, 1], [], []>} : vector<72x96xbf16>, vector<96x32xbf16>, vector<72x32xf32> -> vector<72x32xf32>
    %78 = vector.extract_strided_slice %77 {offsets = [2, 0], sizes = [70, 32], strides = [1, 1]} : vector<72x32xf32> to vector<70x32xf32>
    %cst_56 = arith.constant 0.000000e+00 : f32
    %79 = vector.broadcast %cst_56 : f32 to vector<2x32xf32>
    %80 = tpu.concatenate %78, %79 in 0 : vector<70x32xf32>, vector<2x32xf32> -> vector<72x32xf32>
    %81 = arith.addf %74, %80 : vector<72x32xf32>
    %82 = vector.shape_cast %81 : vector<72x32xf32> to vector<4x18x32xf32>
    %83 = vector.extract_strided_slice %82 {offsets = [0, 0, 0], sizes = [4, 16, 32], strides = [1, 1, 1]} : vector<4x18x32xf32> to vector<4x16x32xf32>
    %c0_57 = arith.constant 0 : index
    %c0_58 = arith.constant 0 : index
    %84 = vector.load %arg6[%c0_57, %c0_58] : memref<1x32xf32, #tpu.memory_space<vmem>>, vector<1x32xf32>
    %85 = vector.shape_cast %84 : vector<1x32xf32> to vector<1x1x32xf32>
    %86 = vector.broadcast %85 : vector<1x1x32xf32> to vector<4x16x32xf32>
    %87 = arith.addf %83, %86 : vector<4x16x32xf32>
    %c0_59 = arith.constant 0 : index
    %88 = arith.index_cast %1 : i32 to index
    %c0_60 = arith.constant 0 : index
    %c0_61 = arith.constant 0 : index
    %89 = vector.load %arg2[%c0_59, %88, %c0_60, %c0_61] : memref<1x8x16x32xf32, #tpu.memory_space<vmem>>, vector<1x4x16x32xf32>
    %90 = vector.shape_cast %89 : vector<1x4x16x32xf32> to vector<4x16x32xf32>
    %91 = arith.addf %87, %90 : vector<4x16x32xf32>
    %c0_62 = arith.constant 0 : index
    %c0_63 = arith.constant 0 : index
    %c0_64 = arith.constant 0 : index
    %c0_65 = arith.constant 0 : index
    %92 = vector.load %arg7[%c0_62, %c0_63, %c0_64, %c0_65] : memref<1x4x16x32xf32, #tpu.memory_space<vmem>>, vector<1x4x16x32xf32>
    %93 = vector.shape_cast %92 : vector<1x4x16x32xf32> to vector<4x16x32xf32>
    %94 = vector.shape_cast %91 : vector<4x16x32xf32> to vector<1x4x16x32xf32>
    tpu.vector_store %arg7[%c0_62, %c0_63, %c0_64, %c0_65], %94 {strides = array<i32>} : memref<1x4x16x32xf32, #tpu.memory_space<vmem>>, vector<1x4x16x32xf32>,
    return
  }
  func.func @transform_0(%arg0: i32, %arg1: i32) -> (i32, i32, i32, i32) {
    %c0_i32 = arith.constant 0 : i32
    %c0_i32_0 = arith.constant 0 : i32
    %c0_i32_1 = arith.constant 0 : i32
    %c0_i32_2 = arith.constant 0 : i32
    return %arg0, %c0_i32, %c0_i32_0, %c0_i32_1 : i32, i32, i32, i32
  }
  func.func @transform_1(%arg0: i32, %arg1: i32) -> (i32, i32, i32) {
    %c0_i32 = arith.constant 0 : i32
    %c0_i32_0 = arith.constant 0 : i32
    %c0_i32_1 = arith.constant 0 : i32
    %c0_i32_2 = arith.constant 0 : i32
    return %c0_i32, %c0_i32_0, %c0_i32_1 : i32, i32, i32
  }
  func.func @transform_2(%arg0: i32, %arg1: i32) -> (i32, i32) {
    %c0_i32 = arith.constant 0 : i32
    %c0_i32_0 = arith.constant 0 : i32
    %c0_i32_1 = arith.constant 0 : i32
    return %c0_i32, %c0_i32_0 : i32, i32
  }
  func.func @transform_3(%arg0: i32, %arg1: i32) -> (i32, i32, i32) {
    %c0_i32 = arith.constant 0 : i32
    %c0_i32_0 = arith.constant 0 : i32
    %c0_i32_1 = arith.constant 0 : i32
    %c0_i32_2 = arith.constant 0 : i32
    return %c0_i32, %c0_i32_0, %c0_i32_1 : i32, i32, i32
  }
  func.func @transform_4(%arg0: i32, %arg1: i32) -> (i32, i32) {
    %c0_i32 = arith.constant 0 : i32
    %c0_i32_0 = arith.constant 0 : i32
    %c0_i32_1 = arith.constant 0 : i32
    return %c0_i32, %c0_i32_0 : i32, i32
  }
  func.func @transform_5(%arg0: i32, %arg1: i32) -> (i32, i32, i32, i32) {
    %c0_i32 = arith.constant 0 : i32
    %c0_i32_0 = arith.constant 0 : i32
    %c0_i32_1 = arith.constant 0 : i32
    return %arg0, %arg1, %c0_i32, %c0_i32_0 : i32, i32, i32, i32
  }
}

</mosaic_0001>

<bundles_post_ra>
// kernel: encoder_layer4_forward.2
= control target key start
LH: loop header
LB: loop body
LE: loop exit
PB: predicated region body
PF: predicated region fallthrough
CT: control target
= control target key end

     0   :  { %s1323_s12 = smov 0   ;;  %s1325_s13 = smov 0   ;;  %s1787_s0 = inlined_call_operand.vmem [shape: f32[2,16,16,8], index: 0, kind: input, shape index: {}]   ;;  %s1788_s1 = inlined_call_operand.vmem [shape: bf16[36,32], index: 1, kind: input, shape index: {}]   ;;  %s1789_s2 = inlined_call_operand.vmem [shape: f32[1,32], index: 2, kind: input, shape index: {}]   ;;  %s1790_s3 = inlined_call_operand.vmem [shape: f32[2,8,16,32], index: 3, kind: output, shape index: {}]  }
   0x1   :  { %s1327_s14 = smov 0   ;;  %s1329_s15 = smov 0  }
   0x2   :  { %s1331_s16 = smov 0  }
   0x3 LB: > { %s22_s17 = sadd.s32 1, %s1282_s14  ;;  %s25_s18 = sadd.s32 1, %s1286_s15  ;;  %s1290_s16 = sphi %s1331_s16, %s13_s16   ;;  %s1286_s15 = sphi %s1329_s15, %s1794_s15   ;;  %s1282_s14 = sphi %s1327_s14, %s1793_s14   ;;  %s1278_s13 = sphi %s1325_s13, %s1792_s13   ;;  %s1274_s12 = sphi %s1323_s12, %s1791_s12  }
   0x4   : > { %p23_p0 = scmp.ge.s32.totalorder %s22_s17, 2  ;;  %p1001_p1 = scmp.ge.s32.totalorder %s1290_s16, 1 }
   0x5   : > { %p151_p2 = scmp.lt.s32.totalorder %s1290_s16, 5 }
   0x6   : > { %s1796_s17 = smov (%p23_p0, %s22_s17), 0  ;;  %s1798_s18 = smov (!%p23_p0, %s25_s18), %s1286_s15 }
   0x7   : > { %p152_p3 = pnand %p1001_p1, %p151_p2  ;;  %p27_p4 = scmp.ge.s32.totalorder %s1798_s18, 2 }
   0x8   : > { %p180_p5 = scmp.lt.s32.totalorder (!%p152_p3), %s1278_s13, 1  ;;  %s1004_s19 = sshll.u32 (!%p152_p3), %s1274_s12, 2 }
   0x9   : > { %s1800_s18 = smov (%p27_p4, %s1798_s18), 0  ;;  %155 = sbr.rel (%p152_p3) target bundleno = 647 (0x287), region = 32 }
   0xa   : > { %p188_p6 = scmp.lt.s32.totalorder (!%p152_p3), %s1004_s19, 7  ;;  %s1028_s20 = sshll.u32 (!%p152_p3), %s1274_s12, 7 }
   0xb   : > { %s1293_s6 = smov (!%p152_p3), 124   ;;  %s1008_s7 = sshll.u32 (!%p152_p3), %s1274_s12, 3 }
   0xc   : > { %p1010_p7 = scmp.le.s32.totalorder (!%p152_p3), %s1274_s12, 0 }
   0xe   : > { %vm198_vm0 = vcmask 31744   ;;  %v1292_v0 = vmov 0.0   ;;  %s1802_s13 = smov (!%p180_p5, %s1278_s13), 1  ;;  %s1804_s19 = smov (!%p188_p6, %s1004_s19), 7  ;;  %vm201_vm1 = vcmask 24576  }
   0xf   : > { %233 = vst.msk [vmem:[#allocation2 + $0x108] sm:$0xff] %vm198_vm0, %v1292_v0  ;;  %s1027_s21 = sshll.u32 %s1802_s13, 8  ;;  %s1006_s22 = sshll.u32 %s1802_s13, 4 }
  0x10   : > { %199 = vst.msk [vmem:[#allocation2] sm:$0xff] %vm198_vm0, %v1292_v0  ;;  %s1368_s25 = scalar_lea.vmem %s1787_s0, %s1027_s21  ;;  %s1005_s26 = sshll.u32 %s1804_s19, 1 }
  0x11   : > { %200 = vst.msk [vmem:[#allocation2 + $0x8] sm:$0xff] %vm198_vm0, %v1292_v0  ;;  %s192_s27 = sadd.s32 %s1006_s22, %s1005_s26  ;;  %s1373_s28 = scalar_lea.vmem %s1368_s25, %s1028_s20 }
  0x12   : > { %203 = vst.msk [vmem:[#allocation2 + $0x18] sm:$0xff] %vm198_vm0, %v1292_v0  ;;  %s1007_s29 = sshll.u32 %s192_s27, 3  ;;  %v262_v1 = vld [vmem:[%s1373_s28] sm:$0xff]  ;;  %v264_v2 = vld [vmem:[%s1373_s28 + $0x10] sm:$0xff]  ;;  %v263_v4 = vld [vmem:[%s1373_s28 + $0x8] sm:$0xff]  ;;  %s1011_s8 = sadd.s32 (!%p1010_p7), 4294967295, %s1008_s7 }
  0x13   : > { %204 = vst.msk [vmem:[#allocation2 + $0x20] sm:$0xff] %vm198_vm0, %v1292_v0  ;;  %s1384_s5 = scalar_lea.vmem %s1790_s3, %s1007_s29  ;;  %294 = vrot.lane.b32.xlu0 %v262_v1, %s1293_s6  ;;  %298 = vrot.lane.b32.xlu1 %v264_v2, %s1293_s6  ;;  %v266_v3 = vld [vmem:[%s1373_s28 + $0x20] sm:$0xff]  ;;  %v265_v5 = vld [vmem:[%s1373_s28 + $0x18] sm:$0xff]  ;;  %s1012_s9 = sshll.u32 (!%p1010_p7), %s1011_s8, 4 }
  0x14   : > { %206 = vst.msk [vmem:[#allocation2 + $0x30] sm:$0xff] %vm198_vm0, %v1292_v0  ;;  %302 = vrot.lane.b32.xlu2 %v266_v3, %s1293_s6  ;;  %v267_v6 = vld [vmem:[%s1373_s28 + $0x28] sm:$0xff]  ;;  %v268_v7 = vld [vmem:[%s1373_s28 + $0x30] sm:$0xff]  ;;  %v269_v8 = vld [vmem:[%s1373_s28 + $0x38] sm:$0xff]  ;;  %s382_s10 = scalar_lea.vmem (!%p1010_p7), %s1368_s25, %s1012_s9  ;;  %s1294_s11 = smov (!%p1010_p7), 124  }
  0x15   : > { %207 = vst.msk [vmem:[#allocation2 + $0x38] sm:$0xff] %vm198_vm0, %v1292_v0  ;;  %v270_v9 = vld [vmem:[%s1373_s28 + $0x40] sm:$0xff]  ;;  %v271_v10 = vld [vmem:[%s1373_s28 + $0x48] sm:$0xff]  ;;  %v272_v11 = vld [vmem:[%s1373_s28 + $0x50] sm:$0xff] }
  0x16   : > { %360 = vst.msk [vmem:[#allocation2 + $0x108] sm:$0xff] %vm198_vm0, %v262_v1  ;;  %v273_v12 = vld [vmem:[%s1373_s28 + $0x58] sm:$0xff]  ;;  %v274_v13 = vld [vmem:[%s1373_s28 + $0x60] sm:$0xff]  ;;  %v275_v14 = vld [vmem:[%s1373_s28 + $0x68] sm:$0xff] }
  0x17   : > { %209 = vst.msk [vmem:[#allocation2 + $0x48] sm:$0xff] %vm198_vm0, %v1292_v0  ;;  %v276_v15 = vld [vmem:[%s1373_s28 + $0x70] sm:$0xff]  ;;  %v277_v16 = vld [vmem:[%s1373_s28 + $0x78] sm:$0xff] }
  0x18   : > { %210 = vst.msk [vmem:[#allocation2 + $0x50] sm:$0xff] %vm198_vm0, %v1292_v0 }
  0x19   : > { %212 = vst.msk [vmem:[#allocation2 + $0x60] sm:$0xff] %vm198_vm0, %v1292_v0 }
  0x1a   : > { %213 = vst.msk [vmem:[#allocation2 + $0x68] sm:$0xff] %vm198_vm0, %v1292_v0 }
  0x1b   : > { %215 = vst.msk [vmem:[#allocation2 + $0x78] sm:$0xff] %vm198_vm0, %v1292_v0  ;;  %296 = vrot.lane.b32.xlu0 %v263_v4, %s1293_s6  ;;  %300 = vrot.lane.b32.xlu1 %v265_v5, %s1293_s6 }
  0x1c   : > { %216 = vst.msk [vmem:[#allocation2 + $0x80] sm:$0xff] %vm198_vm0, %v1292_v0  ;;  %304 = vrot.lane.b32.xlu2 %v267_v6, %s1293_s6 }
  0x1d   : > { %218 = vst.msk [vmem:[#allocation2 + $0x90] sm:$0xff] %vm198_vm0, %v1292_v0 }
  0x1e   : > { %219 = vst.msk [vmem:[#allocation2 + $0x98] sm:$0xff] %vm198_vm0, %v1292_v0 }
  0x1f   : > { %221 = vst.msk [vmem:[#allocation2 + $0xa8] sm:$0xff] %vm198_vm0, %v1292_v0 }
  0x20   : > { %222 = vst.msk [vmem:[#allocation2 + $0xb0] sm:$0xff] %vm198_vm0, %v1292_v0 }
  0x21   : > { %224 = vst.msk [vmem:[#allocation2 + $0xc0] sm:$0xff] %vm198_vm0, %v1292_v0 }
  0x22   : > { %225 = vst.msk [vmem:[#allocation2 + $0xc8] sm:$0xff] %vm198_vm0, %v1292_v0 }
  0x23   : > { %230 = vst.msk [vmem:[#allocation2 + $0xf0] sm:$0xff] %vm198_vm0, %v1292_v0  ;;  %306 = vrot.lane.b32.xlu0 %v268_v7, %s1293_s6  ;;  %308 = vrot.lane.b32.xlu1 %v269_v8, %s1293_s6 }
  0x24   : > { %231 = vst.msk [vmem:[#allocation2 + $0xf8] sm:$0xff] %vm198_vm0, %v1292_v0  ;;  %310 = vrot.lane.b32.xlu2 %v270_v9, %s1293_s6 }
  0x25   : > { %234 = vst.msk [vmem:[#allocation2 + $0x110] sm:$0xff] %vm198_vm0, %v1292_v0 }
  0x26   : > { %236 = vst.msk [vmem:[#allocation2 + $0x120] sm:$0xff] %vm198_vm0, %v1292_v0 }
  0x27   : > { %237 = vst.msk [vmem:[#allocation2 + $0x128] sm:$0xff] %vm198_vm0, %v1292_v0 }
  0x28   : > { %239 = vst.msk [vmem:[#allocation2 + $0x138] sm:$0xff] %vm198_vm0, %v1292_v0 }
  0x29   : > { %240 = vst.msk [vmem:[#allocation2 + $0x140] sm:$0xff] %vm198_vm0, %v1292_v0 }
  0x2a   : > { %242 = vst.msk [vmem:[#allocation2 + $0x150] sm:$0xff] %vm198_vm0, %v1292_v0 }
  0x2b   : > { %243 = vst.msk [vmem:[#allocation2 + $0x158] sm:$0xff] %vm198_vm0, %v1292_v0  ;;  %312 = vrot.lane.b32.xlu0 %v271_v10, %s1293_s6  ;;  %314 = vrot.lane.b32.xlu1 %v272_v11, %s1293_s6 }
  0x2c   : > { %245 = vst.msk [vmem:[#allocation2 + $0x168] sm:$0xff] %vm198_vm0, %v1292_v0  ;;  %316 = vrot.lane.b32.xlu2 %v273_v12, %s1293_s6 }
  0x2d   : > { %246 = vst.msk [vmem:[#allocation2 + $0x170] sm:$0xff] %vm198_vm0, %v1292_v0 }
  0x2e   : > { %248 = vst.msk [vmem:[#allocation2 + $0x180] sm:$0xff] %vm198_vm0, %v1292_v0 }
  0x2f   : > { %249 = vst.msk [vmem:[#allocation2 + $0x188] sm:$0xff] %vm198_vm0, %v1292_v0 }
  0x30   : > { %251 = vst.msk [vmem:[#allocation2 + $0x198] sm:$0xff] %vm198_vm0, %v1292_v0 }
  0x31   : > { %252 = vst.msk [vmem:[#allocation2 + $0x1a0] sm:$0xff] %vm198_vm0, %v1292_v0 }
  0x32   : > { %254 = vst.msk [vmem:[#allocation2 + $0x1b0] sm:$0xff] %vm198_vm0, %v1292_v0 }
  0x33   : > { %255 = vst.msk [vmem:[#allocation2 + $0x1b8] sm:$0xff] %vm198_vm0, %v1292_v0  ;;  %318 = vrot.lane.b32.xlu0 %v274_v13, %s1293_s6  ;;  %320 = vrot.lane.b32.xlu1 %v275_v14, %s1293_s6 }
  0x34   : > { %362 = vst.msk [vmem:[#allocation2 + $0x120] sm:$0xff] %vm198_vm0, %v264_v2  ;;  %322 = vrot.lane.b32.xlu2 %v276_v15, %s1293_s6 }
  0x35   : > { %361 = vst.msk [vmem:[#allocation2 + $0x110] sm:$0xff] %vm198_vm0, %v263_v4 }
  0x36   : > { %363 = vst.msk [vmem:[#allocation2 + $0x128] sm:$0xff] %vm198_vm0, %v265_v5 }
  0x37   : > { %366 = vst.msk [vmem:[#allocation2 + $0x150] sm:$0xff] %vm198_vm0, %v268_v7 }
  0x38   : > { %367 = vst.msk [vmem:[#allocation2 + $0x158] sm:$0xff] %vm198_vm0, %v269_v8 }
  0x39   : > { %369 = vst.msk [vmem:[#allocation2 + $0x170] sm:$0xff] %vm198_vm0, %v271_v10 }
  0x3a   : > { %364 = vst.msk [vmem:[#allocation2 + $0x138] sm:$0xff] %vm198_vm0, %v266_v3 }
  0x3b   : > { %324 = vrot.lane.b32.xlu0 %v277_v16, %s1293_s6  ;;  %370 = vst.msk [vmem:[#allocation2 + $0x180] sm:$0xff] %vm198_vm0, %v272_v11 }
  0x3c   : > { %372 = vst.msk [vmem:[#allocation2 + $0x198] sm:$0xff] %vm198_vm0, %v274_v13 }
  0x3d   : > { %365 = vst.msk [vmem:[#allocation2 + $0x140] sm:$0xff] %vm198_vm0, %v267_v6 }
  0x3e   : > { %373 = vst.msk [vmem:[#allocation2 + $0x1a0] sm:$0xff] %vm198_vm0, %v275_v14 }
  0x3f   : > { %375 = vst.msk [vmem:[#allocation2 + $0x1b8] sm:$0xff] %vm198_vm0, %v277_v16 }
  0x40   : > { %368 = vst.msk [vmem:[#allocation2 + $0x168] sm:$0xff] %vm198_vm0, %v270_v9 }
  0x41   : > { %371 = vst.msk [vmem:[#allocation2 + $0x188] sm:$0xff] %vm198_vm0, %v273_v12 }
  0x42   : > { %374 = vst.msk [vmem:[#allocation2 + $0x1b0] sm:$0xff] %vm198_vm0, %v276_v15 }
  0x43   : > { %202 = vst.msk [vmem:[#allocation2 + $0x10] sm:$0x1] %vm201_vm1, %v1292_v0 }
  0x44   : > { %205 = vst.msk [vmem:[#allocation2 + $0x28] sm:$0x1] %vm201_vm1, %v1292_v0 }
  0x45   : > { %208 = vst.msk [vmem:[#allocation2 + $0x40] sm:$0x1] %vm201_vm1, %v1292_v0 }
  0x46   : > { %211 = vst.msk [vmem:[#allocation2 + $0x58] sm:$0x1] %vm201_vm1, %v1292_v0 }
  0x47   : > { %214 = vst.msk [vmem:[#allocation2 + $0x70] sm:$0x1] %vm201_vm1, %v1292_v0 }
  0x48   : > { %217 = vst.msk [vmem:[#allocation2 + $0x88] sm:$0x1] %vm201_vm1, %v1292_v0 }
  0x49   : > { %220 = vst.msk [vmem:[#allocation2 + $0xa0] sm:$0x1] %vm201_vm1, %v1292_v0 }
  0x4a   : > { %223 = vst.msk [vmem:[#allocation2 + $0xb8] sm:$0x1] %vm201_vm1, %v1292_v0 }
  0x4b   : > { %226 = vst.msk [vmem:[#allocation2 + $0xd0] sm:$0x1] %vm201_vm1, %v1292_v0 }
  0x6e   : > { %v303_v17 = vpop.permute.xlu2 %302 }
  0x6f   : > { %347 = vst.msk [vmem:[#allocation2 + $0x49] sm:$0xff] %vm198_vm0, %v303_v17 }
  0x76   : > { %v305_v18 = vpop.permute.xlu2 %304 }
  0x77   : > { %348 = vst.msk [vmem:[#allocation2 + $0x51] sm:$0xff] %vm198_vm0, %v305_v18 }
  0x7e   : > { %v311_v19 = vpop.permute.xlu2 %310 }
  0x7f   : > { %351 = vst.msk [vmem:[#allocation2 + $0x79] sm:$0xff] %vm198_vm0, %v311_v19 }
  0x85   : > { %v295_v20 = vpop.permute.xlu0 %294  ;;  %v299_v21 = vpop.permute.xlu1 %298 }
  0x86   : > { %343 = vst.msk [vmem:[#allocation2 + $0x19] sm:$0xff] %vm198_vm0, %v295_v20  ;;  %v317_v22 = vpop.permute.xlu2 %316 }
  0x87   : > { %345 = vst.msk [vmem:[#allocation2 + $0x31] sm:$0xff] %vm198_vm0, %v299_v21 }
  0x88   : > { %354 = vst.msk [vmem:[#allocation2 + $0x99] sm:$0xff] %vm198_vm0, %v317_v22 }
  0x8d   : > { %v297_v23 = vpop.permute.xlu0 %296  ;;  %v301_v24 = vpop.permute.xlu1 %300 }
  0x8e   : > { %344 = vst.msk [vmem:[#allocation2 + $0x21] sm:$0xff] %vm198_vm0, %v297_v23  ;;  %v323_v25 = vpop.permute.xlu2 %322 }
  0x8f   : > { %346 = vst.msk [vmem:[#allocation2 + $0x39] sm:$0xff] %vm198_vm0, %v301_v24 }
  0x90   : > { %357 = vst.msk [vmem:[#allocation2 + $0xc1] sm:$0xff] %vm198_vm0, %v323_v25 }
  0x95   : > { %v307_v26 = vpop.permute.xlu0 %306  ;;  %v309_v27 = vpop.permute.xlu1 %308 }
  0x96   : > { %349 = vst.msk [vmem:[#allocation2 + $0x61] sm:$0xff] %vm198_vm0, %v307_v26 }
  0x97   : > { %350 = vst.msk [vmem:[#allocation2 + $0x69] sm:$0xff] %vm198_vm0, %v309_v27 }
  0x9d   : > { %v313_v28 = vpop.permute.xlu0 %312  ;;  %v315_v29 = vpop.permute.xlu1 %314 }
  0x9e   : > { %352 = vst.msk [vmem:[#allocation2 + $0x81] sm:$0xff] %vm198_vm0, %v313_v28 }
  0x9f   : > { %353 = vst.msk [vmem:[#allocation2 + $0x91] sm:$0xff] %vm198_vm0, %v315_v29 }
  0xa5   : > { %v319_v30 = vpop.permute.xlu0 %318  ;;  %v321_v31 = vpop.permute.xlu1 %320 }
  0xa6   : > { %355 = vst.msk [vmem:[#allocation2 + $0xa9] sm:$0xff] %vm198_vm0, %v319_v30 }
  0xa7   : > { %356 = vst.msk [vmem:[#allocation2 + $0xb1] sm:$0xff] %vm198_vm0, %v321_v31 }
  0xaa   : > { %379 = sbr.rel (%p1010_p7) target bundleno = 300 (0x12c), region = 36 }
  0xad   : > { %v325_v32 = vpop.permute.xlu0 %324 }
  0xae   : > { %358 = vst.msk [vmem:[#allocation2 + $0xc9] sm:$0xff] %vm198_vm0, %v325_v32 }
  0xaf   : > { %v383_v33 = vld [vmem:[%s382_s10] sm:$0xff]  ;;  %v384_v34 = vld [vmem:[%s382_s10 + $0x8] sm:$0xff] }
  0xb0   : > { %387 = vrot.lane.b32.xlu0 %v383_v33, %s1294_s11  ;;  %396 = vst.msk [vmem:[#allocation2 + $0xf0] sm:$0xff] %vm198_vm0, %v383_v33 }
  0xb1   : > { %397 = vst.msk [vmem:[#allocation2 + $0xf8] sm:$0xff] %vm198_vm0, %v384_v34 }
  0xb8   : > { %389 = vrot.lane.b32.xlu0 %v384_v34, %s1294_s11 }
 0x122   : > { %v388_v35 = vpop.permute.xlu0 %387 }
 0x123   : > { %393 = vst.msk [vmem:[#allocation2 + $0x1] sm:$0xff] %vm198_vm0, %v388_v35 }
 0x12a   : > { %v390_v36 = vpop.permute.xlu0 %389 }
 0x12b   : > { %394 = vst.msk [vmem:[#allocation2 + $0x9] sm:$0xff] %vm198_vm0, %v390_v36 }
 0x12c PF: > { %v433_v37 = vld [vmem:[#allocation2 + $0x150] sm:$0xff]  ;;  %v434_v38 = vld [vmem:[#allocation2 + $0x158] sm:$0xff]  ;;  %v1524_v39 = vld [vmem:[#allocation2 + $0x60] sm:$0xff]  ;;  %vm487_vm2 = vcmask 1046528   ;;  %s1295_s12 = smov 4   ;;  %s1296_s13 = smov 8  }
 0x12d   : > { %v1526_v40 = vpack.i.bf16 %v434_v38, %v433_v37  ;;  %v1528_v41 = vld [vmem:[#allocation2 + $0x68] sm:$0xff]  ;;  %v412_v42 = vld [vmem:[#allocation2 + $0x70] sm:$0x1]  ;;  %v498_v43 = vrot.slane %v1524_v39, 1  ;;  %v1534_v47 = vld [vmem:[#allocation2 + $0x98] sm:$0xff]  ;;  %s1297_s19 = smov 12  }
 0x12e   : > { %v499_v44 = vrot.slane %v1528_v41, 1  ;;  %v501_v45 = vrot.slane %v412_v42, 1  ;;  %v1532_v46 = vld [vmem:[#allocation2 + $0x90] sm:$0xff]  ;;  %v418_v48 = vld [vmem:[#allocation2 + $0xa0] sm:$0x1]  ;;  %v438_v53 = vld [vmem:[#allocation2 + $0x188] sm:$0xff] }
 0x12f   : > { %1092 = vrot.lane.b32.xlu0 %v1526_v40, %s1295_s12  ;;  %v503_v49 = vrot.slane %v1532_v46, 1  ;;  %v437_v52 = vld [vmem:[#allocation2 + $0x180] sm:$0xff]  ;;  %v504_v54 = vrot.slane %v1534_v47, 1  ;;  %v506_v55 = vrot.slane %v418_v48, 1  ;;  %v413_v56 = vld [vmem:[#allocation2 + $0x78] sm:$0xff]  ;;  %v419_v1 = vld [vmem:[#allocation2 + $0xa8] sm:$0xff]  ;;  %v1141_v25 = vpack.i.bf16 %v1534_v47, %v1532_v46 }
 0x130   : > { %v500_v50 = vsel %vm487_vm2, %v498_v43, %v499_v44  ;;  %v502_v51 = vsel %vm487_vm2, %v499_v44, %v501_v45  ;;  %v414_v58 = vld [vmem:[#allocation2 + $0x80] sm:$0xff]  ;;  %v1546_v60 = vpack.i.bf16 %v438_v53, %v437_v52  ;;  %v415_v63 = vld [vmem:[#allocation2 + $0x88] sm:$0x1]  ;;  %v420_v2 = vld [vmem:[#allocation2 + $0xb0] sm:$0xff]  ;;  %v610_v7 = vrot.slane %v413_v56, 1  ;;  %s1298_s20 = smov 16  }
 0x131   : > { %v1542_v57 = vpack.i.bf16 %v502_v51, %v500_v50  ;;  %v1111_v59 = vpack.i.bf16 %v414_v58, %v413_v56  ;;  %v505_v61 = vsel %vm487_vm2, %v503_v49, %v504_v54  ;;  %v507_v62 = vsel %vm487_vm2, %v504_v54, %v506_v55  ;;  %v435_v3 = vld [vmem:[#allocation2 + $0x168] sm:$0xff]  ;;  %v436_v4 = vld [vmem:[#allocation2 + $0x170] sm:$0xff]  ;;  %v421_v8 = vld [vmem:[#allocation2 + $0xb8] sm:$0x1]  ;;  %s1299_s21 = smov 20   ;;  %s1300_s22 = smov 24  }
 0x132   : > { %v1553_v0 = vpack.i.bf16 %v507_v62, %v505_v61  ;;  %v1116_v5 = vpack.i.bf16 %v420_v2, %v419_v1  ;;  %v611_v6 = vrot.slane %v414_v58, 1  ;;  %v613_v9 = vrot.slane %v415_v63, 1  ;;  %v439_v11 = vld [vmem:[#allocation2 + $0x198] sm:$0xff]  ;;  %v440_v12 = vld [vmem:[#allocation2 + $0x1a0] sm:$0xff]  ;;  %v423_v24 = vld [vmem:[#allocation2 + $0xc8] sm:$0xff]  ;;  %s1301_s23 = smov 28  }
 0x133   : > { %1102 = vrot.lane.b32.xlu1 %v1542_v57, %s1296_s13  ;;  %1112 = vrot.lane.b32.xlu2 %v1111_v59, %s1297_s19  ;;  %v1121_v10 = vpack.i.bf16 %v436_v4, %v435_v3  ;;  %v615_v13 = vrot.slane %v419_v1, 1  ;;  %v616_v14 = vrot.slane %v420_v2, 1  ;;  %v618_v15 = vrot.slane %v421_v8, 1  ;;  %v422_v23 = vld [vmem:[#allocation2 + $0xc0] sm:$0xff]  ;;  %v425_v26 = vld [vmem:[#allocation2 + $0xf0] sm:$0xff]  ;;  %v426_v27 = vld [vmem:[#allocation2 + $0xf8] sm:$0xff] }
 0x134   : > { %v612_v16 = vsel %vm487_vm2, %v610_v7, %v611_v6  ;;  %v614_v17 = vsel %vm487_vm2, %v611_v6, %v613_v9  ;;  %v1126_v18 = vpack.i.bf16 %v440_v12, %v439_v11  ;;  %v1146_v28 = vpack.i.bf16 %v423_v24, %v422_v23  ;;  %v429_v30 = vld [vmem:[#allocation2 + $0x120] sm:$0xff]  ;;  %v430_v31 = vld [vmem:[#allocation2 + $0x128] sm:$0xff]  ;;  %v400_v34 = vld [vmem:[#allocation2 + $0x10] sm:$0x1]  ;;  %s1302_s24 = smov 32  }
 0x135   : > { %v617_v19 = vsel %vm487_vm2, %v615_v13, %v616_v14  ;;  %v619_v20 = vsel %vm487_vm2, %v616_v14, %v618_v15  ;;  %v1131_v21 = vpack.i.bf16 %v614_v17, %v612_v16  ;;  %v1151_v29 = vpack.i.bf16 %v426_v27, %v425_v26  ;;  %v1570_v32 = vld [vmem:[#allocation2] sm:$0xff]  ;;  %v1572_v33 = vld [vmem:[#allocation2 + $0x8] sm:$0xff]  ;;  %v1574_v35 = vld [vmem:[#allocation2 + $0x30] sm:$0xff] }
 0x136   : > { %v1136_v22 = vpack.i.bf16 %v619_v20, %v617_v19  ;;  %v1576_v36 = vld [vmem:[#allocation2 + $0x38] sm:$0xff]  ;;  %v406_v37 = vld [vmem:[#allocation2 + $0x40] sm:$0x1]  ;;  %v1579_v38 = vpack.i.bf16 %v430_v31, %v429_v30  ;;  %v441_v42 = vld [vmem:[#allocation2 + $0x1b0] sm:$0xff]  ;;  %v488_v44 = vrot.slane %v1570_v32, 1  ;;  %v489_v45 = vrot.slane %v1572_v33, 1 }
 0x137   : > { %1097 = vrot.lane.b32.xlu0 %v1546_v60, %s1295_s12  ;;  %v442_v43 = vld [vmem:[#allocation2 + $0x1b8] sm:$0xff]  ;;  %v491_v48 = vrot.slane %v400_v34, 1  ;;  %v493_v49 = vrot.slane %v1574_v35, 1  ;;  %v494_v50 = vrot.slane %v1576_v36, 1  ;;  %v496_v51 = vrot.slane %v406_v37, 1  ;;  %v407_v6 = vld [vmem:[#allocation2 + $0x48] sm:$0xff] }
 0x138   : > { %v1166_v52 = vpack.i.bf16 %v442_v43, %v441_v42  ;;  %v490_v53 = vsel %vm487_vm2, %v488_v44, %v489_v45  ;;  %v424_v55 = vld [vmem:[#allocation2 + $0xd0] sm:$0x1]  ;;  %v698_v61 = vrot.slane %v423_v24, 1  ;;  %v697_v62 = vrot.slane %v422_v23, 1  ;;  %v401_v4 = vld [vmem:[#allocation2 + $0x18] sm:$0xff]  ;;  %v427_v11 = vld [vmem:[#allocation2 + $0x108] sm:$0xff] }
 0x139   : > { %v492_v54 = vsel %vm487_vm2, %v489_v45, %v491_v48  ;;  %v495_v56 = vsel %vm487_vm2, %v493_v49, %v494_v50  ;;  %v497_v58 = vsel %vm487_vm2, %v494_v50, %v496_v51  ;;  %v700_v63 = vrot.slane %v424_v55, 1  ;;  %v408_v7 = vld [vmem:[#allocation2 + $0x50] sm:$0xff]  ;;  %v403_v9 = vld [vmem:[#allocation2 + $0x28] sm:$0x1]  ;;  %v409_v16 = vld [vmem:[#allocation2 + $0x58] sm:$0x1] }
 0x13a   : > { %v1171_v59 = vpack.i.bf16 %v492_v54, %v490_v53  ;;  %v1176_v1 = vpack.i.bf16 %v497_v58, %v495_v56  ;;  %v699_v2 = vsel %vm487_vm2, %v697_v62, %v698_v61  ;;  %v428_v12 = vld [vmem:[#allocation2 + $0x110] sm:$0xff]  ;;  %v600_v13 = vrot.slane %v401_v4, 1  ;;  %v431_v17 = vld [vmem:[#allocation2 + $0x138] sm:$0xff]  ;;  %v1029_v51 = vld [vmem:[%s1788_s1] sm:$0xff] }
 0x13b   : > { %1107 = vrot.lane.b32.xlu1 %v1553_v0, %s1296_s13  ;;  %1117 = vrot.lane.b32.xlu2 %v1116_v5, %s1297_s19  ;;  %v701_v3 = vsel %vm487_vm2, %v698_v61, %v700_v63  ;;  %v402_v5 = vld [vmem:[#allocation2 + $0x20] sm:$0xff]  ;;  %v603_v15 = vrot.slane %v403_v9, 1  ;;  %v605_v19 = vrot.slane %v407_v6, 1  ;;  %v1201_v20 = vpack.i.bf16 %v428_v12, %v427_v11  ;;  %v805_v43 = vld [vmem:[%s1788_s1 + $0x10] sm:$0x3] }
 0x13c   : > { %v1191_v8 = vpack.i.bf16 %v402_v5, %v401_v4  ;;  %v601_v14 = vrot.slane %v402_v5, 1  ;;  %v608_v23 = vrot.slane %v409_v16, 1  ;;  %v1226_v30 = vpack.i.bf16 %v1528_v41, %v1524_v39 }
 0x13d   : > { %v819_v44 = vunpack.c.l.b16 %v805_v43  ;;  %vm838_vm3 = vcmask 1041408   ;;  %vm734_vm4 = vcmask 64512   ;;  %vm743_vm5 = vcmask 97280  }
 0x13e   : > { %vm752_vm6 = vcmask 130048   ;;  %vm761_vm7 = vcmask 162816   ;;  %vm770_vm8 = vcmask 195584   ;;  %vm779_vm9 = vcmask 228352  }
 0x13f   : > { %1122 = vrot.lane.b32.xlu0 %v1121_v10, %s1298_s20  ;;  %v1196_v10 = vpack.i.bf16 %v408_v7, %v407_v6  ;;  %vm788_vm10 = vcmask 261120   ;;  %vm825_vm11 = vcmask 293888  }
 0x143   : > { %1127 = vrot.lane.b32.xlu1 %v1126_v18, %s1298_s20  ;;  %1132 = vrot.lane.b32.xlu2 %v1131_v21, %s1299_s21  ;;  %v606_v18 = vrot.slane %v408_v7, 1  ;;  %v602_v21 = vsel %vm487_vm2, %v600_v13, %v601_v14 }
 0x145   : > { %v607_v26 = vsel %vm487_vm2, %v605_v19, %v606_v18  ;;  %v609_v27 = vsel %vm487_vm2, %v606_v18, %v608_v23 }
 0x147   : > { %1137 = vrot.lane.b32.xlu0 %v1136_v22, %s1299_s21  ;;  %v604_v22 = vsel %vm487_vm2, %v601_v14, %v603_v15 }
 0x14b   : > { %1142 = vrot.lane.b32.xlu1 %v1141_v25, %s1300_s22  ;;  %1147 = vrot.lane.b32.xlu2 %v1146_v28, %s1300_s22  ;;  %v1211_v25 = vpack.i.bf16 %v604_v22, %v602_v21  ;;  %v1216_v28 = vpack.i.bf16 %v609_v27, %v607_v26 }
 0x14f   : > { %1152 = vrot.lane.b32.xlu0 %v1151_v29, %s1295_s12  ;;  %v1221_v29 = vpack.i.bf16 %v1576_v36, %v1574_v35 }
 0x153   : > { %1157 = vrot.lane.b32.xlu1 %v1579_v38, %s1295_s12  ;;  %1162 = vrot.lane.b32.xlu2 %v1546_v60, %s1301_s23  ;;  %v1186_v60 = vpack.i.bf16 %v701_v3, %v699_v2 }
 0x157   : > { %1167 = vrot.lane.b32.xlu0 %v1166_v52, %s1301_s23 }
 0x15b   : > { %1172 = vrot.lane.b32.xlu1 %v1171_v59, %s1296_s13  ;;  %1177 = vrot.lane.b32.xlu2 %v1176_v1, %s1296_s13 }
 0x15f   : > { %1182 = vrot.lane.b32.xlu0 %v1553_v0, %s1302_s24  ;;  %v432_v0 = vld [vmem:[#allocation2 + $0x140] sm:$0xff] }
 0x160   : > { %v1206_v24 = vpack.i.bf16 %v432_v0, %v431_v17 }
 0x163   : > { %1187 = vrot.lane.b32.xlu1 %v1186_v60, %s1302_s24  ;;  %1192 = vrot.lane.b32.xlu2 %v1191_v8, %s1297_s19 }
 0x167   : > { %1197 = vrot.lane.b32.xlu0 %v1196_v10, %s1297_s19 }
 0x16b   : > { %1202 = vrot.lane.b32.xlu1 %v1201_v20, %s1298_s20  ;;  %1207 = vrot.lane.b32.xlu2 %v1206_v24, %s1298_s20 }
 0x16f   : > { %1212 = vrot.lane.b32.xlu0 %v1211_v25, %s1299_s21 }
 0x173   : > { %1217 = vrot.lane.b32.xlu1 %v1216_v28, %s1299_s21  ;;  %1222 = vrot.lane.b32.xlu2 %v1221_v29, %s1300_s22 }
 0x177   : > { %1227 = vrot.lane.b32.xlu0 %v1226_v30, %s1300_s22 }
 0x17b   : > { %1232 = vrot.lane.b32.xlu1 %v1579_v38, %s1301_s23  ;;  %1237 = vrot.lane.b32.xlu2 %v1526_v40, %s1301_s23  ;;  %v822_v40 = vpack.c.b16 %v819_v44, %v819_v44 }
 0x17d   : > { %v840_v48 = vsel %vm838_vm3, %v822_v40, 0 }
 0x17e   : > { %1032 = vmatpush.bf16.msra.mxu2 %v840_v48  ;;  %1033 = vmatpush.bf16.msra.mxu3 %v840_v48 }
 0x17f   : > { %1242 = vrot.lane.b32.xlu0 %v1176_v1, %s1302_s24  ;;  %847 = vmatpush.bf16.msra.mxu0 %v840_v48 }
 0x180   : > { %1031 = vmatpush.bf16.msra.mxu1 %v840_v48 }
 0x183   : > { %1247 = vrot.lane.b32.xlu1 %v1542_v57, %s1302_s24  ;;  %v1030_v57 = vld [vmem:[%s1788_s1 + $0x8] sm:$0xff] }
 0x184   : > { %1035 = vmatpush.bf16.msra.mxu2 %v1030_v57  ;;  %1036 = vmatpush.bf16.msra.mxu3 %v1030_v57 }
 0x185   : > { %848 = vmatpush.bf16.msra.mxu0 %v1030_v57  ;;  %1034 = vmatpush.bf16.msra.mxu1 %v1030_v57 }
 0x188   : > { %1038 = vmatpush.bf16.msra.mxu2 %v1029_v51  ;;  %1039 = vmatpush.bf16.msra.mxu3 %v1029_v51 }
 0x189   : > { %849 = vmatpush.bf16.msra.mxu0 %v1029_v51  ;;  %1037 = vmatpush.bf16.msra.mxu1 %v1029_v51 }
 0x18d   : > { %v1624_v31 = vpop.permute.xlu2 %1112 }
 0x18e   : > { %v1115_v5 = vunpack.i.h.bf16 %v1624_v31  ;;  %v1114_v6 = vunpack.i.l.bf16 %v1624_v31 }
 0x195   : > { %v1626_v34 = vpop.permute.xlu2 %1117 }
 0x196   : > { %v1119_v14 = vunpack.i.l.bf16 %v1626_v34 }
 0x19d   : > { %v1631_v45 = vpop.permute.xlu2 %1132 }
 0x19e   : > { %v1135_v17 = vunpack.i.h.bf16 %v1631_v45  ;;  %v1134_v0 = vunpack.i.l.bf16 %v1631_v45 }
 0x1a1   : > { %v1093_v37 = vpop.permute.xlu0 %1092 }
 0x1a2   : > { %v1095_v58 = vunpack.i.h.bf16 %v1093_v37  ;;  %v1094_v59 = vunpack.i.l.bf16 %v1093_v37 }
 0x1a4   : > { %v730_v1 = vsel %vm198_vm0, %v1524_v39, %v1094_v59  ;;  %v731_v2 = vsel %vm198_vm0, %v1528_v41, %v1095_v58  ;;  %v1120_v41 = vunpack.i.h.bf16 %v1626_v34 }
 0x1a5   : > { %v1103_v42 = vpop.permute.xlu1 %1102  ;;  %v1639_v52 = vpop.permute.xlu2 %1147 }
 0x1a6   : > { %v1105_v62 = vunpack.i.h.bf16 %v1103_v42  ;;  %v1104_v63 = vunpack.i.l.bf16 %v1103_v42  ;;  %v1150_v27 = vunpack.i.h.bf16 %v1639_v52  ;;  %v1149_v48 = vunpack.i.l.bf16 %v1639_v52 }
 0x1a8   : > { %v740_v7 = vsel %vm734_vm4, %v731_v2, %v1105_v62  ;;  %v739_v8 = vsel %vm734_vm4, %v730_v1, %v1104_v63 }
 0x1a9   : > { %v1098_v38 = vpop.permute.xlu0 %1097  ;;  %v748_v18 = vsel %vm743_vm5, %v739_v8, %v1114_v6  ;;  %v749_v19 = vsel %vm743_vm5, %v740_v7, %v1115_v5 }
 0x1aa   : > { %v1100_v60 = vunpack.i.h.bf16 %v1098_v38  ;;  %v1099_v4 = vunpack.i.l.bf16 %v1098_v38 }
 0x1ac   : > { %v732_v15 = vsel %vm198_vm0, %v1532_v46, %v1099_v4  ;;  %v733_v16 = vsel %vm198_vm0, %v1534_v47, %v1100_v60 }
 0x1ad   : > { %v1108_v49 = vpop.permute.xlu1 %1107  ;;  %v1645_v56 = vpop.permute.xlu2 %1162 }
 0x1ae   : > { %v1110_v11 = vunpack.i.h.bf16 %v1108_v49  ;;  %v1109_v12 = vunpack.i.l.bf16 %v1108_v49  ;;  %v1165_v34 = vunpack.i.h.bf16 %v1645_v56  ;;  %v1164_v37 = vunpack.i.l.bf16 %v1645_v56 }
 0x1b0   : > { %v742_v46 = vsel %vm734_vm4, %v733_v16, %v1110_v11  ;;  %v741_v24 = vsel %vm734_vm4, %v732_v15, %v1109_v12 }
 0x1b1   : > { %v1123_v50 = vpop.permute.xlu0 %1122  ;;  %v750_v42 = vsel %vm743_vm5, %v741_v24, %v1119_v14  ;;  %v751_v43 = vsel %vm743_vm5, %v742_v46, %v1120_v41 }
 0x1b2   : > { %v1125_v9 = vunpack.i.h.bf16 %v1123_v50  ;;  %v1124_v39 = vunpack.i.l.bf16 %v1123_v50 }
 0x1b4   : > { %v757_v20 = vsel %vm752_vm6, %v748_v18, %v1124_v39  ;;  %v758_v21 = vsel %vm752_vm6, %v749_v19, %v1125_v9 }
 0x1b5   : > { %v1641_v53 = vpop.permute.xlu1 %1127  ;;  %v1659_v10 = vpop.permute.xlu2 %1177  ;;  %v766_v30 = vsel %vm761_vm7, %v757_v20, %v1134_v0  ;;  %v767_v31 = vsel %vm761_vm7, %v758_v21, %v1135_v17 }
 0x1b6   : > { %v1130_v47 = vunpack.i.h.bf16 %v1641_v53  ;;  %v1129_v25 = vunpack.i.l.bf16 %v1641_v53  ;;  %v1180_v21 = vunpack.i.h.bf16 %v1659_v10 }
 0x1b8   : > { %v759_v45 = vsel %vm752_vm6, %v750_v42, %v1129_v25  ;;  %v760_v40 = vsel %vm752_vm6, %v751_v43, %v1130_v47 }
 0x1b9   : > { %v1643_v54 = vpop.permute.xlu0 %1137 }
 0x1ba   : > { %v1140_v28 = vunpack.i.h.bf16 %v1643_v54  ;;  %v1139_v29 = vunpack.i.l.bf16 %v1643_v54 }
 0x1bc   : > { %v768_v57 = vsel %vm761_vm7, %v759_v45, %v1139_v29  ;;  %v769_v50 = vsel %vm761_vm7, %v760_v40, %v1140_v28 }
 0x1bd   : > { %v1143_v55 = vpop.permute.xlu1 %1142  ;;  %v1193_v51 = vpop.permute.xlu2 %1192  ;;  %v777_v2 = vsel %vm770_vm8, %v768_v57, %v1149_v48  ;;  %v778_v60 = vsel %vm770_vm8, %v769_v50, %v1150_v27 }
 0x1be   : > { %v1145_v22 = vunpack.i.h.bf16 %v1143_v55  ;;  %v1144_v23 = vunpack.i.l.bf16 %v1143_v55  ;;  %v1194_v46 = vunpack.i.l.bf16 %v1193_v51 }
 0x1c0   : > { %v775_v44 = vsel %vm770_vm8, %v766_v30, %v1144_v23  ;;  %v776_v38 = vsel %vm770_vm8, %v767_v31, %v1145_v22  ;;  %v1179_v22 = vunpack.i.l.bf16 %v1659_v10  ;;  %v1195_v23 = vunpack.i.h.bf16 %v1193_v51 }
 0x1c1   : > { %v1647_v61 = vpop.permute.xlu0 %1152  ;;  %v784_v55 = vsel %vm779_vm9, %v775_v44, %v1164_v37  ;;  %v785_v56 = vsel %vm779_vm9, %v776_v38, %v1165_v34 }
 0x1c2   : > { %v1155_v14 = vunpack.i.h.bf16 %v1647_v61  ;;  %v1154_v15 = vunpack.i.l.bf16 %v1647_v61 }
 0x1c4   : > { %v726_v24 = vsel %vm198_vm0, %v1570_v32, %v1154_v15  ;;  %v727_v61 = vsel %vm198_vm0, %v1572_v33, %v1155_v14 }
 0x1c5   : > { %v1653_v3 = vpop.permute.xlu1 %1157  ;;  %v1208_v11 = vpop.permute.xlu2 %1207 }
 0x1c6   : > { %v1160_v16 = vunpack.i.h.bf16 %v1653_v3  ;;  %v1159_v17 = vunpack.i.l.bf16 %v1653_v3  ;;  %v1210_v34 = vunpack.i.h.bf16 %v1208_v11  ;;  %v1209_v37 = vunpack.i.l.bf16 %v1208_v11 }
 0x1c8   : > { %v728_v3 = vsel %vm198_vm0, %v1574_v35, %v1159_v17  ;;  %v729_v47 = vsel %vm198_vm0, %v1576_v36, %v1160_v16 }
 0x1c9   : > { %v1168_v13 = vpop.permute.xlu0 %1167  ;;  %v738_v33 = vsel %vm734_vm4, %v729_v47, %v1180_v21  ;;  %v737_v35 = vsel %vm734_vm4, %v728_v3, %v1179_v22  ;;  %v1251_v22 = vld [vmem:[%s1789_s2] ss:$0 sm:$0xff] }
 0x1ca   : > { %v1170_v58 = vunpack.i.h.bf16 %v1168_v13  ;;  %v1169_v59 = vunpack.i.l.bf16 %v1168_v13 }
 0x1cc   : > { %v786_v6 = vsel %vm779_vm9, %v777_v2, %v1169_v59  ;;  %v787_v7 = vsel %vm779_vm9, %v778_v60, %v1170_v58 }
 0x1cd   : > { %v1677_v26 = vpop.permute.xlu1 %1172  ;;  %v1223_v0 = vpop.permute.xlu2 %1222 }
 0x1ce   : > { %v1175_v18 = vunpack.i.h.bf16 %v1677_v26  ;;  %v1174_v19 = vunpack.i.l.bf16 %v1677_v26  ;;  %v1225_v38 = vunpack.i.h.bf16 %v1223_v0  ;;  %v1224_v45 = vunpack.i.l.bf16 %v1223_v0 }
 0x1d0   : > { %v736_v25 = vsel %vm734_vm4, %v727_v61, %v1175_v18  ;;  %v735_v26 = vsel %vm734_vm4, %v726_v24, %v1174_v19 }
 0x1d1   : > { %v1183_v49 = vpop.permute.xlu0 %1182  ;;  %v744_v42 = vsel %vm743_vm5, %v735_v26, %v1194_v46  ;;  %v745_v36 = vsel %vm743_vm5, %v736_v25, %v1195_v23 }
 0x1d2   : > { %v1185_v53 = vunpack.i.h.bf16 %v1183_v49  ;;  %v1184_v54 = vunpack.i.l.bf16 %v1183_v49 }
 0x1d4   : > { %v793_v62 = vsel %vm788_vm10, %v784_v55, %v1184_v54  ;;  %v794_v63 = vsel %vm788_vm10, %v785_v56, %v1185_v53 }
 0x1d5   : > { %v1188_v52 = vpop.permute.xlu1 %1187  ;;  %v799_v1 = vpack.c.bf16 %v794_v63, %v793_v62  ;;  %v1238_v51 = vpop.permute.xlu2 %1237 }
 0x1d6   : > { %v1190_v4 = vunpack.i.h.bf16 %v1188_v52  ;;  %v1189_v5 = vunpack.i.l.bf16 %v1188_v52  ;;  %v1240_v52 = vunpack.i.h.bf16 %v1238_v51 }
 0x1d7   : > { %1023 = vmatmul.msk.bf16.vlgmr.msra.gmra.mxu2 %vm825_vm11, %v799_v1  ;;  %v1239_v1 = vunpack.i.l.bf16 %v1238_v51 }
 0x1d8   : > { %v795_v8 = vsel %vm788_vm10, %v786_v6, %v1189_v5  ;;  %v796_v9 = vsel %vm788_vm10, %v787_v7, %v1190_v4 }
 0x1d9   : > { %v1198_v39 = vpop.permute.xlu0 %1197  ;;  %v800_v41 = vpack.c.bf16 %v796_v9, %v795_v8 }
 0x1da   : > { %v1200_v29 = vunpack.i.h.bf16 %v1198_v39  ;;  %v1199_v30 = vunpack.i.l.bf16 %v1198_v39 }
 0x1db   : > { %1024 = vmatmul.msk.bf16.vlgmr.msra.gmra.mxu3 %vm825_vm11, %v800_v41 }
 0x1dc   : > { %v746_v48 = vsel %vm743_vm5, %v737_v35, %v1199_v30  ;;  %v747_v49 = vsel %vm743_vm5, %v738_v33, %v1200_v29 }
 0x1dd   : > { %v1203_v12 = vpop.permute.xlu1 %1202  ;;  %v756_v62 = vsel %vm752_vm6, %v747_v49, %v1210_v34  ;;  %v755_v63 = vsel %vm752_vm6, %v746_v48, %v1209_v37 }
 0x1de   : > { %v1205_v27 = vunpack.i.h.bf16 %v1203_v12  ;;  %v1204_v10 = vunpack.i.l.bf16 %v1203_v12 }
 0x1e0   : > { %v753_v43 = vsel %vm752_vm6, %v744_v42, %v1204_v10  ;;  %v754_v44 = vsel %vm752_vm6, %v745_v36, %v1205_v27 }
 0x1e1   : > { %v1213_v13 = vpop.permute.xlu0 %1212 }
 0x1e2   : > { %v1215_v31 = vunpack.i.h.bf16 %v1213_v13  ;;  %v1214_v32 = vunpack.i.l.bf16 %v1213_v13 }
 0x1e4   : > { %v762_v57 = vsel %vm761_vm7, %v753_v43, %v1214_v32  ;;  %v763_v50 = vsel %vm761_vm7, %v754_v44, %v1215_v31 }
 0x1e5   : > { %v1218_v20 = vpop.permute.xlu1 %1217  ;;  %v771_v60 = vsel %vm770_vm8, %v762_v57, %v1224_v45  ;;  %v772_v4 = vsel %vm770_vm8, %v763_v50, %v1225_v38 }
 0x1e6   : > { %v1220_v53 = vunpack.i.h.bf16 %v1218_v20  ;;  %v1219_v54 = vunpack.i.l.bf16 %v1218_v20 }
 0x1e8   : > { %v765_v7 = vsel %vm761_vm7, %v756_v62, %v1220_v53  ;;  %v764_v8 = vsel %vm761_vm7, %v755_v63, %v1219_v54 }
 0x1e9   : > { %v1228_v28 = vpop.permute.xlu0 %1227 }
 0x1ea   : > { %v1230_v58 = vunpack.i.h.bf16 %v1228_v28  ;;  %v1229_v59 = vunpack.i.l.bf16 %v1228_v28 }
 0x1ec   : > { %v773_v41 = vsel %vm770_vm8, %v764_v8, %v1229_v59  ;;  %v774_v11 = vsel %vm770_vm8, %v765_v7, %v1230_v58 }
 0x1ed   : > { %v1233_v40 = vpop.permute.xlu1 %1232  ;;  %v782_v0 = vsel %vm779_vm9, %v773_v41, %v1239_v1  ;;  %v783_v18 = vsel %vm779_vm9, %v774_v11, %v1240_v52 }
 0x1ee   : > { %v1235_v55 = vunpack.i.h.bf16 %v1233_v40  ;;  %v1234_v56 = vunpack.i.l.bf16 %v1233_v40 }
 0x1f0   : > { %v780_v9 = vsel %vm779_vm9, %v771_v60, %v1234_v56  ;;  %v781_v39 = vsel %vm779_vm9, %v772_v4, %v1235_v55 }
 0x1f1   : > { %v1243_v2 = vpop.permute.xlu0 %1242 }
 0x1f2   : > { %v1245_v5 = vunpack.i.h.bf16 %v1243_v2  ;;  %v1244_v6 = vunpack.i.l.bf16 %v1243_v2 }
 0x1f4   : > { %v789_v12 = vsel %vm788_vm10, %v780_v9, %v1244_v6  ;;  %v790_v13 = vsel %vm788_vm10, %v781_v39, %v1245_v5 }
 0x1f5   : > { %v1248_v14 = vpop.permute.xlu1 %1247  ;;  %v797_v15 = vpack.c.bf16 %v790_v13, %v789_v12 }
 0x1f6   : > { %v1250_v16 = vunpack.i.h.bf16 %v1248_v14  ;;  %v1249_v17 = vunpack.i.l.bf16 %v1248_v14 }
 0x1f7   : > { %1021 = vmatmul.msk.bf16.vlgmr.msra.gmra.mxu0 %vm825_vm11, %v797_v15 }
 0x1f8   : > { %v791_v19 = vsel %vm788_vm10, %v782_v0, %v1249_v17  ;;  %v792_v20 = vsel %vm788_vm10, %v783_v18, %v1250_v16 }
 0x1f9   : > { %v798_v21 = vpack.c.bf16 %v792_v20, %v791_v19 }
 0x1fb   : > { %1022 = vmatmul.msk.bf16.vlgmr.msra.gmra.mxu1 %vm825_vm11, %v798_v21 }
 0x25a   : > { %v861_v23 = vpop.f32.mrf.mxu2 }
 0x25b   : > { %v862_v46 = vadd.f32 %v1251_v22, %v861_v23 }
 0x25d   : > { %vm875_vm12 = vcmp.gt.f32.partialorder %v862_v46, 0.0  ;;  %v883_v24 = vmul.f32 0.2, %v862_v46 }
 0x25e   : > { %v866_v61 = vpop.f32.mrf.mxu3 }
 0x25f   : > { %v891_v3 = vsel %vm875_vm12, %v862_v46, %v883_v24  ;;  %v867_v47 = vadd.f32 %v1251_v22, %v866_v61 }
 0x260   : > { %899 = vst.msk [vmem:[%s1384_s5 + $0x20] sm:$0xff] %vm788_vm10, %v891_v3 }
 0x261   : > { %vm877_vm13 = vcmp.gt.f32.partialorder %v867_v47, 0.0  ;;  %v885_v25 = vmul.f32 0.2, %v867_v47 }
 0x262   : > { %v863_v26 = vpop.f32.mrf.mxu2 }
 0x263   : > { %v893_v27 = vsel %vm877_vm13, %v867_v47, %v885_v25  ;;  %v864_v10 = vadd.f32 %v1251_v22, %v863_v26 }
 0x264   : > { %901 = vst.msk [vmem:[%s1384_s5 + $0x30] sm:$0xff] %vm788_vm10, %v893_v27 }
 0x265   : > { %vm876_vm14 = vcmp.gt.f32.partialorder %v864_v10, 0.0  ;;  %v884_v28 = vmul.f32 0.2, %v864_v10 }
 0x266   : > { %v868_v29 = vpop.f32.mrf.mxu3 }
 0x267   : > { %v892_v30 = vsel %vm876_vm14, %v864_v10, %v884_v28  ;;  %v869_v31 = vadd.f32 %v1251_v22, %v868_v29 }
 0x268   : > { %900 = vst.msk [vmem:[%s1384_s5 + $0x28] sm:$0xff] %vm788_vm10, %v892_v30 }
 0x269   : > { %vm878_vm15 = vcmp.gt.f32.partialorder %v869_v31, 0.0  ;;  %v886_v32 = vmul.f32 0.2, %v869_v31 }
 0x26b   : > { %v894_v34 = vsel %vm878_vm15, %v869_v31, %v886_v32 }
 0x26c   : > { %902 = vst.msk [vmem:[%s1384_s5 + $0x38] sm:$0xff] %vm788_vm10, %v894_v34 }
 0x274   : > { %v851_v37 = vpop.f32.mrf.mxu0 }
 0x275   : > { %v852_v33 = vadd.f32 %v1251_v22, %v851_v37 }
 0x277   : > { %vm871_vm0 = vcmp.gt.f32.partialorder %v852_v33, 0.0  ;;  %v879_v35 = vmul.f32 0.2, %v852_v33 }
 0x278   : > { %v856_v42 = vpop.f32.mrf.mxu1 }
 0x279   : > { %v887_v36 = vsel %vm871_vm0, %v852_v33, %v879_v35  ;;  %v857_v43 = vadd.f32 %v1251_v22, %v856_v42 }
 0x27a   : > { %895 = vst.msk [vmem:[%s1384_s5] sm:$0xff] %vm788_vm10, %v887_v36 }
 0x27b   : > { %vm873_vm1 = vcmp.gt.f32.partialorder %v857_v43, 0.0  ;;  %v881_v44 = vmul.f32 0.2, %v857_v43 }
 0x27c   : > { %v853_v38 = vpop.f32.mrf.mxu0 }
 0x27d   : > { %v889_v45 = vsel %vm873_vm1, %v857_v43, %v881_v44  ;;  %v854_v40 = vadd.f32 %v1251_v22, %v853_v38 }
 0x27e   : > { %897 = vst.msk [vmem:[%s1384_s5 + $0x10] sm:$0xff] %vm788_vm10, %v889_v45 }
 0x27f   : > { %vm872_vm2 = vcmp.gt.f32.partialorder %v854_v40, 0.0  ;;  %v880_v48 = vmul.f32 0.2, %v854_v40 }
 0x280   : > { %v858_v49 = vpop.f32.mrf.mxu1 }
 0x281   : > { %v888_v57 = vsel %vm872_vm2, %v854_v40, %v880_v48  ;;  %v859_v50 = vadd.f32 %v1251_v22, %v858_v49 }
 0x282   : > { %896 = vst.msk [vmem:[%s1384_s5 + $0x8] sm:$0xff] %vm788_vm10, %v888_v57 }
 0x283   : > { %vm874_vm3 = vcmp.gt.f32.partialorder %v859_v50, 0.0  ;;  %v882_v51 = vmul.f32 0.2, %v859_v50 }
 0x285   : > { %v890_v53 = vsel %vm874_vm3, %v859_v50, %v882_v51 }
 0x286   : > { %898 = vst.msk [vmem:[%s1384_s5 + $0x18] sm:$0xff] %vm788_vm10, %v890_v53 }
 0x287 PF: > { %s13_s16 = sadd.s32 1, %s1290_s16   ;;  %s1791_s12 = smov %s1282_s14 }
 0x288   : > { %p10_p8 = scmp.ge.s32.totalorder %s13_s16, 6   ;;  %s1792_s13 = smov %s1286_s15 }
 0x289   : > { %s1793_s14 = smov %s1796_s17  ;;  %s1794_s15 = smov %s1800_s18 }
 0x28a   :  { %12 = sbr.rel (!%p10_p8) target bundleno = 3 (0x3), region = 71 }

// kernel: encoder_layer4_forward.3
= control target key start
LH: loop header
LB: loop body
LE: loop exit
PB: predicated region body
PF: predicated region fallthrough
CT: control target
= control target key end

     0   :  { %10 = vsyncpa [#allocation5], 0  ;;  %s4006_s0 = inlined_call_operand.vmem [shape: f32[2,8,16,32], index: 0, kind: input, shape index: {}]   ;;  %s4007_s1 = inlined_call_operand.vmem [shape: bf16[3,96,32], index: 1, kind: input, shape index: {}]   ;;  %s4008_s2 = inlined_call_operand.vmem [shape: f32[1,32], index: 2, kind: input, shape index: {}]   ;;  %s4009_s3 = inlined_call_operand.vmem [shape: bf16[3,96,32], index: 3, kind: input, shape index: {}]   ;;  %s4010_s4 = inlined_call_operand.vmem [shape: f32[1,32], index: 4, kind: input, shape index: {}]   ;;  %s4011_s5 = inlined_call_operand.hbm [shape: f32[2,8,16,32], index: 5, kind: output, shape index: {}]  }
   0x1   :  { %12 = vsyncpa [#allocation5 + $0x1], 0  ;;  %s3032_s18 = smov 0   ;;  %s3034_s19 = smov 0  }
   0x2   :  { %s3036_s20 = smov 0   ;;  %s3038_s21 = smov 0  }
   0x3   :  { %s3040_s22 = smov 0   ;;  %s3042_s23 = smov 0  }
   0x4   :  { %s3044_s24 = smov 0   ;;  %s3046_s25 = smov 0  }
   0x5 LB: > { %s2510_s26 = sadd.s32 4294967295, %s2993_s25   ;;  %s2511_s27 = sadd.s32 4294967294, %s2993_s25   ;;  %s2993_s25 = sphi %s3046_s25, %s18_s25   ;;  %s2989_s24 = sphi %s3044_s24, %s4022_s24   ;;  %s2985_s23 = sphi %s3042_s23, %s4021_s23   ;;  %s2981_s22 = sphi %s3040_s22, %s4020_s22   ;;  %s2977_s21 = sphi %s3038_s21, %s4019_s21   ;;  %s2973_s20 = sphi %s3036_s20, %s4018_s20   ;;  %s2969_s19 = sphi %s3034_s19, %s4017_s19   ;;  %s2965_s18 = sphi %s3032_s18, %s4016_s18  }
   0x6   : > { %s27_s28 = sadd.s32 1, %s2985_s23  ;;  %s30_s29 = sadd.s32 1, %s2989_s24 }
   0x7   : > { %p28_p0 = scmp.ge.s32.totalorder %s27_s28, 2  ;;  %p159_p1 = scmp.ne.s32.totalorder %s2973_s20, %s2969_s19 }
   0x8   : > { %p160_p2 = scmp.eq.s32.totalorder %s2510_s26, 3  ;;  %p165_p5 = scmp.ne.s32.totalorder %s2969_s19, %s2965_s18 }
   0x9   : > { %s4024_s28 = smov (%p28_p0, %s27_s28), 0  ;;  %s4026_s29 = smov (!%p28_p0, %s30_s29), %s2989_s24 }
   0xa   : > { %s145_s30 = ssub.s32 %s2985_s23, %s4024_s28  ;;  %p3083_p3 = por %p160_p2, %p159_p1 }
   0xb   : > { %p32_p4 = scmp.ge.s32.totalorder %s4026_s29, 2  ;;  %p166_p6 = scmp.eq.s32.totalorder %s2511_s27, 3 }
   0xc   : > { %p2514_p7 = scmp.ge.s32.totalorder %s2993_s25, 1  ;;  %p204_p9 = scmp.lt.s32.totalorder %s2993_s25, 5 }
   0xd   : > { %s4028_s29 = smov (%p32_p4, %s4026_s29), 0  ;;  %p3092_p8 = por %p166_p6, %p165_p5 }
   0xe   : > { %s144_s8 = ssub.s32 %s2989_s24, %s4028_s29  ;;  %s149_s9 = sadd.s32 1, %s2973_s20 }
   0xf   : > { %s146_s10 = sor.u32 %s145_s30, %s144_s8  ;;  %p205_p10 = pnand %p2514_p7, %p204_p9 }
  0x10   : > { %p147_p11 = scmp.eq.s32.totalorder %s146_s10, 0  ;;  %s4012_s12 = sand.u32 (!%p205_p10), 1, %s2969_s19  }
  0x11   : > { %208 = sbr.rel (%p205_p10) target bundleno = 1023 (0x3ff), region = 40  ;;  %s2518_s13 = sshll.u32 (!%p205_p10), %s2977_s21, 2 }
  0x12   : > { %s3101_s11 = scalar_select %p147_p11, %s2973_s20, %s149_s9  }
  0x13   : > { %s3109_s14 = sshll.u32 (!%p205_p10), %s4012_s12, 6  ;;  %p232_p12 = scmp.lt.s32.totalorder (!%p205_p10), %s2981_s22, 1 }
  0x14   : > { %s2768_s30 = sshll.u32 (!%p205_p10), %s2977_s21, 6  ;;  %s3185_s9 = scalar_lea.vmem (!%p205_p10), [#allocation4], %s3109_s14 }
  0x15   : > { %p2520_p13 = scmp.le.s32.totalorder (!%p205_p10), %s2977_s21, 0 }
  0x16   : > { %vm240_vm0 = vcmask 261120   ;;  %v2995_v0 = vmov 0.0   ;;  %s233_s15 = scalar_select %p232_p12, %s2981_s22, 1  ;;  %vm243_vm1 = vcmask 254976  }
  0x17   : > { %248 = vst.msk [vmem:[#allocation2 + $0x30] sm:$0xff] %vm240_vm0, %v2995_v0  ;;  %s2521_s10 = sadd.s32 (!%p2520_p13), 4294967294, %s2518_s13 }
  0x18   : > { %241 = vst.msk [vmem:[#allocation2] sm:$0xff] %vm240_vm0, %v2995_v0  ;;  %s2767_s16 = sshll.u32 %s233_s15, 7  ;;  %s2522_s15 = sshll.u32 (!%p2520_p13), %s2521_s10, 4 }
  0x19   : > { %242 = vst.msk [vmem:[#allocation2 + $0x8] sm:$0xff] %vm240_vm0, %v2995_v0  ;;  %s3146_s27 = scalar_lea.vmem %s4006_s0, %s2767_s16 }
  0x1a   : > { %245 = vst.msk [vmem:[#allocation2 + $0x18] sm:$0xff] %vm240_vm0, %v2995_v0  ;;  %s3156_s8 = scalar_lea.vmem %s3146_s27, %s2768_s30  ;;  %s291_s16 = scalar_lea.vmem (!%p2520_p13), %s3146_s27, %s2522_s15 }
  0x1b   : > { %246 = vst.msk [vmem:[#allocation2 + $0x20] sm:$0xff] %vm240_vm0, %v2995_v0  ;;  %v268_v1 = vld [vmem:[%s3156_s8] sm:$0xff]  ;;  %v269_v2 = vld [vmem:[%s3156_s8 + $0x8] sm:$0xff]  ;;  %v270_v3 = vld [vmem:[%s3156_s8 + $0x10] sm:$0xff] }
  0x1c   : > { %249 = vst.msk [vmem:[#allocation2 + $0x38] sm:$0xff] %vm240_vm0, %v2995_v0  ;;  %v271_v4 = vld [vmem:[%s3156_s8 + $0x18] sm:$0xff]  ;;  %v272_v5 = vld [vmem:[%s3156_s8 + $0x20] sm:$0xff]  ;;  %v273_v6 = vld [vmem:[%s3156_s8 + $0x28] sm:$0xff] }
  0x1d   : > { %251 = vst.msk [vmem:[#allocation2 + $0x48] sm:$0xff] %vm240_vm0, %v2995_v0  ;;  %v274_v7 = vld [vmem:[%s3156_s8 + $0x30] sm:$0xff]  ;;  %v275_v8 = vld [vmem:[%s3156_s8 + $0x38] sm:$0xff] }
  0x1e   : > { %252 = vst.msk [vmem:[#allocation2 + $0x50] sm:$0xff] %vm240_vm0, %v2995_v0 }
  0x1f   : > { %254 = vst.msk [vmem:[#allocation2 + $0x60] sm:$0xff] %vm240_vm0, %v2995_v0 }
  0x20   : > { %255 = vst.msk [vmem:[#allocation2 + $0x68] sm:$0xff] %vm240_vm0, %v2995_v0 }
  0x21   : > { %257 = vst.msk [vmem:[#allocation2 + $0x78] sm:$0xff] %vm240_vm0, %v2995_v0 }
  0x22   : > { %258 = vst.msk [vmem:[#allocation2 + $0x80] sm:$0xff] %vm240_vm0, %v2995_v0 }
  0x23   : > { %260 = vst.msk [vmem:[#allocation2 + $0x90] sm:$0xff] %vm240_vm0, %v2995_v0 }
  0x24   : > { %261 = vst.msk [vmem:[#allocation2 + $0x98] sm:$0xff] %vm240_vm0, %v2995_v0 }
  0x25   : > { %263 = vst.msk [vmem:[#allocation2 + $0xa8] sm:$0xff] %vm240_vm0, %v2995_v0 }
  0x26   : > { %264 = vst.msk [vmem:[#allocation2 + $0xb0] sm:$0xff] %vm240_vm0, %v2995_v0 }
  0x27   : > { %250 = vst.msk [vmem:[#allocation2 + $0x40] sm:$0x3] %vm243_vm1, %v2995_v0 }
  0x28   : > { %244 = vst.msk [vmem:[#allocation2 + $0x10] sm:$0x3] %vm243_vm1, %v2995_v0 }
  0x29   : > { %247 = vst.msk [vmem:[#allocation2 + $0x28] sm:$0x3] %vm243_vm1, %v2995_v0 }
  0x2a   : > { %253 = vst.msk [vmem:[#allocation2 + $0x58] sm:$0x3] %vm243_vm1, %v2995_v0 }
  0x2b   : > { %256 = vst.msk [vmem:[#allocation2 + $0x70] sm:$0x3] %vm243_vm1, %v2995_v0 }
  0x2c   : > { %259 = vst.msk [vmem:[#allocation2 + $0x88] sm:$0x3] %vm243_vm1, %v2995_v0 }
  0x2d   : > { %262 = vst.msk [vmem:[#allocation2 + $0xa0] sm:$0x3] %vm243_vm1, %v2995_v0 }
  0x2e   : > { %265 = vst.msk [vmem:[#allocation2 + $0xb8] sm:$0x3] %vm243_vm1, %v2995_v0 }
  0x2f   : > { %277 = vst.msk [vmem:[#allocation2 + $0x31] sm:$0xff] %vm240_vm0, %v268_v1 }
  0x30   : > { %278 = vst.msk [vmem:[#allocation2 + $0x39] sm:$0xff] %vm240_vm0, %v269_v2 }
  0x31   : > { %279 = vst.msk [vmem:[#allocation2 + $0x49] sm:$0xff] %vm240_vm0, %v270_v3 }
  0x32   : > { %280 = vst.msk [vmem:[#allocation2 + $0x51] sm:$0xff] %vm240_vm0, %v271_v4  ;;  %288 = sbr.rel (%p2520_p13) target bundleno = 60 (0x3c), region = 44 }
  0x33   : > { %281 = vst.msk [vmem:[#allocation2 + $0x61] sm:$0xff] %vm240_vm0, %v272_v5 }
  0x34   : > { %282 = vst.msk [vmem:[#allocation2 + $0x69] sm:$0xff] %vm240_vm0, %v273_v6 }
  0x35   : > { %283 = vst.msk [vmem:[#allocation2 + $0x79] sm:$0xff] %vm240_vm0, %v274_v7 }
  0x36   : > { %284 = vst.msk [vmem:[#allocation2 + $0x81] sm:$0xff] %vm240_vm0, %v275_v8 }
  0x37   : > { %v292_v9 = vld [vmem:[%s291_s16] sm:$0xff]  ;;  %v293_v10 = vld [vmem:[%s291_s16 + $0x8] sm:$0xff]  ;;  %v294_v11 = vld [vmem:[%s291_s16 + $0x10] sm:$0xff] }
  0x38   : > { %296 = vst.msk [vmem:[#allocation2 + $0x1] sm:$0xff] %vm240_vm0, %v292_v9  ;;  %v295_v12 = vld [vmem:[%s291_s16 + $0x18] sm:$0xff] }
  0x39   : > { %297 = vst.msk [vmem:[#allocation2 + $0x9] sm:$0xff] %vm240_vm0, %v293_v10 }
  0x3a   : > { %298 = vst.msk [vmem:[#allocation2 + $0x19] sm:$0xff] %vm240_vm0, %v294_v11 }
  0x3b   : > { %299 = vst.msk [vmem:[#allocation2 + $0x21] sm:$0xff] %vm240_vm0, %v295_v12 }
  0x3c PF: > { %p2523_p0 = scmp.ge.s32.totalorder %s2977_s21, 1 }
  0x3e   : > { %303 = sbr.rel (%p2523_p0) target bundleno = 72 (0x48), region = 48 }
  0x43   : > { %v2526_v13 = vld [vmem:[%s3156_s8 + $0x40] sm:$0xff]  ;;  %v2527_v14 = vld [vmem:[%s3156_s8 + $0x48] sm:$0xff]  ;;  %v2528_v15 = vld [vmem:[%s3156_s8 + $0x50] sm:$0xff] }
  0x44   : > { %312 = vst.msk [vmem:[#allocation2 + $0x91] sm:$0xff] %vm240_vm0, %v2526_v13  ;;  %v2529_v16 = vld [vmem:[%s3156_s8 + $0x58] sm:$0xff] }
  0x45   : > { %313 = vst.msk [vmem:[#allocation2 + $0x99] sm:$0xff] %vm240_vm0, %v2527_v14 }
  0x46   : > { %314 = vst.msk [vmem:[#allocation2 + $0xa9] sm:$0xff] %vm240_vm0, %v2528_v15 }
  0x47   : > { %315 = vst.msk [vmem:[#allocation2 + $0xb1] sm:$0xff] %vm240_vm0, %v2529_v16 }
  0x48 PF: > { %v3204_v17 = vld [vmem:[#allocation2 + $0x30] sm:$0xff]  ;;  %v3206_v18 = vld [vmem:[#allocation2 + $0x18] sm:$0xff]  ;;  %1373 = vst.msk [vmem:[#allocation3] sm:$0xff] %vm240_vm0, %v2995_v0  ;;  %s2996_s13 = smov 64   ;;  %s2997_s14 = smov 32   ;;  %v3228_v20 = vld [vmem:[#allocation2 + $0x20] sm:$0xff] }
  0x49   : > { %415 = vrot.lane.b32.xlu1 %v3204_v17, %s2996_s13  ;;  %358 = vrot.lane.b32.xlu0 %v3206_v18, %s2997_s14  ;;  %1374 = vst.msk [vmem:[#allocation3 + $0x8] sm:$0xff] %vm240_vm0, %v2995_v0  ;;  %v3226_v19 = vld [vmem:[#allocation2 + $0x38] sm:$0xff]  ;;  %v3252_v21 = vld [vmem:[#allocation2 + $0x50] sm:$0xff]  ;;  %v3254_v22 = vld [vmem:[#allocation2 + $0x48] sm:$0xff]  ;;  %vm487_vm2 = vcmask 523264   ;;  %vm717_vm3 = vcmask 785408  }
  0x4a   : > { %364 = vrot.lane.b32.xlu2 %v3204_v17, %s2997_s14  ;;  %1375 = vst.msk [vmem:[#allocation3 + $0x10] sm:$0x3] %vm243_vm1, %v2995_v0  ;;  %v3258_v23 = vld [vmem:[#allocation2 + $0x28] sm:$0x3]  ;;  %v3272_v24 = vld [vmem:[#allocation2 + $0x40] sm:$0x3] }
  0x4b   : > { %1376 = vst.msk [vmem:[#allocation3 + $0x18] sm:$0xff] %vm240_vm0, %v2995_v0  ;;  %v3280_v25 = vld [vmem:[#allocation2 + $0x68] sm:$0xff]  ;;  %v3282_v26 = vld [vmem:[#allocation2 + $0x60] sm:$0xff]  ;;  %v3290_v27 = vld [vmem:[#allocation2 + $0x58] sm:$0x3]  ;;  %vm797_vm4 = vcmask 1046528  }
  0x4c   : > { %1377 = vst.msk [vmem:[#allocation3 + $0x20] sm:$0xff] %vm240_vm0, %v2995_v0  ;;  %v3296_v28 = vld [vmem:[#allocation2 + $0x78] sm:$0xff]  ;;  %v3304_v29 = vld [vmem:[#allocation2 + $0x70] sm:$0x3]  ;;  %v3308_v30 = vld [vmem:[#allocation2 + $0x80] sm:$0xff]  ;;  %vm1028_vm5 = vcmask 1045504  }
  0x4d   : > { %1378 = vst.msk [vmem:[#allocation3 + $0x28] sm:$0x3] %vm243_vm1, %v2995_v0  ;;  %v334_v31 = vld [vmem:[#allocation2 + $0x90] sm:$0xff]  ;;  %v3318_v33 = vld [vmem:[#allocation2 + $0x88] sm:$0x3]  ;;  %v335_v34 = vld [vmem:[#allocation2 + $0x98] sm:$0xff] }
  0x4e   : > { %1379 = vst.msk [vmem:[#allocation3 + $0x30] sm:$0xff] %vm240_vm0, %v2995_v0  ;;  %v2781_v32 = vld [vmem:[%s4007_s1 + $0x58] sm:$0xff]  ;;  %v337_v35 = vld [vmem:[#allocation2 + $0xa8] sm:$0xff]  ;;  %v336_v36 = vld [vmem:[#allocation2 + $0xa0] sm:$0x3]  ;;  %p2647_p1 = scmp.ne.s32.totalorder %s2977_s21, 0 }
  0x4f   : > { %1380 = vst.msk [vmem:[#allocation3 + $0x38] sm:$0xff] %vm240_vm0, %v2995_v0  ;;  %741 = vmatpush.bf16.msra.mxu0 %v2781_v32  ;;  %2807 = vmatpush.bf16.msra.mxu1 %v2781_v32  ;;  %v338_v37 = vld [vmem:[#allocation2 + $0xb0] sm:$0xff]  ;;  %v339_v38 = vld [vmem:[#allocation2 + $0xb8] sm:$0x3]  ;;  %v2780_v39 = vld [vmem:[%s4007_s1 + $0x50] sm:$0xff] }
  0x50   : > { %1381 = vst.msk [vmem:[#allocation3 + $0x40] sm:$0x3] %vm243_vm1, %v2995_v0  ;;  %2808 = vmatpush.bf16.msra.mxu2 %v2781_v32  ;;  %v2779_v40 = vld [vmem:[%s4007_s1 + $0x48] sm:$0xff]  ;;  %v2778_v42 = vld [vmem:[%s4007_s1 + $0x40] sm:$0xff]  ;;  %v2777_v43 = vld [vmem:[%s4007_s1 + $0x38] sm:$0xff] }
  0x51   : > { %417 = vrot.lane.b32.xlu1 %v3226_v19, %s2996_s13  ;;  %360 = vrot.lane.b32.xlu0 %v3228_v20, %s2997_s14  ;;  %1382 = vst.msk [vmem:[#allocation3 + $0x48] sm:$0xff] %vm240_vm0, %v2995_v0  ;;  %v2776_v45 = vld [vmem:[%s4007_s1 + $0x30] sm:$0xff]  ;;  %v316_v46 = vld [vmem:[#allocation2] sm:$0xff]  ;;  %v318_v12 = vld [vmem:[#allocation2 + $0x10] sm:$0x3] }
  0x52   : > { %366 = vrot.lane.b32.xlu2 %v3226_v19, %s2997_s14  ;;  %1383 = vst.msk [vmem:[#allocation3 + $0x50] sm:$0xff] %vm240_vm0, %v2995_v0  ;;  %v317_v55 = vld [vmem:[#allocation2 + $0x8] sm:$0xff] }
  0x53   : > { %1384 = vst.msk [vmem:[#allocation3 + $0x58] sm:$0x3] %vm243_vm1, %v2995_v0  ;;  %742 = vmatpush.bf16.msra.mxu0 %v2780_v39  ;;  %2809 = vmatpush.bf16.msra.mxu1 %v2780_v39 }
  0x54   : > { %1385 = vst.msk [vmem:[#allocation3 + $0x60] sm:$0xff] %vm240_vm0, %v2995_v0  ;;  %2810 = vmatpush.bf16.msra.mxu2 %v2780_v39 }
  0x55   : > { %1386 = vst.msk [vmem:[#allocation3 + $0x68] sm:$0xff] %vm240_vm0, %v2995_v0 }
  0x56   : > { %1387 = vst.msk [vmem:[#allocation3 + $0x70] sm:$0x3] %vm243_vm1, %v2995_v0 }
  0x57   : > { %1388 = vst.msk [vmem:[#allocation3 + $0x78] sm:$0xff] %vm240_vm0, %v2995_v0  ;;  %743 = vmatpush.bf16.msra.mxu0 %v2779_v40  ;;  %2811 = vmatpush.bf16.msra.mxu1 %v2779_v40 }
  0x58   : > { %1389 = vst.msk [vmem:[#allocation3 + $0x80] sm:$0xff] %vm240_vm0, %v2995_v0  ;;  %2812 = vmatpush.bf16.msra.mxu2 %v2779_v40 }
  0x59   : > { %423 = vrot.lane.b32.xlu1 %v3252_v21, %s2996_s13  ;;  %421 = vrot.lane.b32.xlu0 %v3254_v22, %s2996_s13  ;;  %1390 = vst.msk [vmem:[#allocation3 + $0x88] sm:$0x3] %vm243_vm1, %v2995_v0 }
  0x5a   : > { %362 = vrot.lane.b32.xlu2 %v3258_v23, %s2997_s14 }
  0x5b   : > { %744 = vmatpush.bf16.msra.mxu0 %v2778_v42  ;;  %2813 = vmatpush.bf16.msra.mxu1 %v2778_v42 }
  0x5c   : > { %2814 = vmatpush.bf16.msra.mxu2 %v2778_v42 }
  0x5f   : > { %745 = vmatpush.bf16.msra.mxu0 %v2777_v43  ;;  %2815 = vmatpush.bf16.msra.mxu1 %v2777_v43 }
  0x60   : > { %2816 = vmatpush.bf16.msra.mxu2 %v2777_v43 }
  0x61   : > { %370 = vrot.lane.b32.xlu1 %v3254_v22, %s2997_s14  ;;  %419 = vrot.lane.b32.xlu0 %v3272_v24, %s2996_s13 }
  0x62   : > { %372 = vrot.lane.b32.xlu2 %v3252_v21, %s2997_s14 }
  0x63   : > { %746 = vmatpush.bf16.msra.mxu0 %v2776_v45  ;;  %2817 = vmatpush.bf16.msra.mxu1 %v2776_v45 }
  0x64   : > { %2818 = vmatpush.bf16.msra.mxu2 %v2776_v45 }
  0x69   : > { %429 = vrot.lane.b32.xlu1 %v3280_v25, %s2996_s13  ;;  %427 = vrot.lane.b32.xlu0 %v3282_v26, %s2996_s13 }
  0x6a   : > { %368 = vrot.lane.b32.xlu2 %v3272_v24, %s2997_s14 }
  0x71   : > { %376 = vrot.lane.b32.xlu1 %v3282_v26, %s2997_s14  ;;  %425 = vrot.lane.b32.xlu0 %v3290_v27, %s2996_s13 }
  0x72   : > { %433 = vrot.lane.b32.xlu2 %v3296_v28, %s2996_s13 }
  0x79   : > { %378 = vrot.lane.b32.xlu1 %v3280_v25, %s2997_s14  ;;  %374 = vrot.lane.b32.xlu0 %v3290_v27, %s2997_s14 }
  0x7a   : > { %431 = vrot.lane.b32.xlu2 %v3304_v29, %s2996_s13 }
  0x81   : > { %382 = vrot.lane.b32.xlu1 %v3296_v28, %s2997_s14  ;;  %435 = vrot.lane.b32.xlu0 %v3308_v30, %s2996_s13 }
  0x82   : > { %439 = vrot.lane.b32.xlu2 %v334_v31, %s2996_s13 }
  0x89   : > { %437 = vrot.lane.b32.xlu1 %v3318_v33, %s2996_s13  ;;  %380 = vrot.lane.b32.xlu0 %v3304_v29, %s2997_s14 }
  0x8a   : > { %384 = vrot.lane.b32.xlu2 %v3308_v30, %s2997_s14 }
  0x91   : > { %441 = vrot.lane.b32.xlu1 %v335_v34, %s2996_s13  ;;  %388 = vrot.lane.b32.xlu0 %v334_v31, %s2997_s14 }
  0x92   : > { %445 = vrot.lane.b32.xlu2 %v337_v35, %s2996_s13 }
  0x99   : > { %386 = vrot.lane.b32.xlu0 %v3318_v33, %s2997_s14  ;;  %443 = vrot.lane.b32.xlu1 %v336_v36, %s2996_s13 }
  0x9a   : > { %390 = vrot.lane.b32.xlu2 %v335_v34, %s2997_s14 }
  0xa1   : > { %447 = vrot.lane.b32.xlu0 %v338_v37, %s2996_s13  ;;  %392 = vrot.lane.b32.xlu1 %v336_v36, %s2997_s14 }
  0xa2   : > { %449 = vrot.lane.b32.xlu2 %v339_v38, %s2996_s13 }
  0xa4   : > { %v365_v41 = vpop.permute.xlu2 %364 }
  0xa5   : > { %v472_v0 = vsel %vm240_vm0, %v3206_v18, %v365_v41 }
  0xac   : > { %v367_v44 = vpop.permute.xlu2 %366 }
  0xad   : > { %v473_v1 = vsel %vm240_vm0, %v3228_v20, %v367_v44 }
  0xb4   : > { %v363_v47 = vpop.permute.xlu2 %362 }
  0xb5   : > { %v471_v16 = vsel %vm240_vm0, %v318_v12, %v363_v47 }
  0xbb   : > { %v416_v48 = vpop.permute.xlu1 %415  ;;  %v359_v49 = vpop.permute.xlu0 %358 }
  0xbc   : > { %v469_v50 = vsel %vm240_vm0, %v316_v46, %v359_v49  ;;  %v373_v59 = vpop.permute.xlu2 %372 }
  0xbd   : > { %v488_v51 = vsel %vm487_vm2, %v469_v50, %v416_v48  ;;  %v476_v35 = vsel %vm240_vm0, %v3226_v19, %v373_v59 }
  0xbe   : > { %v524_v52 = vrot.slane %v488_v51, 2  ;;  %v525_v53 = vrot.slane %v488_v51, 4  ;;  %v526_v54 = vrot.slane %v488_v51, 6  ;;  %560 = vst [vmem:[#allocation1] ss:$4 sm:$0xff] %v488_v51 }
  0xc0   : > { %562 = vst [vmem:[#allocation1 + $0x1] ss:$4 sm:$0xff] %v524_v52 }
  0xc1   : > { %564 = vst [vmem:[#allocation1 + $0x2] ss:$4 sm:$0xff] %v525_v53 }
  0xc2   : > { %566 = vst [vmem:[#allocation1 + $0x3] ss:$4 sm:$0xff] %v526_v54 }
  0xc3   : > { %v418_v56 = vpop.permute.xlu1 %417  ;;  %v361_v57 = vpop.permute.xlu0 %360 }
  0xc4   : > { %v470_v58 = vsel %vm240_vm0, %v317_v55, %v361_v57  ;;  %v369_v9 = vpop.permute.xlu2 %368 }
  0xc5   : > { %v489_v60 = vsel %vm487_vm2, %v470_v58, %v418_v56  ;;  %v474_v47 = vsel %vm240_vm0, %v3258_v23, %v369_v9 }
  0xc6   : > { %v527_v61 = vrot.slane %v489_v60, 2  ;;  %v528_v62 = vrot.slane %v489_v60, 4  ;;  %v529_v63 = vrot.slane %v489_v60, 6  ;;  %568 = vst [vmem:[#allocation1 + $0x20] ss:$4 sm:$0xff] %v489_v60 }
  0xc8   : > { %570 = vst [vmem:[#allocation1 + $0x21] ss:$4 sm:$0xff] %v527_v61 }
  0xc9   : > { %572 = vst [vmem:[#allocation1 + $0x22] ss:$4 sm:$0xff] %v528_v62  ;;  %v575_v4 = vld.sshfl [vmem:[#allocation1] sm:$0xff pattern:$0x73625140] }
  0xca   : > { %574 = vst [vmem:[#allocation1 + $0x23] ss:$4 sm:$0xff] %v529_v63 }
  0xcb   : > { %v424_v2 = vpop.permute.xlu1 %423  ;;  %v422_v3 = vpop.permute.xlu0 %421 }
  0xcc   : > { %v492_v5 = vsel %vm487_vm2, %v473_v1, %v424_v2  ;;  %v491_v6 = vsel %vm487_vm2, %v472_v0, %v422_v3  ;;  %v434_v32 = vpop.permute.xlu2 %433 }
  0xcd   : > { %v530_v7 = vrot.slane %v491_v6, 2  ;;  %578 = vst [vmem:[#allocation1 + $0x1] ss:$4 sm:$0xff] %v491_v6  ;;  %v531_v8 = vrot.slane %v491_v6, 4  ;;  %v534_v10 = vrot.slane %v492_v5, 4  ;;  %v533_v11 = vrot.slane %v492_v5, 2 }
  0xce   : > { %v532_v14 = vrot.slane %v491_v6, 6  ;;  %v535_v38 = vrot.slane %v492_v5, 6  ;;  %v2775_v6 = vld [vmem:[%s4007_s1 + $0x28] sm:$0xff] }
  0xcf   : > { %579 = vst [vmem:[#allocation1 + $0x2] ss:$4 sm:$0xff] %v530_v7  ;;  %879 = vmatpush.bf16.msrb.mxu1 %v2775_v6 }
  0xd0   : > { %580 = vst [vmem:[#allocation1 + $0x3] ss:$4 sm:$0xff] %v531_v8 }
  0xd1   : > { %v576_v13 = vld.sshfl [vmem:[#allocation1 + $0x20] sm:$0xff pattern:$0x73625140] }
  0xd2   : > { %582 = vst [vmem:[#allocation1 + $0x21] ss:$4 sm:$0xff] %v492_v5  ;;  %v3361_v15 = vpack.c.bf16 %v576_v13, %v575_v4 }
  0xd3   : > { %584 = vst [vmem:[#allocation1 + $0x23] ss:$4 sm:$0xff] %v534_v10  ;;  %v371_v18 = vpop.permute.xlu1 %370  ;;  %v420_v20 = vpop.permute.xlu0 %419 }
  0xd4   : > { %583 = vst [vmem:[#allocation1 + $0x22] ss:$4 sm:$0xff] %v533_v11  ;;  %2566 = vmatmul.msk.bf16.vlgmr.msra.gmra.mxu0 %vm717_vm3, %v3361_v15  ;;  %v490_v31 = vsel %vm487_vm2, %v471_v16, %v420_v20  ;;  %v475_v34 = vsel %vm240_vm0, %v3204_v17, %v371_v18  ;;  %v432_v19 = vpop.permute.xlu2 %431 }
  0xd5   : > { %581 = vst [vmem:[#allocation1 + $0x20] ss:$4 sm:$0xff] %v532_v14 }
  0xd6   : > { %577 = vst [vmem:[#allocation1] ss:$4 sm:$0xff] %v490_v31  ;;  %v2773_v31 = vld [vmem:[%s4007_s1 + $0x18] sm:$0xff] }
  0xdb   : > { %v430_v36 = vpop.permute.xlu1 %429  ;;  %v428_v37 = vpop.permute.xlu0 %427 }
  0xdc   : > { %v495_v39 = vsel %vm487_vm2, %v476_v35, %v430_v36  ;;  %v494_v40 = vsel %vm487_vm2, %v475_v34, %v428_v37  ;;  %v586_v43 = vld.sshfl [vmem:[#allocation1 + $0x20] sm:$0xff pattern:$0x73625140]  ;;  %v440_v61 = vpop.permute.xlu2 %439  ;;  %v2787_v34 = vld [vmem:[%s4007_s1 + $0x88] sm:$0xff] }
  0xdd   : > { %v585_v41 = vld.sshfl [vmem:[#allocation1] sm:$0xff pattern:$0x73625140]  ;;  %v539_v42 = vrot.slane %v495_v39, 2  ;;  %v536_v44 = vrot.slane %v494_v40, 2  ;;  %v537_v45 = vrot.slane %v494_v40, 4  ;;  %972 = vmatpush.bf16.msrb.mxu2 %v2787_v34 }
  0xde   : > { %587 = vst [vmem:[#allocation1] ss:$4 sm:$0xff] %v535_v38  ;;  %v538_v46 = vrot.slane %v494_v40, 6  ;;  %v3373_v17 = vpack.c.bf16 %v586_v43, %v585_v41  ;;  %v540_v54 = vrot.slane %v495_v39, 4  ;;  %v541_v55 = vrot.slane %v495_v39, 6  ;;  %v2786_v36 = vld [vmem:[%s4007_s1 + $0x80] sm:$0xff] }
  0xdf   : > { %593 = vst [vmem:[#allocation1 + $0x22] ss:$4 sm:$0xff] %v495_v39  ;;  %v2771_v43 = vld [vmem:[%s4007_s1 + $0x8] sm:$0xff] }
  0xe0   : > { %594 = vst [vmem:[#allocation1 + $0x23] ss:$4 sm:$0xff] %v539_v42 }
  0xe1   : > { %589 = vst [vmem:[#allocation1 + $0x2] ss:$4 sm:$0xff] %v494_v40  ;;  %973 = vmatpush.bf16.msrb.mxu2 %v2786_v36 }
  0xe2   : > { %590 = vst [vmem:[#allocation1 + $0x3] ss:$4 sm:$0xff] %v536_v44 }
  0xe3   : > { %591 = vst [vmem:[#allocation1 + $0x20] ss:$4 sm:$0xff] %v537_v45  ;;  %v377_v48 = vpop.permute.xlu1 %376  ;;  %v426_v49 = vpop.permute.xlu0 %425 }
  0xe4   : > { %592 = vst [vmem:[#allocation1 + $0x21] ss:$4 sm:$0xff] %v538_v46  ;;  %2567 = vmatmul.msk.bf16.gmra.mxu0 %vm717_vm3, %v3373_v17  ;;  %v478_v50 = vsel %vm240_vm0, %v3254_v22, %v377_v48  ;;  %v493_v51 = vsel %vm487_vm2, %v474_v47, %v426_v49  ;;  %v385_v5 = vpop.permute.xlu2 %384  ;;  %v2770_v49 = vld [vmem:[%s4007_s1] sm:$0xff] }
  0xe5   : > { %588 = vst [vmem:[#allocation1 + $0x1] ss:$4 sm:$0xff] %v493_v51  ;;  %v497_v52 = vsel %vm487_vm2, %v478_v50, %v434_v32  ;;  %v482_v37 = vsel %vm240_vm0, %v3280_v25, %v385_v5  ;;  %v2785_v25 = vld [vmem:[%s4007_s1 + $0x78] sm:$0xff] }
  0xe6   : > { %v542_v53 = vrot.slane %v497_v52, 2  ;;  %v543_v59 = vrot.slane %v497_v52, 4  ;;  %v544_v22 = vrot.slane %v497_v52, 6  ;;  %974 = vmatpush.bf16.msrb.mxu2 %v2785_v25 }
  0xeb   : > { %v596_v56 = vld.sshfl [vmem:[#allocation1 + $0x20] sm:$0xff pattern:$0x73625140]  ;;  %v379_v57 = vpop.permute.xlu1 %378  ;;  %v375_v23 = vpop.permute.xlu0 %374 }
  0xec   : > { %v595_v58 = vld.sshfl [vmem:[#allocation1] sm:$0xff pattern:$0x73625140]  ;;  %601 = vst [vmem:[#allocation1 + $0x20] ss:$4 sm:$0xff] %v542_v53  ;;  %v477_v60 = vsel %vm240_vm0, %v3272_v24, %v375_v23  ;;  %v479_v0 = vsel %vm240_vm0, %v3252_v21, %v379_v57  ;;  %v446_v32 = vpop.permute.xlu2 %445  ;;  %v2783_v57 = vld [vmem:[%s4007_s1 + $0x68] sm:$0xff] }
  0xed   : > { %598 = vst [vmem:[#allocation1 + $0x1] ss:$4 sm:$0xff] %v541_v55  ;;  %v496_v62 = vsel %vm487_vm2, %v477_v60, %v432_v19  ;;  %v3386_v63 = vpack.c.bf16 %v596_v56, %v595_v58  ;;  %v2782_v58 = vld [vmem:[%s4007_s1 + $0x60] sm:$0xff] }
  0xee   : > { %597 = vst [vmem:[#allocation1] ss:$4 sm:$0xff] %v540_v54 }
  0xef   : > { %600 = vst [vmem:[#allocation1 + $0x3] ss:$4 sm:$0xff] %v497_v52  ;;  %v2784_v52 = vld [vmem:[%s4007_s1 + $0x70] sm:$0xff] }
  0xf0   : > { %602 = vst [vmem:[#allocation1 + $0x21] ss:$4 sm:$0xff] %v543_v59  ;;  %975 = vmatpush.bf16.msrb.mxu2 %v2784_v52 }
  0xf1   : > { %603 = vst [vmem:[#allocation1 + $0x22] ss:$4 sm:$0xff] %v544_v22 }
  0xf2   : > { %599 = vst [vmem:[#allocation1 + $0x2] ss:$4 sm:$0xff] %v496_v62 }
  0xf3   : > { %v383_v1 = vpop.permute.xlu1 %382  ;;  %v436_v2 = vpop.permute.xlu0 %435 }
  0xf4   : > { %2568 = vmatmul.msk.bf16.gmra.mxu0 %vm717_vm3, %v3386_v63  ;;  %v498_v24 = vsel %vm487_vm2, %v479_v0, %v436_v2  ;;  %v481_v3 = vsel %vm240_vm0, %v3282_v26, %v383_v1  ;;  %v2774_v26 = vld [vmem:[%s4007_s1 + $0x20] sm:$0xff]  ;;  %v391_v51 = vpop.permute.xlu2 %390  ;;  %976 = vmatpush.bf16.msrb.mxu2 %v2783_v57 }
  0xf5   : > { %604 = vst [vmem:[#allocation1 + $0x23] ss:$4 sm:$0xff] %v498_v24  ;;  %v545_v4 = vrot.slane %v498_v24, 2  ;;  %v546_v7 = vrot.slane %v498_v24, 4  ;;  %v547_v8 = vrot.slane %v498_v24, 6  ;;  %v500_v9 = vsel %vm487_vm2, %v481_v3, %v440_v61  ;;  %880 = vmatpush.bf16.msrb.mxu1 %v2774_v26 }
  0xf6   : > { %v548_v13 = vrot.slane %v500_v9, 2  ;;  %v549_v16 = vrot.slane %v500_v9, 4  ;;  %v550_v18 = vrot.slane %v500_v9, 6 }
  0xf8   : > { %977 = vmatpush.bf16.msrb.mxu2 %v2782_v58 }
  0xf9   : > { %v605_v21 = vld.sshfl [vmem:[#allocation1] sm:$0xff pattern:$0x73625140]  ;;  %881 = vmatpush.bf16.msrb.mxu1 %v2773_v31 }
  0xfa   : > { %607 = vst [vmem:[#allocation1] ss:$4 sm:$0xff] %v545_v4 }
  0xfb   : > { %608 = vst [vmem:[#allocation1 + $0x1] ss:$4 sm:$0xff] %v546_v7  ;;  %v438_v10 = vpop.permute.xlu1 %437  ;;  %v381_v11 = vpop.permute.xlu0 %380 }
  0xfc   : > { %v606_v12 = vld.sshfl [vmem:[#allocation1 + $0x20] sm:$0xff pattern:$0x73625140]  ;;  %609 = vst [vmem:[#allocation1 + $0x2] ss:$4 sm:$0xff] %v547_v8  ;;  %v480_v14 = vsel %vm240_vm0, %v3290_v27, %v381_v11  ;;  %v2772_v27 = vld [vmem:[%s4007_s1 + $0x10] sm:$0xff]  ;;  %v450_v0 = vpop.permute.xlu2 %449 }
  0xfd   : > { %611 = vst [vmem:[#allocation1 + $0x20] ss:$4 sm:$0xff] %v500_v9  ;;  %v499_v20 = vsel %vm487_vm2, %v480_v14, %v438_v10  ;;  %v3414_v35 = vpack.c.bf16 %v606_v12, %v605_v21  ;;  %882 = vmatpush.bf16.msrb.mxu1 %v2772_v27 }
  0xfe   : > { %612 = vst [vmem:[#allocation1 + $0x21] ss:$4 sm:$0xff] %v548_v13 }
  0xff   : > { %613 = vst [vmem:[#allocation1 + $0x22] ss:$4 sm:$0xff] %v549_v16 }
 0x100   : > { %614 = vst [vmem:[#allocation1 + $0x23] ss:$4 sm:$0xff] %v550_v18 }
 0x101   : > { %610 = vst [vmem:[#allocation1 + $0x3] ss:$4 sm:$0xff] %v499_v20  ;;  %883 = vmatpush.bf16.msrb.mxu1 %v2771_v43 }
 0x103   : > { %v442_v38 = vpop.permute.xlu1 %441  ;;  %v389_v39 = vpop.permute.xlu0 %388 }
 0x104   : > { %2569 = vmatmul.msk.bf16.gmra.mxu0 %vm717_vm3, %v3414_v35  ;;  %v501_v40 = vsel %vm487_vm2, %v482_v37, %v442_v38  ;;  %v484_v41 = vsel %vm240_vm0, %v3296_v28, %v389_v39 }
 0x105   : > { %v503_v42 = vsel %vm487_vm2, %v484_v41, %v446_v32  ;;  %v551_v44 = vrot.slane %v501_v40, 2  ;;  %v552_v46 = vrot.slane %v501_v40, 4  ;;  %v553_v47 = vrot.slane %v501_v40, 6  ;;  %884 = vmatpush.bf16.msrb.mxu1 %v2770_v49 }
 0x106   : > { %v554_v28 = vrot.slane %v503_v42, 2  ;;  %v555_v50 = vrot.slane %v503_v42, 4  ;;  %v556_v23 = vrot.slane %v503_v42, 6 }
 0x107   : > { %v616_v45 = vld.sshfl [vmem:[#allocation1 + $0x20] sm:$0xff pattern:$0x73625140] }
 0x108   : > { %v615_v19 = vld.sshfl [vmem:[#allocation1] sm:$0xff pattern:$0x73625140]  ;;  %622 = vst [vmem:[#allocation1 + $0x21] ss:$4 sm:$0xff] %v503_v42 }
 0x109   : > { %617 = vst [vmem:[#allocation1] ss:$4 sm:$0xff] %v501_v40  ;;  %v653_v48 = vpack.c.bf16 %v616_v45, %v615_v19  ;;  %v3507_v42 = vld [vmem:[%s4008_s2] ss:$0 sm:$0xff] }
 0x10a   : > { %618 = vst [vmem:[#allocation1 + $0x1] ss:$4 sm:$0xff] %v551_v44  ;;  %v3516_v49 = vrot.slane %v3507_v42, 2 }
 0x10b   : > { %619 = vst [vmem:[#allocation1 + $0x2] ss:$4 sm:$0xff] %v552_v46  ;;  %2570 = vmatmul.msk.bf16.vlgmr.msra.gmra.mxu1 %vm717_vm3, %v653_v48  ;;  %v387_v53 = vpop.permute.xlu0 %386  ;;  %v444_v54 = vpop.permute.xlu1 %443 }
 0x10c   : > { %620 = vst [vmem:[#allocation1 + $0x3] ss:$4 sm:$0xff] %v553_v47  ;;  %v483_v55 = vsel %vm240_vm0, %v3304_v29, %v387_v53  ;;  %v485_v29 = vsel %vm240_vm0, %v3308_v30, %v391_v51  ;;  %v3522_v51 = vrot.slane %v3507_v42, 6 }
 0x10d   : > { %623 = vst [vmem:[#allocation1 + $0x22] ss:$4 sm:$0xff] %v554_v28  ;;  %v502_v56 = vsel %vm487_vm2, %v483_v55, %v444_v54 }
 0x10e   : > { %624 = vst [vmem:[#allocation1 + $0x23] ss:$4 sm:$0xff] %v555_v50  ;;  %v3519_v50 = vrot.slane %v3507_v42, 4 }
 0x10f   : > { %621 = vst [vmem:[#allocation1 + $0x20] ss:$4 sm:$0xff] %v502_v56 }
 0x113   : > { %v625_v59 = vld.sshfl [vmem:[#allocation1] sm:$0xff pattern:$0x73625140]  ;;  %v448_v60 = vpop.permute.xlu0 %447  ;;  %v393_v61 = vpop.permute.xlu1 %392 }
 0x114   : > { %627 = vst [vmem:[#allocation1] ss:$4 sm:$0xff] %v556_v23  ;;  %v504_v22 = vsel %vm487_vm2, %v485_v29, %v448_v60  ;;  %v486_v62 = vsel %vm240_vm0, %v3318_v33, %v393_v61 }
 0x115   : > { %v557_v1 = vrot.slane %v504_v22, 2  ;;  %v558_v2 = vrot.slane %v504_v22, 4  ;;  %v559_v24 = vrot.slane %v504_v22, 6  ;;  %628 = vst [vmem:[#allocation1 + $0x1] ss:$4 sm:$0xff] %v504_v22  ;;  %v505_v4 = vsel %vm487_vm2, %v486_v62, %v450_v0 }
 0x116   : > { %v626_v3 = vld.sshfl [vmem:[#allocation1 + $0x20] sm:$0xff pattern:$0x73625140] }
 0x117   : > { %629 = vst [vmem:[#allocation1 + $0x2] ss:$4 sm:$0xff] %v557_v1  ;;  %v654_v5 = vpack.c.bf16 %v626_v3, %v625_v59 }
 0x118   : > { %630 = vst [vmem:[#allocation1 + $0x3] ss:$4 sm:$0xff] %v558_v2 }
 0x119   : > { %631 = vst [vmem:[#allocation1 + $0x20] ss:$4 sm:$0xff] %v559_v24 }
 0x11a   : > { %632 = vst [vmem:[#allocation1 + $0x21] ss:$4 sm:$0xff] %v505_v4 }
 0x11b   : > { %2571 = vmatmul.msk.bf16.gmra.mxu1 %vm717_vm3, %v654_v5 }
 0x11f   : > { %v633_v30 = vld.sshfl [vmem:[#allocation1] sm:$0xff pattern:$0x73625140] }
 0x121   : > { %v634_v6 = vld.sshfl [vmem:[#allocation1 + $0x20] sm:$0xff pattern:$0x73625140] }
 0x122   : > { %v655_v7 = vpack.c.bf16 %v634_v6, %v633_v30 }
 0x124   : > { %2572 = vmatmul.msk.bf16.vlgmr.msra.gmra.mxu2 %vm717_vm3, %v655_v7 }
 0x12b   : > { %2597 = vmatmul.msk.bf16.vlgmr.msrb.gmra.mxu1 %vm717_vm3, %v3361_v15 }
 0x134   : > { %2640 = vmatmul.msk.bf16.vlgmr.msrb.gmra.mxu2 %vm717_vm3, %v3361_v15 }
 0x13b   : > { %2598 = vmatmul.msk.bf16.gmra.mxu1 %vm717_vm3, %v3373_v17 }
 0x144   : > { %2641 = vmatmul.msk.bf16.gmra.mxu2 %vm717_vm3, %v3373_v17 }
 0x14b   : > { %2599 = vmatmul.msk.bf16.gmra.mxu1 %vm717_vm3, %v3386_v63 }
 0x151   : > { %v748_v12 = vpop.f32.mrf.mxu0 }
 0x152   : > { %v798_v40 = vrot.slane %v748_v12, 1 }
 0x154   : > { %2642 = vmatmul.msk.bf16.gmra.mxu2 %vm717_vm3, %v3386_v63 }
 0x159   : > { %v750_v31 = vpop.f32.mrf.mxu0 }
 0x15a   : > { %v799_v39 = vrot.slane %v750_v31, 1 }
 0x15b   : > { %2600 = vmatmul.msk.bf16.gmra.mxu1 %vm717_vm3, %v3414_v35 }
 0x15c   : > { %v800_v44 = vsel %vm797_vm4, %v798_v40, %v799_v39 }
 0x161   : > { %v753_v36 = vpop.f32.mrf.mxu0 }
 0x162   : > { %v801_v47 = vrot.slane %v753_v36, 1 }
 0x164   : > { %2643 = vmatmul.msk.bf16.gmra.mxu2 %vm717_vm3, %v3414_v35  ;;  %v802_v56 = vsel %vm797_vm4, %v799_v39, %v801_v47 }
 0x169   : > { %v3509_v43 = vpop.f32.mrf.mxu0 }
 0x16a   : > { %v803_v29 = vrot.slane %v3509_v43, 1 }
 0x16b   : > { %2601 = vmatmul.msk.bf16.gmra.mxu1 %vm717_vm3, %v653_v48 }
 0x171   : > { %v3532_v1 = vpop.f32.mrf.mxu0 }
 0x174   : > { %2644 = vmatmul.msk.bf16.gmra.mxu2 %vm717_vm3, %v653_v48 }
 0x17b   : > { %2602 = vmatmul.msk.bf16.gmra.mxu1 %vm717_vm3, %v654_v5 }
 0x184   : > { %2645 = vmatmul.msk.bf16.gmra.mxu2 %vm717_vm3, %v654_v5 }
 0x188   : > { %v3477_v33 = vpop.f32.mrf.mxu1 }
 0x189   : > { %v813_v17 = vrot.slane %v3477_v33, 1 }
 0x18b   : > { %2603 = vmatmul.msk.bf16.gmra.mxu1 %vm717_vm3, %v655_v7 }
 0x190   : > { %v770_v15 = vpop.f32.mrf.mxu1 }
 0x191   : > { %v815_v63 = vrot.slane %v770_v15, 1 }
 0x193   : > { %v3484_v8 = vsel %vm797_vm4, %v813_v17, %v815_v63 }
 0x194   : > { %2646 = vmatmul.msk.bf16.gmra.mxu2 %vm717_vm3, %v655_v7 }
 0x198   : > { %v773_v21 = vpop.f32.mrf.mxu1 }
 0x199   : > { %v817_v9 = vrot.slane %v773_v21, 1 }
 0x19b   : > { %v3488_v10 = vsel %vm797_vm4, %v815_v63, %v817_v9 }
 0x1a0   : > { %v775_v11 = vpop.f32.mrf.mxu1 }
 0x1a1   : > { %v819_v26 = vrot.slane %v775_v11, 1  ;;  %v804_v11 = vsel %vm797_vm4, %v801_v47, %v803_v29 }
 0x1a3   : > { %v3491_v13 = vsel %vm797_vm4, %v817_v9, %v819_v26 }
 0x1a7   : > { %v778_v14 = vpop.f32.mrf.mxu2 }
 0x1a8   : > { %v821_v16 = vrot.slane %v778_v14, 1  ;;  %v886_v18 = vpop.f32.mrf.mxu1 }
 0x1a9   : > { %v887_v19 = vadd.f32 %v886_v18, %v800_v44 }
 0x1aa   : > { %v3494_v20 = vsel %vm797_vm4, %v819_v26, %v821_v16 }
 0x1af   : > { %v3496_v32 = vpop.f32.mrf.mxu2 }
 0x1b0   : > { %v823_v34 = vrot.slane %v3496_v32, 1  ;;  %v888_v27 = vpop.f32.mrf.mxu1 }
 0x1b1   : > { %v889_v60 = vadd.f32 %v888_v27, %v802_v56 }
 0x1b2   : > { %v3502_v35 = vsel %vm797_vm4, %v821_v16, %v823_v34 }
 0x1b7   : > { %v979_v37 = vpop.f32.mrf.mxu2 }
 0x1b8   : > { %v891_v38 = vpop.f32.mrf.mxu1  ;;  %v1029_v25 = vrot.slane %v979_v37, 2 }
 0x1b9   : > { %v892_v18 = vadd.f32 %v891_v38, %v804_v11 }
 0x1bf   : > { %v981_v41 = vpop.f32.mrf.mxu2 }
 0x1c0   : > { %v1030_v45 = vrot.slane %v981_v41, 2  ;;  %v3512_v46 = vpop.f32.mrf.mxu1 }
 0x1c2   : > { %v1031_v28 = vsel %vm1028_vm5, %v1029_v25, %v1030_v45 }
 0x1c3   : > { %v1072_v48 = vadd.f32 %v1031_v28, %v887_v19  ;;  %v3544_v19 = vpop.f32.mrf.mxu0 }
 0x1c5   : > { %v1099_v52 = vrot.slane %v1072_v48, 2  ;;  %v1100_v53 = vrot.slane %v1072_v48, 4  ;;  %v1101_v54 = vrot.slane %v1072_v48, 6  ;;  %v1181_v55 = vadd.f32 %v3507_v42, %v1072_v48 }
 0x1c7   : > { %v1182_v57 = vadd.f32 %v3516_v49, %v1099_v52  ;;  %v1183_v23 = vadd.f32 %v3519_v50, %v1100_v53  ;;  %v1184_v58 = vadd.f32 %v3522_v51, %v1101_v54  ;;  %vm1229_vm6 = vcmp.gt.f32.partialorder %v1181_v55, 0.0  ;;  %v984_v59 = vpop.f32.mrf.mxu2 }
 0x1c8   : > { %v1277_v61 = vmul.f32 0.2, %v1181_v55  ;;  %v1032_v22 = vrot.slane %v984_v59, 2  ;;  %v3530_v62 = vpop.f32.mrf.mxu1 }
 0x1c9   : > { %vm1230_vm7 = vcmp.gt.f32.partialorder %v1182_v57, 0.0  ;;  %vm1231_vm8 = vcmp.gt.f32.partialorder %v1183_v23, 0.0  ;;  %vm1232_vm9 = vcmp.gt.f32.partialorder %v1184_v58, 0.0  ;;  %v1278_v0 = vmul.f32 0.2, %v1182_v57 }
 0x1ca   : > { %v1279_v2 = vmul.f32 0.2, %v1183_v23  ;;  %v1280_v24 = vmul.f32 0.2, %v1184_v58  ;;  %v1325_v3 = vsel %vm1229_vm6, %v1181_v55, %v1277_v61  ;;  %v1033_v4 = vsel %vm1028_vm5, %v1030_v45, %v1032_v22 }
 0x1cb   : > { %v1326_v5 = vsel %vm1230_vm7, %v1182_v57, %v1278_v0  ;;  %1439 = vst [vmem:[#allocation1] ss:$4 sm:$0xff] %v1325_v3  ;;  %v1073_v30 = vadd.f32 %v1033_v4, %v889_v60  ;;  %v805_v45 = vrot.slane %v3532_v1, 1  ;;  %v807_v1 = vrot.slane %v3544_v19, 1 }
 0x1cc   : > { %v1327_v6 = vsel %vm1231_vm8, %v1183_v23, %v1279_v2  ;;  %v1328_v7 = vsel %vm1232_vm9, %v1184_v58, %v1280_v24  ;;  %1441 = vst [vmem:[#allocation1 + $0x1] ss:$4 sm:$0xff] %v1326_v5  ;;  %v3556_v5 = vpop.f32.mrf.mxu0 }
 0x1cd   : > { %1443 = vst [vmem:[#allocation1 + $0x2] ss:$4 sm:$0xff] %v1327_v6  ;;  %v1102_v15 = vrot.slane %v1073_v30, 2  ;;  %v1103_v63 = vrot.slane %v1073_v30, 4  ;;  %v1104_v21 = vrot.slane %v1073_v30, 6  ;;  %v1185_v9 = vadd.f32 %v3507_v42, %v1073_v30 }
 0x1ce   : > { %1445 = vst [vmem:[#allocation1 + $0x3] ss:$4 sm:$0xff] %v1328_v7  ;;  %v806_v56 = vsel %vm797_vm4, %v803_v29, %v805_v45  ;;  %v808_v7 = vsel %vm797_vm4, %v805_v45, %v807_v1 }
 0x1cf   : > { %v1186_v26 = vadd.f32 %v3516_v49, %v1102_v15  ;;  %v1187_v12 = vadd.f32 %v3519_v50, %v1103_v63  ;;  %v1188_v14 = vadd.f32 %v3522_v51, %v1104_v21  ;;  %vm1233_vm10 = vcmp.gt.f32.partialorder %v1185_v9, 0.0  ;;  %v986_v16 = vpop.f32.mrf.mxu2 }
 0x1d0   : > { %v1281_v31 = vmul.f32 0.2, %v1185_v9  ;;  %v1034_v27 = vrot.slane %v986_v16, 2  ;;  %v3540_v36 = vpop.f32.mrf.mxu1  ;;  %v894_v60 = vadd.f32 %v3512_v46, %v806_v56 }
 0x1d1   : > { %vm1234_vm11 = vcmp.gt.f32.partialorder %v1186_v26, 0.0  ;;  %vm1235_vm12 = vcmp.gt.f32.partialorder %v1187_v12, 0.0  ;;  %vm1236_vm13 = vcmp.gt.f32.partialorder %v1188_v14, 0.0  ;;  %v1282_v37 = vmul.f32 0.2, %v1186_v26 }
 0x1d2   : > { %v1283_v39 = vmul.f32 0.2, %v1187_v12  ;;  %v1284_v40 = vmul.f32 0.2, %v1188_v14  ;;  %v1329_v41 = vsel %vm1233_vm10, %v1185_v9, %v1281_v31  ;;  %v1035_v43 = vsel %vm1028_vm5, %v1032_v22, %v1034_v27 }
 0x1d3   : > { %v1330_v44 = vsel %vm1234_vm11, %v1186_v26, %v1282_v37  ;;  %1447 = vst [vmem:[#allocation1 + $0x20] ss:$4 sm:$0xff] %v1329_v41  ;;  %v1074_v25 = vadd.f32 %v1035_v43, %v892_v18 }
 0x1d4   : > { %v1331_v38 = vsel %vm1235_vm12, %v1187_v12, %v1283_v39  ;;  %v1332_v47 = vsel %vm1236_vm13, %v1188_v14, %v1284_v40  ;;  %1449 = vst [vmem:[#allocation1 + $0x21] ss:$4 sm:$0xff] %v1330_v44  ;;  %v809_v12 = vrot.slane %v3556_v5, 1  ;;  %v897_v14 = vadd.f32 %v3530_v62, %v808_v7  ;;  %v765_v56 = vpop.f32.mrf.mxu0 }
 0x1d5   : > { %v1454_v28 = vld.sshfl [vmem:[#allocation1] sm:$0xff pattern:$0x73625140]  ;;  %1451 = vst [vmem:[#allocation1 + $0x22] ss:$4 sm:$0xff] %v1331_v38  ;;  %v1105_v48 = vrot.slane %v1074_v25, 2 }
 0x1d6   : > { %1518 = vst.msk [vmem:[#allocation3 + $0x1] sm:$0xff] %vm240_vm0, %v1454_v28  ;;  %v1106_v52 = vrot.slane %v1074_v25, 4  ;;  %v1107_v53 = vrot.slane %v1074_v25, 6 }
 0x1d7   : > { %1453 = vst [vmem:[#allocation1 + $0x23] ss:$4 sm:$0xff] %v1332_v47  ;;  %v1189_v54 = vadd.f32 %v3507_v42, %v1105_v48  ;;  %v989_v55 = vpop.f32.mrf.mxu2  ;;  %v810_v47 = vsel %vm797_vm4, %v807_v1, %v809_v12 }
 0x1d8   : > { %v1190_v57 = vadd.f32 %v3516_v49, %v1106_v52  ;;  %v1191_v23 = vadd.f32 %v3519_v50, %v1107_v53  ;;  %v1036_v58 = vrot.slane %v989_v55, 2  ;;  %v3551_v59 = vpop.f32.mrf.mxu1 }
 0x1d9   : > { %vm1237_vm14 = vcmp.gt.f32.partialorder %v1189_v54, 0.0  ;;  %v1285_v61 = vmul.f32 0.2, %v1189_v54 }
 0x1da   : > { %vm1238_vm15 = vcmp.gt.f32.partialorder %v1190_v57, 0.0  ;;  %vm1239_vm6 = vcmp.gt.f32.partialorder %v1191_v23, 0.0  ;;  %v1286_v22 = vmul.f32 0.2, %v1190_v57  ;;  %v1287_v0 = vmul.f32 0.2, %v1191_v23 }
 0x1db   : > { %v1333_v2 = vsel %vm1237_vm14, %v1189_v54, %v1285_v61  ;;  %v1037_v29 = vsel %vm1028_vm5, %v1034_v27, %v1036_v58  ;;  %v899_v54 = vadd.f32 %v3540_v36, %v810_v47 }
 0x1dc   : > { %v1334_v24 = vsel %vm1238_vm15, %v1190_v57, %v1286_v22  ;;  %v1335_v3 = vsel %vm1239_vm6, %v1191_v23, %v1287_v0  ;;  %1456 = vst [vmem:[#allocation1] ss:$4 sm:$0xff] %v1333_v2  ;;  %v1075_v4 = vadd.f32 %v1037_v29, %v894_v60  ;;  %v811_v29 = vrot.slane %v765_v56, 1 }
 0x1dd   : > { %1457 = vst [vmem:[#allocation1 + $0x1] ss:$4 sm:$0xff] %v1334_v24 }
 0x1de   : > { %v1455_v30 = vld.sshfl [vmem:[#allocation1 + $0x20] sm:$0xff pattern:$0x73625140]  ;;  %1458 = vst [vmem:[#allocation1 + $0x2] ss:$4 sm:$0xff] %v1335_v3  ;;  %v1108_v46 = vrot.slane %v1075_v4, 2  ;;  %v1192_v6 = vadd.f32 %v3522_v51, %v1075_v4  ;;  %v812_v7 = vsel %vm797_vm4, %v809_v12, %v811_v29 }
 0x1df   : > { %1519 = vst.msk [vmem:[#allocation3 + $0x9] sm:$0xff] %vm240_vm0, %v1455_v30  ;;  %v1109_v15 = vrot.slane %v1075_v4, 4  ;;  %v1110_v63 = vrot.slane %v1075_v4, 6  ;;  %v991_v21 = vpop.f32.mrf.mxu2 }
 0x1e0   : > { %v1193_v9 = vadd.f32 %v3507_v42, %v1108_v46  ;;  %vm1240_vm7 = vcmp.gt.f32.partialorder %v1192_v6, 0.0  ;;  %v1288_v11 = vmul.f32 0.2, %v1192_v6  ;;  %v1038_v26 = vrot.slane %v991_v21, 2  ;;  %v3567_v39 = vpop.f32.mrf.mxu1 }
 0x1e1   : > { %v1194_v16 = vadd.f32 %v3516_v49, %v1109_v15  ;;  %v1195_v18 = vadd.f32 %v3519_v50, %v1110_v63  ;;  %v902_v21 = vadd.f32 %v3551_v59, %v812_v7 }
 0x1e2   : > { %vm1241_vm8 = vcmp.gt.f32.partialorder %v1193_v9, 0.0  ;;  %v1289_v31 = vmul.f32 0.2, %v1193_v9  ;;  %v1336_v27 = vsel %vm1240_vm7, %v1192_v6, %v1288_v11  ;;  %v1039_v37 = vsel %vm1028_vm5, %v1036_v58, %v1038_v26 }
 0x1e3   : > { %vm1242_vm9 = vcmp.gt.f32.partialorder %v1194_v16, 0.0  ;;  %vm1243_vm10 = vcmp.gt.f32.partialorder %v1195_v18, 0.0  ;;  %v1290_v40 = vmul.f32 0.2, %v1194_v16  ;;  %v1291_v41 = vmul.f32 0.2, %v1195_v18 }
 0x1e4   : > { %v1337_v43 = vsel %vm1241_vm8, %v1193_v9, %v1289_v31  ;;  %1459 = vst [vmem:[#allocation1 + $0x3] ss:$4 sm:$0xff] %v1336_v27  ;;  %v1076_v44 = vadd.f32 %v1039_v37, %v897_v14 }
 0x1e5   : > { %v1338_v25 = vsel %vm1242_vm9, %v1194_v16, %v1290_v40  ;;  %v1339_v62 = vsel %vm1243_vm10, %v1195_v18, %v1291_v41  ;;  %1460 = vst [vmem:[#allocation1 + $0x20] ss:$4 sm:$0xff] %v1337_v43 }
 0x1e6   : > { %1461 = vst [vmem:[#allocation1 + $0x21] ss:$4 sm:$0xff] %v1338_v25  ;;  %v1111_v45 = vrot.slane %v1076_v44, 4  ;;  %v1112_v19 = vrot.slane %v1076_v44, 6  ;;  %v1196_v38 = vadd.f32 %v3522_v51, %v1076_v44  ;;  %v814_v44 = vsel %vm797_vm4, %v811_v29, %v813_v17 }
 0x1e7   : > { %1462 = vst [vmem:[#allocation1 + $0x22] ss:$4 sm:$0xff] %v1339_v62  ;;  %v994_v28 = vpop.f32.mrf.mxu2 }
 0x1e8   : > { %v1197_v48 = vadd.f32 %v3507_v42, %v1111_v45  ;;  %v1198_v52 = vadd.f32 %v3516_v49, %v1112_v19  ;;  %vm1244_vm11 = vcmp.gt.f32.partialorder %v1196_v38, 0.0  ;;  %v1292_v53 = vmul.f32 0.2, %v1196_v38  ;;  %v3575_v2 = vpop.f32.mrf.mxu1 }
 0x1e9   : > { %v1040_v55 = vrot.slane %v994_v28, 2 }
 0x1ea   : > { %vm1245_vm12 = vcmp.gt.f32.partialorder %v1197_v48, 0.0  ;;  %vm1246_vm13 = vcmp.gt.f32.partialorder %v1198_v52, 0.0  ;;  %v1293_v57 = vmul.f32 0.2, %v1197_v48  ;;  %v1294_v23 = vmul.f32 0.2, %v1198_v52 }
 0x1eb   : > { %v1340_v58 = vsel %vm1244_vm11, %v1196_v38, %v1292_v53  ;;  %v1041_v60 = vsel %vm1028_vm5, %v1038_v26, %v1040_v55  ;;  %v1464_v61 = vld.sshfl [vmem:[#allocation1] sm:$0xff pattern:$0x73625140]  ;;  %v904_v38 = vadd.f32 %v3567_v39, %v814_v44 }
 0x1ec   : > { %v1341_v22 = vsel %vm1245_vm12, %v1197_v48, %v1293_v57  ;;  %v1342_v0 = vsel %vm1246_vm13, %v1198_v52, %v1294_v23  ;;  %1463 = vst [vmem:[#allocation1 + $0x23] ss:$4 sm:$0xff] %v1340_v58  ;;  %v1077_v1 = vadd.f32 %v1041_v60, %v899_v54 }
 0x1ed   : > { %1466 = vst [vmem:[#allocation1] ss:$4 sm:$0xff] %v1341_v22 }
 0x1ee   : > { %1467 = vst [vmem:[#allocation1 + $0x1] ss:$4 sm:$0xff] %v1342_v0  ;;  %v1113_v36 = vrot.slane %v1077_v1, 2  ;;  %v1114_v24 = vrot.slane %v1077_v1, 4  ;;  %v1115_v3 = vrot.slane %v1077_v1, 6  ;;  %v1199_v4 = vadd.f32 %v3519_v50, %v1077_v1 }
 0x1ef   : > { %1520 = vst.msk [vmem:[#allocation3 + $0x19] sm:$0xff] %vm240_vm0, %v1464_v61  ;;  %v996_v5 = vpop.f32.mrf.mxu2  ;;  %v907_v1 = vadd.f32 %v3575_v2, %v3484_v8 }
 0x1f0   : > { %v1200_v30 = vadd.f32 %v3522_v51, %v1113_v36  ;;  %v1201_v46 = vadd.f32 %v3507_v42, %v1114_v24  ;;  %v1202_v6 = vadd.f32 %v3516_v49, %v1115_v3  ;;  %vm1247_vm14 = vcmp.gt.f32.partialorder %v1199_v4, 0.0  ;;  %v3587_v43 = vpop.f32.mrf.mxu1 }
 0x1f1   : > { %v1295_v15 = vmul.f32 0.2, %v1199_v4  ;;  %v1042_v63 = vrot.slane %v996_v5, 2 }
 0x1f2   : > { %vm1248_vm15 = vcmp.gt.f32.partialorder %v1200_v30, 0.0  ;;  %vm1249_vm6 = vcmp.gt.f32.partialorder %v1201_v46, 0.0  ;;  %v1296_v9 = vmul.f32 0.2, %v1200_v30  ;;  %vm1250_vm7 = vcmp.gt.f32.partialorder %v1202_v6, 0.0 }
 0x1f3   : > { %v1465_v11 = vld.sshfl [vmem:[#allocation1 + $0x20] sm:$0xff pattern:$0x73625140]  ;;  %v1297_v26 = vmul.f32 0.2, %v1201_v46  ;;  %v1343_v14 = vsel %vm1247_vm14, %v1199_v4, %v1295_v15  ;;  %v1043_v16 = vsel %vm1028_vm5, %v1040_v55, %v1042_v63 }
 0x1f4   : > { %1521 = vst.msk [vmem:[#allocation3 + $0x21] sm:$0xff] %vm240_vm0, %v1465_v11  ;;  %v1298_v18 = vmul.f32 0.2, %v1202_v6  ;;  %v1344_v31 = vsel %vm1248_vm15, %v1200_v30, %v1296_v9  ;;  %v1078_v27 = vadd.f32 %v1043_v16, %v902_v21  ;;  %v909_v16 = vadd.f32 %v3587_v43, %v3488_v10 }
 0x1f5   : > { %v1345_v37 = vsel %vm1249_vm6, %v1201_v46, %v1297_v26  ;;  %1468 = vst [vmem:[#allocation1 + $0x2] ss:$4 sm:$0xff] %v1343_v14 }
 0x1f6   : > { %v1346_v12 = vsel %vm1250_vm7, %v1202_v6, %v1298_v18  ;;  %1469 = vst [vmem:[#allocation1 + $0x3] ss:$4 sm:$0xff] %v1344_v31  ;;  %v1116_v40 = vrot.slane %v1078_v27, 2  ;;  %v1117_v59 = vrot.slane %v1078_v27, 6  ;;  %v1203_v41 = vadd.f32 %v3519_v50, %v1078_v27 }
 0x1f7   : > { %1470 = vst [vmem:[#allocation1 + $0x20] ss:$4 sm:$0xff] %v1345_v37  ;;  %v999_v25 = vpop.f32.mrf.mxu2 }
 0x1f8   : > { %1471 = vst [vmem:[#allocation1 + $0x21] ss:$4 sm:$0xff] %v1346_v12  ;;  %v1204_v62 = vadd.f32 %v3522_v51, %v1116_v40  ;;  %v1205_v45 = vadd.f32 %v3507_v42, %v1117_v59  ;;  %vm1251_vm8 = vcmp.gt.f32.partialorder %v1203_v41, 0.0  ;;  %v1299_v19 = vmul.f32 0.2, %v1203_v41  ;;  %v911_v0 = vpop.f32.mrf.mxu1 }
 0x1f9   : > { %v1044_v47 = vrot.slane %v999_v25, 2 }
 0x1fa   : > { %vm1252_vm9 = vcmp.gt.f32.partialorder %v1204_v62, 0.0  ;;  %vm1253_vm10 = vcmp.gt.f32.partialorder %v1205_v45, 0.0  ;;  %v1300_v28 = vmul.f32 0.2, %v1204_v62  ;;  %v1301_v48 = vmul.f32 0.2, %v1205_v45 }
 0x1fb   : > { %v1347_v52 = vsel %vm1251_vm8, %v1203_v41, %v1299_v19  ;;  %v1045_v33 = vsel %vm1028_vm5, %v1042_v63, %v1044_v47 }
 0x1fc   : > { %v1348_v17 = vsel %vm1252_vm9, %v1204_v62, %v1300_v28  ;;  %v1349_v53 = vsel %vm1253_vm10, %v1205_v45, %v1301_v48  ;;  %1472 = vst [vmem:[#allocation1 + $0x22] ss:$4 sm:$0xff] %v1347_v52  ;;  %v1079_v54 = vadd.f32 %v1045_v33, %v904_v38  ;;  %v912_v48 = vadd.f32 %v911_v0, %v3491_v13 }
 0x1fd   : > { %v1474_v55 = vld.sshfl [vmem:[#allocation1] sm:$0xff pattern:$0x73625140]  ;;  %1473 = vst [vmem:[#allocation1 + $0x23] ss:$4 sm:$0xff] %v1348_v17 }
 0x1fe   : > { %1476 = vst [vmem:[#allocation1] ss:$4 sm:$0xff] %v1349_v53  ;;  %v1118_v56 = vrot.slane %v1079_v54, 2  ;;  %v1119_v57 = vrot.slane %v1079_v54, 4  ;;  %v1120_v23 = vrot.slane %v1079_v54, 6  ;;  %v1206_v39 = vadd.f32 %v3516_v49, %v1079_v54 }
 0x1ff   : > { %1522 = vst.msk [vmem:[#allocation3 + $0x31] sm:$0xff] %vm240_vm0, %v1474_v55  ;;  %v1001_v58 = vpop.f32.mrf.mxu2 }
 0x200   : > { %v1207_v60 = vadd.f32 %v3519_v50, %v1118_v56  ;;  %v1208_v61 = vadd.f32 %v3522_v51, %v1119_v57  ;;  %v1209_v22 = vadd.f32 %v3507_v42, %v1120_v23  ;;  %vm1254_vm11 = vcmp.gt.f32.partialorder %v1206_v39, 0.0  ;;  %v913_v37 = vpop.f32.mrf.mxu1 }
 0x201   : > { %v1302_v29 = vmul.f32 0.2, %v1206_v39  ;;  %v1046_v36 = vrot.slane %v1001_v58, 2 }
 0x202   : > { %vm1255_vm12 = vcmp.gt.f32.partialorder %v1207_v60, 0.0  ;;  %vm1256_vm13 = vcmp.gt.f32.partialorder %v1208_v61, 0.0  ;;  %vm1257_vm14 = vcmp.gt.f32.partialorder %v1209_v22, 0.0  ;;  %v1303_v24 = vmul.f32 0.2, %v1207_v60 }
 0x203   : > { %v1304_v3 = vmul.f32 0.2, %v1208_v61  ;;  %v1305_v4 = vmul.f32 0.2, %v1209_v22  ;;  %v1350_v5 = vsel %vm1254_vm11, %v1206_v39, %v1302_v29  ;;  %v1047_v30 = vsel %vm1028_vm5, %v1044_v47, %v1046_v36 }
 0x204   : > { %v1475_v46 = vld.sshfl [vmem:[#allocation1 + $0x20] sm:$0xff pattern:$0x73625140]  ;;  %v1351_v6 = vsel %vm1255_vm12, %v1207_v60, %v1303_v24  ;;  %1477 = vst [vmem:[#allocation1 + $0x1] ss:$4 sm:$0xff] %v1350_v5  ;;  %v1080_v7 = vadd.f32 %v1047_v30, %v907_v1 }
 0x205   : > { %1523 = vst.msk [vmem:[#allocation3 + $0x39] sm:$0xff] %vm240_vm0, %v1475_v46  ;;  %v1352_v15 = vsel %vm1256_vm13, %v1208_v61, %v1304_v3  ;;  %v1353_v63 = vsel %vm1257_vm14, %v1209_v22, %v1305_v4  ;;  %v914_v4 = vadd.f32 %v913_v37, %v3494_v20  ;;  %vm839_vm13 = vcmask 1042432  }
 0x206   : > { %1478 = vst [vmem:[#allocation1 + $0x2] ss:$4 sm:$0xff] %v1351_v6  ;;  %v1121_v8 = vrot.slane %v1080_v7, 2  ;;  %v1122_v2 = vrot.slane %v1080_v7, 4  ;;  %v1210_v21 = vadd.f32 %v3516_v49, %v1080_v7  ;;  %v840_v20 = vsel %vm839_vm13, %v823_v34, 0.0 }
 0x207   : > { %1479 = vst [vmem:[#allocation1 + $0x3] ss:$4 sm:$0xff] %v1352_v15  ;;  %v1004_v9 = vpop.f32.mrf.mxu2 }
 0x208   : > { %1480 = vst [vmem:[#allocation1 + $0x20] ss:$4 sm:$0xff] %v1353_v63  ;;  %v1211_v11 = vadd.f32 %v3519_v50, %v1121_v8  ;;  %v1212_v26 = vadd.f32 %v3522_v51, %v1122_v2  ;;  %vm1258_vm15 = vcmp.gt.f32.partialorder %v1210_v21, 0.0  ;;  %v1306_v14 = vmul.f32 0.2, %v1210_v21  ;;  %v916_v23 = vpop.f32.mrf.mxu1 }
 0x209   : > { %v1048_v18 = vrot.slane %v1004_v9, 2  ;;  %v917_v32 = vadd.f32 %v916_v23, %v3502_v35 }
 0x20a   : > { %vm1259_vm6 = vcmp.gt.f32.partialorder %v1211_v11, 0.0  ;;  %vm1260_vm7 = vcmp.gt.f32.partialorder %v1212_v26, 0.0  ;;  %v1307_v31 = vmul.f32 0.2, %v1211_v11  ;;  %v1308_v27 = vmul.f32 0.2, %v1212_v26 }
 0x20b   : > { %v1354_v12 = vsel %vm1258_vm15, %v1210_v21, %v1306_v14  ;;  %v1049_v40 = vsel %vm1028_vm5, %v1046_v36, %v1048_v18 }
 0x20c   : > { %v1355_v59 = vsel %vm1259_vm6, %v1211_v11, %v1307_v31  ;;  %v1356_v41 = vsel %vm1260_vm7, %v1212_v26, %v1308_v27  ;;  %1481 = vst [vmem:[#allocation1 + $0x21] ss:$4 sm:$0xff] %v1354_v12  ;;  %v1081_v44 = vadd.f32 %v1049_v40, %v909_v16  ;;  %vm1070_vm7 = vcmask 1041408  }
 0x20d   : > { %1482 = vst [vmem:[#allocation1 + $0x22] ss:$4 sm:$0xff] %v1355_v59 }
 0x20e   : > { %v1484_v25 = vld.sshfl [vmem:[#allocation1] sm:$0xff pattern:$0x73625140]  ;;  %1483 = vst [vmem:[#allocation1 + $0x23] ss:$4 sm:$0xff] %v1356_v41  ;;  %v1123_v62 = vrot.slane %v1081_v44, 2  ;;  %v1213_v45 = vadd.f32 %v3507_v42, %v1081_v44 }
 0x20f   : > { %1524 = vst.msk [vmem:[#allocation3 + $0x49] sm:$0xff] %vm240_vm0, %v1484_v25  ;;  %v1124_v10 = vrot.slane %v1081_v44, 4  ;;  %v1125_v43 = vrot.slane %v1081_v44, 6  ;;  %v1006_v19 = vpop.f32.mrf.mxu2 }
 0x210   : > { %v1214_v38 = vadd.f32 %v3516_v49, %v1123_v62  ;;  %vm1261_vm8 = vcmp.gt.f32.partialorder %v1213_v45, 0.0  ;;  %v1309_v47 = vmul.f32 0.2, %v1213_v45  ;;  %v1050_v28 = vrot.slane %v1006_v19, 2  ;;  %v918_v11 = vpop.f32.mrf.mxu1 }
 0x211   : > { %v1215_v52 = vadd.f32 %v3519_v50, %v1124_v10  ;;  %v1216_v33 = vadd.f32 %v3522_v51, %v1125_v43  ;;  %v919_v34 = vadd.f32 %v918_v11, %v840_v20 }
 0x212   : > { %vm1262_vm9 = vcmp.gt.f32.partialorder %v1214_v38, 0.0  ;;  %v1310_v17 = vmul.f32 0.2, %v1214_v38  ;;  %v1357_v53 = vsel %vm1261_vm8, %v1213_v45, %v1309_v47  ;;  %v1051_v54 = vsel %vm1028_vm5, %v1048_v18, %v1050_v28 }
 0x213   : > { %vm1263_vm10 = vcmp.gt.f32.partialorder %v1215_v52, 0.0  ;;  %vm1264_vm11 = vcmp.gt.f32.partialorder %v1216_v33, 0.0  ;;  %v1311_v55 = vmul.f32 0.2, %v1215_v52  ;;  %v1312_v56 = vmul.f32 0.2, %v1216_v33 }
 0x214   : > { %v1358_v57 = vsel %vm1262_vm9, %v1214_v38, %v1310_v17  ;;  %1486 = vst [vmem:[#allocation1] ss:$4 sm:$0xff] %v1357_v53  ;;  %v1082_v39 = vadd.f32 %v1051_v54, %v912_v48 }
 0x215   : > { %v1485_v58 = vld.sshfl [vmem:[#allocation1 + $0x20] sm:$0xff pattern:$0x73625140]  ;;  %v1359_v60 = vsel %vm1263_vm10, %v1215_v52, %v1311_v55  ;;  %v1360_v13 = vsel %vm1264_vm11, %v1216_v33, %v1312_v56  ;;  %1487 = vst [vmem:[#allocation1 + $0x1] ss:$4 sm:$0xff] %v1358_v57 }
 0x216   : > { %1525 = vst.msk [vmem:[#allocation3 + $0x51] sm:$0xff] %vm240_vm0, %v1485_v58  ;;  %v1126_v61 = vrot.slane %v1082_v39, 2  ;;  %v1127_v22 = vrot.slane %v1082_v39, 4  ;;  %v1128_v0 = vrot.slane %v1082_v39, 6  ;;  %v1217_v1 = vadd.f32 %v3507_v42, %v1082_v39 }
 0x217   : > { %1488 = vst [vmem:[#allocation1 + $0x2] ss:$4 sm:$0xff] %v1359_v60  ;;  %v1009_v29 = vpop.f32.mrf.mxu2 }
 0x218   : > { %1489 = vst [vmem:[#allocation1 + $0x3] ss:$4 sm:$0xff] %v1360_v13  ;;  %v1218_v36 = vadd.f32 %v3516_v49, %v1126_v61  ;;  %v1219_v24 = vadd.f32 %v3519_v50, %v1127_v22  ;;  %v1220_v3 = vadd.f32 %v3522_v51, %v1128_v0  ;;  %vm1265_vm12 = vcmp.gt.f32.partialorder %v1217_v1, 0.0 }
 0x219   : > { %v1313_v5 = vmul.f32 0.2, %v1217_v1  ;;  %v1052_v30 = vrot.slane %v1009_v29, 2 }
 0x21a   : > { %vm1266_vm14 = vcmp.gt.f32.partialorder %v1218_v36, 0.0  ;;  %vm1267_vm15 = vcmp.gt.f32.partialorder %v1219_v24, 0.0  ;;  %vm1268_vm6 = vcmp.gt.f32.partialorder %v1220_v3, 0.0  ;;  %v1314_v46 = vmul.f32 0.2, %v1218_v36 }
 0x21b   : > { %v1315_v6 = vmul.f32 0.2, %v1219_v24  ;;  %v1316_v7 = vmul.f32 0.2, %v1220_v3  ;;  %v1361_v15 = vsel %vm1265_vm12, %v1217_v1, %v1313_v5  ;;  %v1053_v63 = vsel %vm1028_vm5, %v1050_v28, %v1052_v30 }
 0x21c   : > { %v1362_v8 = vsel %vm1266_vm14, %v1218_v36, %v1314_v46  ;;  %1490 = vst [vmem:[#allocation1 + $0x20] ss:$4 sm:$0xff] %v1361_v15  ;;  %v1083_v2 = vadd.f32 %v1053_v63, %v914_v4 }
 0x21d   : > { %v1363_v21 = vsel %vm1267_vm15, %v1219_v24, %v1315_v6  ;;  %v1364_v9 = vsel %vm1268_vm6, %v1220_v3, %v1316_v7  ;;  %1491 = vst [vmem:[#allocation1 + $0x21] ss:$4 sm:$0xff] %v1362_v8 }
 0x21e   : > { %1492 = vst [vmem:[#allocation1 + $0x22] ss:$4 sm:$0xff] %v1363_v21  ;;  %v1129_v26 = vrot.slane %v1083_v2, 2  ;;  %v1130_v14 = vrot.slane %v1083_v2, 4  ;;  %v1131_v16 = vrot.slane %v1083_v2, 6 }
 0x21f   : > { %v1494_v18 = vld.sshfl [vmem:[#allocation1] sm:$0xff pattern:$0x73625140]  ;;  %1493 = vst [vmem:[#allocation1 + $0x23] ss:$4 sm:$0xff] %v1364_v9  ;;  %v1011_v31 = vpop.f32.mrf.mxu2 }
 0x220   : > { %1526 = vst.msk [vmem:[#allocation3 + $0x61] sm:$0xff] %vm240_vm0, %v1494_v18  ;;  %v1221_v27 = vadd.f32 %v3507_v42, %v1129_v26  ;;  %v1222_v37 = vadd.f32 %v3516_v49, %v1130_v14  ;;  %v1223_v12 = vadd.f32 %v3519_v50, %v1131_v16  ;;  %v1054_v40 = vrot.slane %v1011_v31, 2 }
 0x222   : > { %vm1269_vm8 = vcmp.gt.f32.partialorder %v1221_v27, 0.0  ;;  %vm1270_vm9 = vcmp.gt.f32.partialorder %v1222_v37, 0.0  ;;  %vm1271_vm10 = vcmp.gt.f32.partialorder %v1223_v12, 0.0  ;;  %v1317_v59 = vmul.f32 0.2, %v1221_v27 }
 0x223   : > { %v1318_v41 = vmul.f32 0.2, %v1222_v37  ;;  %v1319_v44 = vmul.f32 0.2, %v1223_v12  ;;  %v1055_v25 = vsel %vm1028_vm5, %v1052_v30, %v1054_v40  ;;  %v1071_v62 = vsel %vm1070_vm7, %v1054_v40, 0.0 }
 0x224   : > { %v1365_v45 = vsel %vm1269_vm8, %v1221_v27, %v1317_v59  ;;  %v1084_v10 = vadd.f32 %v1055_v25, %v917_v32  ;;  %v1085_v43 = vadd.f32 %v1071_v62, %v919_v34 }
 0x225   : > { %v1366_v19 = vsel %vm1270_vm9, %v1222_v37, %v1318_v41  ;;  %v1367_v38 = vsel %vm1271_vm10, %v1223_v12, %v1319_v44  ;;  %1496 = vst [vmem:[#allocation1] ss:$4 sm:$0xff] %v1365_v45 }
 0x226   : > { %v1495_v47 = vld.sshfl [vmem:[#allocation1 + $0x20] sm:$0xff pattern:$0x73625140]  ;;  %1497 = vst [vmem:[#allocation1 + $0x1] ss:$4 sm:$0xff] %v1366_v19  ;;  %v1132_v28 = vrot.slane %v1084_v10, 2  ;;  %v1224_v35 = vadd.f32 %v3522_v51, %v1084_v10  ;;  %v1228_v48 = vadd.f32 %v3522_v51, %v1085_v43 }
 0x227   : > { %1527 = vst.msk [vmem:[#allocation3 + $0x69] sm:$0xff] %vm240_vm0, %v1495_v47  ;;  %v1133_v52 = vrot.slane %v1084_v10, 4  ;;  %v1134_v33 = vrot.slane %v1084_v10, 6 }
 0x228   : > { %1498 = vst [vmem:[#allocation1 + $0x2] ss:$4 sm:$0xff] %v1367_v38  ;;  %v1225_v17 = vadd.f32 %v3507_v42, %v1132_v28  ;;  %vm1272_vm11 = vcmp.gt.f32.partialorder %v1224_v35, 0.0  ;;  %v1320_v53 = vmul.f32 0.2, %v1224_v35  ;;  %vm1276_vm13 = vcmp.gt.f32.partialorder %v1228_v48, 0.0 }
 0x229   : > { %v1226_v54 = vadd.f32 %v3516_v49, %v1133_v52  ;;  %v1227_v55 = vadd.f32 %v3519_v50, %v1134_v33  ;;  %v1324_v56 = vmul.f32 0.2, %v1228_v48 }
 0x22a   : > { %vm1273_vm12 = vcmp.gt.f32.partialorder %v1225_v17, 0.0  ;;  %v1321_v57 = vmul.f32 0.2, %v1225_v17  ;;  %v1368_v23 = vsel %vm1272_vm11, %v1224_v35, %v1320_v53 }
 0x22b   : > { %vm1274_vm14 = vcmp.gt.f32.partialorder %v1226_v54, 0.0  ;;  %vm1275_vm15 = vcmp.gt.f32.partialorder %v1227_v55, 0.0  ;;  %v1322_v51 = vmul.f32 0.2, %v1226_v54  ;;  %v1323_v39 = vmul.f32 0.2, %v1227_v55 }
 0x22c   : > { %v1369_v58 = vsel %vm1273_vm12, %v1225_v17, %v1321_v57  ;;  %1499 = vst [vmem:[#allocation1 + $0x3] ss:$4 sm:$0xff] %v1368_v23  ;;  %v1372_v42 = vsel %vm1276_vm13, %v1228_v48, %v1324_v56 }
 0x22d   : > { %v1370_v60 = vsel %vm1274_vm14, %v1226_v54, %v1322_v51  ;;  %v1371_v13 = vsel %vm1275_vm15, %v1227_v55, %v1323_v39  ;;  %1500 = vst [vmem:[#allocation1 + $0x20] ss:$4 sm:$0xff] %v1369_v58 }
 0x22e   : > { %1501 = vst [vmem:[#allocation1 + $0x21] ss:$4 sm:$0xff] %v1370_v60 }
 0x22f   : > { %1502 = vst [vmem:[#allocation1 + $0x22] ss:$4 sm:$0xff] %v1371_v13 }
 0x230   : > { %1503 = vst [vmem:[#allocation1 + $0x23] ss:$4 sm:$0xff] %v1372_v42 }
 0x233   : > { %v1504_v49 = vld.sshfl [vmem:[#allocation1] sm:$0xff pattern:$0x73625140] }
 0x234   : > { %1528 = vst.msk [vmem:[#allocation3 + $0x79] sm:$0xff] %vm240_vm0, %v1504_v49  ;;  %1533 = sbr.rel (%p2647_p1) target bundleno = 573 (0x23d), region = 52 }
 0x237   : > { %v1505_v50 = vld.sshfl [vmem:[#allocation1 + $0x20] sm:$0xff pattern:$0x73625140] }
 0x238   : > { %1529 = vst.msk [vmem:[#allocation3 + $0x81] sm:$0xff] %vm240_vm0, %v1505_v50 }
 0x239   : > { %v2998_v61 = vmov 0.0  }
 0x23a   : > { %1534 = vst.msk [vmem:[#allocation3] sm:$0xff] %vm240_vm0, %v2998_v61 }
 0x23b   : > { %1535 = vst.msk [vmem:[#allocation3 + $0x8] sm:$0xff] %vm240_vm0, %v2998_v61 }
 0x23c   : > { %1536 = vst.msk [vmem:[#allocation3 + $0x10] sm:$0x3] %vm243_vm1, %v2998_v61 }
 0x23d PF: > { %p2648_p2 = scmp.ne.s32.totalorder %s2977_s21, 1 }
 0x23f   : > { %1540 = sbr.rel (%p2648_p2) target bundleno = 584 (0x248), region = 56 }
 0x244   : > { %v2999_v22 = vmov 0.0  }
 0x245   : > { %1542 = vst.msk [vmem:[#allocation3 + $0x78] sm:$0xff] %vm240_vm0, %v2999_v22 }
 0x246   : > { %1543 = vst.msk [vmem:[#allocation3 + $0x80] sm:$0xff] %vm240_vm0, %v2999_v22 }
 0x247   : > { %1544 = vst.msk [vmem:[#allocation3 + $0x88] sm:$0x3] %vm243_vm1, %v2999_v22 }
 0x248 PF: > { %v3650_v0 = vld [vmem:[#allocation3 + $0x18] sm:$0xff]  ;;  %v3652_v1 = vld [vmem:[#allocation3 + $0x30] sm:$0xff]  ;;  %v3660_v29 = vld [vmem:[#allocation3 + $0x20] sm:$0xff]  ;;  %s2763_s17 = sshll.u32 %s2981_s22, 4  ;;  %s4015_s12 = sand.u32 1, %s2969_s19  }
 0x249   : > { %1575 = vrot.lane.b32.xlu0 %v3650_v0, %s2997_s14  ;;  %1614 = vrot.lane.b32.xlu1 %v3652_v1, %s2996_s13  ;;  %v3662_v36 = vld [vmem:[#allocation3 + $0x38] sm:$0xff]  ;;  %v3670_v24 = vld [vmem:[#allocation3 + $0x48] sm:$0xff]  ;;  %v3672_v3 = vld [vmem:[#allocation3 + $0x50] sm:$0xff]  ;;  %s2408_s10 = scalar_lea.sflag [#allocation5], %s4015_s12 }
 0x24a   : > { %1581 = vrot.lane.b32.xlu2 %v3652_v1, %s2997_s14  ;;  %v3674_v4 = vld [vmem:[#allocation3 + $0x28] sm:$0x3]  ;;  %v3682_v5 = vld [vmem:[#allocation3 + $0x40] sm:$0x3]  ;;  %v2799_v30 = vld [vmem:[%s4009_s3 + $0x58] sm:$0xff] }
 0x24b   : > { %v2805_v46 = vld [vmem:[%s4009_s3 + $0x88] sm:$0xff]  ;;  %1854 = vmatpush.bf16.msra.mxu3 %v2799_v30  ;;  %v1558_v7 = vld [vmem:[#allocation3 + $0x68] sm:$0xff]  ;;  %v3700_v15 = vld [vmem:[#allocation3 + $0x58] sm:$0x3] }
 0x24c   : > { %2041 = vmatpush.bf16.msrb.mxu0 %v2805_v46  ;;  %v1557_v6 = vld [vmem:[#allocation3 + $0x60] sm:$0xff]  ;;  %v1560_v63 = vld [vmem:[#allocation3 + $0x78] sm:$0xff]  ;;  %v1559_v8 = vld [vmem:[#allocation3 + $0x70] sm:$0x3] }
 0x24d   : > { %v1561_v2 = vld [vmem:[#allocation3 + $0x80] sm:$0xff]  ;;  %v2798_v9 = vld [vmem:[%s4009_s3 + $0x50] sm:$0xff]  ;;  %v2804_v20 = vld [vmem:[%s4009_s3 + $0x80] sm:$0xff] }
 0x24e   : > { %v1562_v21 = vld [vmem:[#allocation3 + $0x88] sm:$0x3]  ;;  %v2797_v11 = vld [vmem:[%s4009_s3 + $0x48] sm:$0xff]  ;;  %v2803_v26 = vld [vmem:[%s4009_s3 + $0x78] sm:$0xff] }
 0x24f   : > { %1855 = vmatpush.bf16.msra.mxu3 %v2798_v9  ;;  %v2796_v14 = vld [vmem:[%s4009_s3 + $0x40] sm:$0xff]  ;;  %v2802_v16 = vld [vmem:[%s4009_s3 + $0x70] sm:$0xff]  ;;  %v2795_v18 = vld [vmem:[%s4009_s3 + $0x38] sm:$0xff] }
 0x250   : > { %2042 = vmatpush.bf16.msrb.mxu0 %v2804_v20  ;;  %v2801_v31 = vld [vmem:[%s4009_s3 + $0x68] sm:$0xff]  ;;  %v2794_v37 = vld [vmem:[%s4009_s3 + $0x30] sm:$0xff]  ;;  %v2800_v12 = vld [vmem:[%s4009_s3 + $0x60] sm:$0xff] }
 0x251   : > { %1577 = vrot.lane.b32.xlu0 %v3660_v29, %s2997_s14  ;;  %1616 = vrot.lane.b32.xlu1 %v3662_v36, %s2996_s13  ;;  %v2793_v40 = vld [vmem:[%s4009_s3 + $0x28] sm:$0xff]  ;;  %v1546_v43 = vld [vmem:[#allocation3 + $0x8] sm:$0xff]  ;;  %v2792_v35 = vld [vmem:[%s4009_s3 + $0x20] sm:$0xff] }
 0x252   : > { %1583 = vrot.lane.b32.xlu2 %v3662_v36, %s2997_s14  ;;  %v1545_v34 = vld [vmem:[#allocation3] sm:$0xff]  ;;  %v1547_v42 = vld [vmem:[#allocation3 + $0x10] sm:$0x3] }
 0x253   : > { %1856 = vmatpush.bf16.msra.mxu3 %v2797_v11  ;;  %v2791_v50 = vld [vmem:[%s4009_s3 + $0x18] sm:$0xff] }
 0x254   : > { %2043 = vmatpush.bf16.msrb.mxu0 %v2803_v26 }
 0x257   : > { %1857 = vmatpush.bf16.msra.mxu3 %v2796_v14 }
 0x258   : > { %2044 = vmatpush.bf16.msrb.mxu0 %v2802_v16 }
 0x259   : > { %1620 = vrot.lane.b32.xlu0 %v3670_v24, %s2996_s13  ;;  %1622 = vrot.lane.b32.xlu1 %v3672_v3, %s2996_s13 }
 0x25a   : > { %1579 = vrot.lane.b32.xlu2 %v3674_v4, %s2997_s14 }
 0x25b   : > { %1858 = vmatpush.bf16.msra.mxu3 %v2795_v18 }
 0x25c   : > { %2045 = vmatpush.bf16.msrb.mxu0 %v2801_v31 }
 0x25f   : > { %1859 = vmatpush.bf16.msra.mxu3 %v2794_v37 }
 0x260   : > { %2046 = vmatpush.bf16.msrb.mxu0 %v2800_v12  ;;  %v2790_v12 = vld [vmem:[%s4009_s3 + $0x10] sm:$0xff] }
 0x261   : > { %1618 = vrot.lane.b32.xlu0 %v3682_v5, %s2996_s13  ;;  %1587 = vrot.lane.b32.xlu1 %v3670_v24, %s2997_s14 }
 0x262   : > { %1589 = vrot.lane.b32.xlu2 %v3672_v3, %s2997_s14 }
 0x263   : > { %1959 = vmatpush.bf16.msrb.mxu3 %v2793_v40 }
 0x267   : > { %1960 = vmatpush.bf16.msrb.mxu3 %v2792_v35 }
 0x269   : > { %1626 = vrot.lane.b32.xlu0 %v1557_v6, %s2996_s13  ;;  %1628 = vrot.lane.b32.xlu1 %v1558_v7, %s2996_s13 }
 0x26a   : > { %1585 = vrot.lane.b32.xlu2 %v3682_v5, %s2997_s14 }
 0x26b   : > { %1961 = vmatpush.bf16.msrb.mxu3 %v2791_v50 }
 0x26f   : > { %1962 = vmatpush.bf16.msrb.mxu3 %v2790_v12 }
 0x271   : > { %1624 = vrot.lane.b32.xlu0 %v3700_v15, %s2996_s13  ;;  %1593 = vrot.lane.b32.xlu1 %v1557_v6, %s2997_s14 }
 0x272   : > { %1632 = vrot.lane.b32.xlu2 %v1560_v63, %s2996_s13 }
 0x279   : > { %1591 = vrot.lane.b32.xlu0 %v3700_v15, %s2997_s14  ;;  %1595 = vrot.lane.b32.xlu1 %v1558_v7, %s2997_s14 }
 0x27a   : > { %1630 = vrot.lane.b32.xlu2 %v1559_v8, %s2996_s13 }
 0x281   : > { %1634 = vrot.lane.b32.xlu0 %v1561_v2, %s2996_s13  ;;  %1597 = vrot.lane.b32.xlu1 %v1559_v8, %s2997_s14 }
 0x282   : > { %1636 = vrot.lane.b32.xlu2 %v1562_v21, %s2996_s13  ;;  %s2423_s13 = sshll.u32 %s3185_s9, 4  ;;  %s2424_s13 = int_to_ptr.vmem [resolvable:$true] %s2423_s13 }
 0x2a4   : > { %v1582_v27 = vpop.permute.xlu2 %1581 }
 0x2a5   : > { %v1653_v54 = vsel %vm240_vm0, %v3650_v0, %v1582_v27 }
 0x2ac   : > { %v1584_v32 = vpop.permute.xlu2 %1583 }
 0x2ad   : > { %v1654_v53 = vsel %vm240_vm0, %v3660_v29, %v1584_v32 }
 0x2b4   : > { %v1580_v19 = vpop.permute.xlu2 %1579 }
 0x2b5   : > { %v1652_v0 = vsel %vm240_vm0, %v1547_v42, %v1580_v19 }
 0x2bb   : > { %v1576_v59 = vpop.permute.xlu0 %1575  ;;  %v1615_v41 = vpop.permute.xlu1 %1614 }
 0x2bc   : > { %v1650_v44 = vsel %vm240_vm0, %v1545_v34, %v1576_v59  ;;  %v1590_v51 = vpop.permute.xlu2 %1589  ;;  %v2789_v59 = vld [vmem:[%s4009_s3 + $0x8] sm:$0xff] }
 0x2bd   : > { %v1662_v25 = vsel %vm487_vm2, %v1650_v44, %v1615_v41  ;;  %v1657_v8 = vsel %vm240_vm0, %v3662_v36, %v1590_v51  ;;  %1963 = vmatpush.bf16.msrb.mxu3 %v2789_v59 }
 0x2be   : > { %v1686_v62 = vrot.slane %v1662_v25, 2  ;;  %v1687_v45 = vrot.slane %v1662_v25, 4  ;;  %v1688_v10 = vrot.slane %v1662_v25, 6  ;;  %1710 = vst [vmem:[#allocation1] ss:$4 sm:$0xff] %v1662_v25 }
 0x2c0   : > { %1712 = vst [vmem:[#allocation1 + $0x1] ss:$4 sm:$0xff] %v1686_v62 }
 0x2c1   : > { %1714 = vst [vmem:[#allocation1 + $0x2] ss:$4 sm:$0xff] %v1687_v45 }
 0x2c2   : > { %1716 = vst [vmem:[#allocation1 + $0x3] ss:$4 sm:$0xff] %v1688_v10 }
 0x2c3   : > { %v1578_v38 = vpop.permute.xlu0 %1577  ;;  %v1617_v47 = vpop.permute.xlu1 %1616 }
 0x2c4   : > { %v1651_v28 = vsel %vm240_vm0, %v1546_v43, %v1578_v38  ;;  %v1586_v7 = vpop.permute.xlu2 %1585 }
 0x2c5   : > { %v1663_v48 = vsel %vm487_vm2, %v1651_v28, %v1617_v47  ;;  %v1655_v36 = vsel %vm240_vm0, %v3674_v4, %v1586_v7 }
 0x2c6   : > { %v1689_v52 = vrot.slane %v1663_v48, 2  ;;  %v1690_v33 = vrot.slane %v1663_v48, 4  ;;  %v1691_v17 = vrot.slane %v1663_v48, 6  ;;  %1718 = vst [vmem:[#allocation1 + $0x20] ss:$4 sm:$0xff] %v1663_v48 }
 0x2c8   : > { %1720 = vst [vmem:[#allocation1 + $0x21] ss:$4 sm:$0xff] %v1689_v52 }
 0x2c9   : > { %1722 = vst [vmem:[#allocation1 + $0x22] ss:$4 sm:$0xff] %v1690_v33  ;;  %v1725_v57 = vld.sshfl [vmem:[#allocation1] sm:$0xff pattern:$0x73625140] }
 0x2ca   : > { %1724 = vst [vmem:[#allocation1 + $0x23] ss:$4 sm:$0xff] %v1691_v17 }
 0x2cb   : > { %v1621_v55 = vpop.permute.xlu0 %1620  ;;  %v1623_v56 = vpop.permute.xlu1 %1622 }
 0x2cc   : > { %v1665_v23 = vsel %vm487_vm2, %v1653_v54, %v1621_v55  ;;  %v1666_v60 = vsel %vm487_vm2, %v1654_v53, %v1623_v56  ;;  %v2788_v53 = vld [vmem:[%s4009_s3] sm:$0xff] }
 0x2cd   : > { %v1692_v39 = vrot.slane %v1665_v23, 2  ;;  %v1693_v58 = vrot.slane %v1665_v23, 4  ;;  %1728 = vst [vmem:[#allocation1 + $0x1] ss:$4 sm:$0xff] %v1665_v23  ;;  %v1694_v13 = vrot.slane %v1665_v23, 6  ;;  %v1696_v49 = vrot.slane %v1666_v60, 4  ;;  %1964 = vmatpush.bf16.msrb.mxu3 %v2788_v53 }
 0x2ce   : > { %v1695_v22 = vrot.slane %v1666_v60, 2  ;;  %v1697_v9 = vrot.slane %v1666_v60, 6 }
 0x2cf   : > { %1730 = vst [vmem:[#allocation1 + $0x3] ss:$4 sm:$0xff] %v1693_v58 }
 0x2d0   : > { %1729 = vst [vmem:[#allocation1 + $0x2] ss:$4 sm:$0xff] %v1692_v39 }
 0x2d1   : > { %v1726_v61 = vld.sshfl [vmem:[#allocation1 + $0x20] sm:$0xff pattern:$0x73625140] }
 0x2d2   : > { %1731 = vst [vmem:[#allocation1 + $0x20] ss:$4 sm:$0xff] %v1694_v13  ;;  %v3763_v29 = vpack.c.bf16 %v1726_v61, %v1725_v57 }
 0x2d3   : > { %1732 = vst [vmem:[#allocation1 + $0x21] ss:$4 sm:$0xff] %v1666_v60  ;;  %v1619_v30 = vpop.permute.xlu0 %1618  ;;  %v1588_v46 = vpop.permute.xlu1 %1587 }
 0x2d4   : > { %1734 = vst [vmem:[#allocation1 + $0x23] ss:$4 sm:$0xff] %v1696_v49  ;;  %2685 = vmatmul.msk.bf16.vlgmr.msra.gmra.mxu3 %vm717_vm3, %v3763_v29  ;;  %2755 = vmatmul.msk.bf16.vlgmr.msrb.gmra.mxu0 %vm717_vm3, %v3763_v29  ;;  %v1664_v6 = vsel %vm487_vm2, %v1652_v0, %v1619_v30  ;;  %v1656_v63 = vsel %vm240_vm0, %v3652_v1, %v1588_v46  ;;  %v1633_v1 = vpop.permute.xlu2 %1632 }
 0x2d5   : > { %1733 = vst [vmem:[#allocation1 + $0x22] ss:$4 sm:$0xff] %v1695_v22 }
 0x2d6   : > { %1727 = vst [vmem:[#allocation1] ss:$4 sm:$0xff] %v1664_v6 }
 0x2db   : > { %v1627_v2 = vpop.permute.xlu0 %1626  ;;  %v1629_v21 = vpop.permute.xlu1 %1628 }
 0x2dc   : > { %v1668_v20 = vsel %vm487_vm2, %v1656_v63, %v1627_v2  ;;  %v1669_v11 = vsel %vm487_vm2, %v1657_v8, %v1629_v21  ;;  %v1736_v27 = vld.sshfl [vmem:[#allocation1 + $0x20] sm:$0xff pattern:$0x73625140]  ;;  %v1631_v25 = vpop.permute.xlu2 %1630 }
 0x2dd   : > { %v1735_v26 = vld.sshfl [vmem:[#allocation1] sm:$0xff pattern:$0x73625140]  ;;  %v1698_v14 = vrot.slane %v1668_v20, 2  ;;  %v1701_v16 = vrot.slane %v1669_v11, 2  ;;  %v1699_v18 = vrot.slane %v1668_v20, 4 }
 0x2de   : > { %1737 = vst [vmem:[#allocation1] ss:$4 sm:$0xff] %v1697_v9  ;;  %v1700_v31 = vrot.slane %v1668_v20, 6  ;;  %v3778_v37 = vpack.c.bf16 %v1736_v27, %v1735_v26  ;;  %v1703_v62 = vrot.slane %v1669_v11, 6  ;;  %v1702_v19 = vrot.slane %v1669_v11, 4 }
 0x2df   : > { %1739 = vst [vmem:[#allocation1 + $0x2] ss:$4 sm:$0xff] %v1668_v20 }
 0x2e0   : > { %1740 = vst [vmem:[#allocation1 + $0x3] ss:$4 sm:$0xff] %v1698_v14 }
 0x2e1   : > { %1743 = vst [vmem:[#allocation1 + $0x22] ss:$4 sm:$0xff] %v1669_v11 }
 0x2e2   : > { %1744 = vst [vmem:[#allocation1 + $0x23] ss:$4 sm:$0xff] %v1701_v16 }
 0x2e3   : > { %1741 = vst [vmem:[#allocation1 + $0x20] ss:$4 sm:$0xff] %v1699_v18  ;;  %v1625_v40 = vpop.permute.xlu0 %1624  ;;  %v1594_v32 = vpop.permute.xlu1 %1593 }
 0x2e4   : > { %1742 = vst [vmem:[#allocation1 + $0x21] ss:$4 sm:$0xff] %v1700_v31  ;;  %2686 = vmatmul.msk.bf16.gmra.mxu3 %vm717_vm3, %v3778_v37  ;;  %2756 = vmatmul.msk.bf16.gmra.mxu0 %vm717_vm3, %v3778_v37  ;;  %v1667_v34 = vsel %vm487_vm2, %v1655_v36, %v1625_v40  ;;  %v1659_v4 = vsel %vm240_vm0, %v3670_v24, %v1594_v32  ;;  %v1637_v56 = vpop.permute.xlu2 %1636 }
 0x2e5   : > { %1738 = vst [vmem:[#allocation1 + $0x1] ss:$4 sm:$0xff] %v1667_v34  ;;  %v1671_v41 = vsel %vm487_vm2, %v1659_v4, %v1633_v1 }
 0x2e6   : > { %v1704_v44 = vrot.slane %v1671_v41, 2  ;;  %v1705_v47 = vrot.slane %v1671_v41, 4  ;;  %v1706_v35 = vrot.slane %v1671_v41, 6 }
 0x2eb   : > { %v1592_v45 = vpop.permute.xlu0 %1591  ;;  %v1596_v10 = vpop.permute.xlu1 %1595  ;;  %v1746_v43 = vld.sshfl [vmem:[#allocation1 + $0x20] sm:$0xff pattern:$0x73625140] }
 0x2ec   : > { %v1745_v38 = vld.sshfl [vmem:[#allocation1] sm:$0xff pattern:$0x73625140]  ;;  %v1658_v24 = vsel %vm240_vm0, %v3682_v5, %v1592_v45  ;;  %1751 = vst [vmem:[#allocation1 + $0x20] ss:$4 sm:$0xff] %v1704_v44  ;;  %v1660_v48 = vsel %vm240_vm0, %v3672_v3, %v1596_v10 }
 0x2ed   : > { %1748 = vst [vmem:[#allocation1 + $0x1] ss:$4 sm:$0xff] %v1703_v62  ;;  %v1670_v28 = vsel %vm487_vm2, %v1658_v24, %v1631_v25  ;;  %v1773_v52 = vpack.c.bf16 %v1746_v43, %v1745_v38 }
 0x2ee   : > { %1747 = vst [vmem:[#allocation1] ss:$4 sm:$0xff] %v1702_v19 }
 0x2ef   : > { %1750 = vst [vmem:[#allocation1 + $0x3] ss:$4 sm:$0xff] %v1671_v41 }
 0x2f0   : > { %1749 = vst [vmem:[#allocation1 + $0x2] ss:$4 sm:$0xff] %v1670_v28 }
 0x2f1   : > { %1752 = vst [vmem:[#allocation1 + $0x21] ss:$4 sm:$0xff] %v1705_v47 }
 0x2f2   : > { %1753 = vst [vmem:[#allocation1 + $0x22] ss:$4 sm:$0xff] %v1706_v35 }
 0x2f3   : > { %v1635_v33 = vpop.permute.xlu0 %1634  ;;  %v1598_v17 = vpop.permute.xlu1 %1597 }
 0x2f4   : > { %2687 = vmatmul.msk.bf16.gmra.mxu3 %vm717_vm3, %v1773_v52  ;;  %2757 = vmatmul.msk.bf16.gmra.mxu0 %vm717_vm3, %v1773_v52  ;;  %v1672_v5 = vsel %vm487_vm2, %v1660_v48, %v1635_v33  ;;  %v1661_v3 = vsel %vm240_vm0, %v3700_v15, %v1598_v17 }
 0x2f5   : > { %v1707_v54 = vrot.slane %v1672_v5, 2  ;;  %v1708_v55 = vrot.slane %v1672_v5, 4  ;;  %1754 = vst [vmem:[#allocation1 + $0x23] ss:$4 sm:$0xff] %v1672_v5  ;;  %v1709_v57 = vrot.slane %v1672_v5, 6  ;;  %v1673_v51 = vsel %vm487_vm2, %v1661_v3, %v1637_v56 }
 0x2f7   : > { %v1755_v23 = vld.sshfl [vmem:[#allocation1] sm:$0xff pattern:$0x73625140] }
 0x2f8   : > { %1757 = vst [vmem:[#allocation1] ss:$4 sm:$0xff] %v1707_v54 }
 0x2f9   : > { %1758 = vst [vmem:[#allocation1 + $0x1] ss:$4 sm:$0xff] %v1708_v55  ;;  %v3874_v55 = vld [vmem:[%s4010_s4] ss:$0 sm:$0xff] }
 0x2fa   : > { %1759 = vst [vmem:[#allocation1 + $0x2] ss:$4 sm:$0xff] %v1709_v57  ;;  %v2216_v57 = vld [vmem:[%s3156_s8] sm:$0xff] }
 0x2fb   : > { %1760 = vst [vmem:[#allocation1 + $0x3] ss:$4 sm:$0xff] %v1673_v51  ;;  %v3878_v51 = vrot.slane %v3874_v55, 2 }
 0x2fc   : > { %v1756_v39 = vld.sshfl [vmem:[#allocation1 + $0x20] sm:$0xff pattern:$0x73625140] }
 0x2fd   : > { %v1774_v58 = vpack.c.bf16 %v1756_v39, %v1755_v23  ;;  %v3881_v39 = vrot.slane %v3874_v55, 4 }
 0x302   : > { %v1761_v60 = vld.sshfl [vmem:[#allocation1] sm:$0xff pattern:$0x73625140] }
 0x303   : > { %v1775_v13 = vpack.c.bf16 %v1761_v60, %v1761_v60  ;;  %v2232_v60 = vrot.slane %v2216_v57, 2 }
 0x304   : > { %2688 = vmatmul.msk.bf16.gmra.mxu3 %vm717_vm3, %v1774_v58  ;;  %2758 = vmatmul.msk.bf16.gmra.mxu0 %vm717_vm3, %v1774_v58 }
 0x314   : > { %2689 = vmatmul.msk.bf16.gmra.mxu3 %vm717_vm3, %v1775_v13  ;;  %2759 = vmatmul.msk.bf16.gmra.mxu0 %vm717_vm3, %v1775_v13 }
 0x324   : > { %2714 = vmatmul.msk.bf16.vlgmr.msrb.gmra.mxu3 %vm717_vm3, %v3763_v29 }
 0x334   : > { %2715 = vmatmul.msk.bf16.gmra.mxu3 %vm717_vm3, %v3778_v37 }
 0x344   : > { %2716 = vmatmul.msk.bf16.gmra.mxu3 %vm717_vm3, %v1773_v52 }
 0x351   : > { %v2048_v15 = vpop.f32.mrf.mxu0 }
 0x352   : > { %v2081_v50 = vrot.slane %v2048_v15, 2  ;;  %v2234_v15 = vrot.slane %v2216_v57, 6 }
 0x354   : > { %2717 = vmatmul.msk.bf16.gmra.mxu3 %vm717_vm3, %v1774_v58  ;;  %v3884_v58 = vrot.slane %v3874_v55, 6 }
 0x357   : > { %v1861_v42 = vpop.f32.mrf.mxu3 }
 0x358   : > { %v1894_v30 = vrot.slane %v1861_v42, 1 }
 0x359   : > { %v2050_v49 = vpop.f32.mrf.mxu0 }
 0x35a   : > { %v2082_v61 = vrot.slane %v2050_v49, 2 }
 0x35c   : > { %v2083_v22 = vsel %vm1028_vm5, %v2081_v50, %v2082_v61 }
 0x35f   : > { %v1863_v0 = vpop.f32.mrf.mxu3 }
 0x360   : > { %v1895_v46 = vrot.slane %v1863_v0, 1 }
 0x361   : > { %v2053_v6 = vpop.f32.mrf.mxu0 }
 0x362   : > { %v2084_v7 = vrot.slane %v2053_v6, 2  ;;  %v1896_v29 = vsel %vm797_vm4, %v1894_v30, %v1895_v46 }
 0x364   : > { %v3821_v63 = vsel %vm1028_vm5, %v2082_v61, %v2084_v7  ;;  %2718 = vmatmul.msk.bf16.gmra.mxu3 %vm717_vm3, %v1775_v13  ;;  %v2233_v13 = vrot.slane %v2216_v57, 4 }
 0x367   : > { %v1866_v8 = vpop.f32.mrf.mxu3 }
 0x368   : > { %v1897_v2 = vrot.slane %v1866_v8, 1 }
 0x369   : > { %v2055_v21 = vpop.f32.mrf.mxu0 }
 0x36a   : > { %v2086_v9 = vrot.slane %v2055_v21, 2  ;;  %v1898_v20 = vsel %vm797_vm4, %v1895_v46, %v1897_v2  ;;  %v2217_v21 = vld [vmem:[%s3156_s8 + $0x8] sm:$0xff] }
 0x36c   : > { %v3826_v11 = vsel %vm1028_vm5, %v2084_v7, %v2086_v9 }
 0x36f   : > { %v1868_v26 = vpop.f32.mrf.mxu3 }
 0x370   : > { %v1899_v14 = vrot.slane %v1868_v26, 1  ;;  %v2235_v26 = vrot.slane %v2217_v21, 2 }
 0x371   : > { %v2058_v16 = vpop.f32.mrf.mxu0 }
 0x372   : > { %v2088_v18 = vrot.slane %v2058_v16, 2  ;;  %v3829_v31 = vsel %vm797_vm4, %v1897_v2, %v1899_v14 }
 0x374   : > { %v3832_v27 = vsel %vm1028_vm5, %v2086_v9, %v2088_v18 }
 0x377   : > { %v1871_v1 = vpop.f32.mrf.mxu3 }
 0x378   : > { %v1901_v36 = vrot.slane %v1871_v1, 1 }
 0x379   : > { %v2060_v37 = vpop.f32.mrf.mxu0 }
 0x37a   : > { %v2090_v12 = vrot.slane %v2060_v37, 2  ;;  %v3835_v40 = vsel %vm797_vm4, %v1899_v14, %v1901_v36  ;;  %v2236_v14 = vrot.slane %v2217_v21, 4  ;;  %v2237_v37 = vrot.slane %v2217_v21, 6 }
 0x37c   : > { %v3838_v32 = vsel %vm1028_vm5, %v2088_v18, %v2090_v12 }
 0x37f   : > { %v1873_v34 = vpop.f32.mrf.mxu3 }
 0x380   : > { %v1903_v4 = vrot.slane %v1873_v34, 1 }
 0x381   : > { %v2063_v59 = vpop.f32.mrf.mxu0 }
 0x382   : > { %v2092_v41 = vrot.slane %v2063_v59, 2  ;;  %v3841_v44 = vsel %vm797_vm4, %v1901_v36, %v1903_v4 }
 0x384   : > { %v3844_v25 = vsel %vm1028_vm5, %v2090_v12, %v2092_v41 }
 0x387   : > { %v1876_v62 = vpop.f32.mrf.mxu3 }
 0x388   : > { %v1905_v45 = vrot.slane %v1876_v62, 1 }
 0x389   : > { %v2065_v10 = vpop.f32.mrf.mxu0 }
 0x38a   : > { %v2094_v43 = vrot.slane %v2065_v10, 2  ;;  %v3847_v19 = vsel %vm797_vm4, %v1903_v4, %v1905_v45 }
 0x38c   : > { %v3850_v38 = vsel %vm1028_vm5, %v2092_v41, %v2094_v43 }
 0x38f   : > { %v1878_v24 = vpop.f32.mrf.mxu3 }
 0x390   : > { %v1907_v47 = vrot.slane %v1878_v24, 1 }
 0x391   : > { %v3852_v28 = vpop.f32.mrf.mxu0 }
 0x392   : > { %v2096_v35 = vrot.slane %v3852_v28, 2  ;;  %v3856_v48 = vsel %vm797_vm4, %v1905_v45, %v1907_v47  ;;  %v2218_v45 = vld [vmem:[%s3156_s8 + $0x10] sm:$0xff] }
 0x394   : > { %v3861_v52 = vsel %vm1028_vm5, %v2094_v43, %v2096_v35 }
 0x397   : > { %v3863_v33 = vpop.f32.mrf.mxu3 }
 0x398   : > { %v1909_v17 = vrot.slane %v3863_v33, 1 }
 0x399   : > { %v2070_v5 = vpop.f32.mrf.mxu0 }
 0x39a   : > { %v3869_v53 = vsel %vm797_vm4, %v1907_v47, %v1909_v17  ;;  %v2238_v47 = vrot.slane %v2218_v45, 2 }
 0x39f   : > { %v1883_v54 = vpop.f32.mrf.mxu3 }
 0x3a7   : > { %v1966_v3 = vpop.f32.mrf.mxu3 }
 0x3a8   : > { %v1967_v56 = vadd.f32 %v1966_v3, %v1896_v29 }
 0x3aa   : > { %v2108_v23 = vadd.f32 %v2083_v22, %v1967_v56  ;;  %v2239_v56 = vrot.slane %v2218_v45, 4 }
 0x3ac   : > { %v2126_v42 = vrot.slane %v2108_v23, 2  ;;  %v2127_v49 = vrot.slane %v2108_v23, 4  ;;  %v2128_v50 = vrot.slane %v2108_v23, 6  ;;  %v2184_v61 = vadd.f32 %v3874_v55, %v2108_v23 }
 0x3ae   : > { %v2185_v22 = vadd.f32 %v3878_v51, %v2126_v42  ;;  %v2186_v0 = vadd.f32 %v3881_v39, %v2127_v49  ;;  %v2187_v30 = vadd.f32 %v3884_v58, %v2128_v50  ;;  %v2280_v46 = vadd.f32 %v2216_v57, %v2184_v61  ;;  %v2219_v50 = vld [vmem:[%s3156_s8 + $0x18] sm:$0xff] }
 0x3af   : > { %v1968_v6 = vpop.f32.mrf.mxu3  ;;  %v2240_v61 = vrot.slane %v2218_v45, 6 }
 0x3b0   : > { %v2281_v7 = vadd.f32 %v2232_v60, %v2185_v22  ;;  %v2282_v29 = vadd.f32 %v2233_v13, %v2186_v0  ;;  %v2283_v8 = vadd.f32 %v2234_v15, %v2187_v30  ;;  %2344 = vst [vmem:[#allocation1] ss:$4 sm:$0xff] %v2280_v46  ;;  %v1969_v2 = vadd.f32 %v1968_v6, %v1898_v20 }
 0x3b2   : > { %2346 = vst [vmem:[#allocation1 + $0x1] ss:$4 sm:$0xff] %v2281_v7  ;;  %v2109_v9 = vadd.f32 %v3821_v63, %v1969_v2  ;;  %v2241_v7 = vrot.slane %v2219_v50, 2 }
 0x3b3   : > { %2348 = vst [vmem:[#allocation1 + $0x2] ss:$4 sm:$0xff] %v2282_v29  ;;  %v2242_v29 = vrot.slane %v2219_v50, 4 }
 0x3b4   : > { %2350 = vst [vmem:[#allocation1 + $0x3] ss:$4 sm:$0xff] %v2283_v8  ;;  %v2129_v16 = vrot.slane %v2109_v9, 2  ;;  %v2130_v18 = vrot.slane %v2109_v9, 4  ;;  %v2131_v1 = vrot.slane %v2109_v9, 6  ;;  %v2188_v36 = vadd.f32 %v3874_v55, %v2109_v9 }
 0x3b6   : > { %v2189_v12 = vadd.f32 %v3878_v51, %v2129_v16  ;;  %v2190_v20 = vadd.f32 %v3881_v39, %v2130_v18  ;;  %v2191_v34 = vadd.f32 %v3884_v58, %v2131_v1  ;;  %v2284_v4 = vadd.f32 %v2217_v21, %v2188_v36  ;;  %v2220_v18 = vld [vmem:[%s3156_s8 + $0x20] sm:$0xff] }
 0x3b7   : > { %v1971_v63 = vpop.f32.mrf.mxu3  ;;  %v2243_v36 = vrot.slane %v2219_v50, 6 }
 0x3b8   : > { %v2285_v59 = vadd.f32 %v2235_v26, %v2189_v12  ;;  %v2286_v41 = vadd.f32 %v2236_v14, %v2190_v20  ;;  %2352 = vst [vmem:[#allocation1 + $0x20] ss:$4 sm:$0xff] %v2284_v4  ;;  %v1972_v62 = vadd.f32 %v1971_v63, %v3829_v31  ;;  %v2287_v10 = vadd.f32 %v2237_v37, %v2191_v34 }
 0x3b9   : > { %v2244_v34 = vrot.slane %v2220_v18, 2 }
 0x3ba   : > { %2354 = vst [vmem:[#allocation1 + $0x21] ss:$4 sm:$0xff] %v2285_v59  ;;  %v2110_v43 = vadd.f32 %v3826_v11, %v1972_v62 }
 0x3bb   : > { %v2359_v24 = vld.sshfl [vmem:[#allocation1] sm:$0xff pattern:$0x73625140]  ;;  %2356 = vst [vmem:[#allocation1 + $0x22] ss:$4 sm:$0xff] %v2286_v41 }
 0x3bc   : > { %2399 = vst.msk [vmem:[%s3185_s9] sm:$0xff] %vm240_vm0, %v2359_v24  ;;  %v2132_v5 = vrot.slane %v2110_v43, 2  ;;  %v2133_v54 = vrot.slane %v2110_v43, 4  ;;  %v2134_v3 = vrot.slane %v2110_v43, 6  ;;  %v2245_v24 = vrot.slane %v2220_v18, 4 }
 0x3bd   : > { %2358 = vst [vmem:[#allocation1 + $0x23] ss:$4 sm:$0xff] %v2287_v10  ;;  %v2221_v10 = vld [vmem:[%s3156_s8 + $0x28] sm:$0xff] }
 0x3be   : > { %v2192_v57 = vadd.f32 %v3874_v55, %v2132_v5  ;;  %v2193_v31 = vadd.f32 %v3878_v51, %v2133_v54  ;;  %v2194_v23 = vadd.f32 %v3881_v39, %v2134_v3  ;;  %v2247_v5 = vrot.slane %v2221_v10, 2 }
 0x3bf   : > { %v1973_v60 = vpop.f32.mrf.mxu3 }
 0x3c0   : > { %v2288_v11 = vadd.f32 %v2218_v45, %v2192_v57  ;;  %v2289_v13 = vadd.f32 %v2238_v47, %v2193_v31  ;;  %v2290_v15 = vadd.f32 %v2239_v56, %v2194_v23  ;;  %v1974_v42 = vadd.f32 %v1973_v60, %v3835_v40 }
 0x3c1   : > { %v2246_v47 = vrot.slane %v2220_v18, 6 }
 0x3c2   : > { %2361 = vst [vmem:[#allocation1] ss:$4 sm:$0xff] %v2288_v11  ;;  %v2111_v49 = vadd.f32 %v3832_v27, %v1974_v42 }
 0x3c3   : > { %2362 = vst [vmem:[#allocation1 + $0x1] ss:$4 sm:$0xff] %v2289_v13 }
 0x3c4   : > { %v2360_v22 = vld.sshfl [vmem:[#allocation1 + $0x20] sm:$0xff pattern:$0x73625140]  ;;  %2363 = vst [vmem:[#allocation1 + $0x2] ss:$4 sm:$0xff] %v2290_v15  ;;  %v2135_v0 = vrot.slane %v2111_v49, 2  ;;  %v2195_v30 = vadd.f32 %v3884_v58, %v2111_v49 }
 0x3c5   : > { %2400 = vst.msk [vmem:[%s3185_s9 + $0x8] sm:$0xff] %vm240_vm0, %v2360_v22  ;;  %v2136_v46 = vrot.slane %v2111_v49, 4  ;;  %v2137_v6 = vrot.slane %v2111_v49, 6 }
 0x3c6   : > { %v2196_v40 = vadd.f32 %v3874_v55, %v2135_v0  ;;  %v2291_v8 = vadd.f32 %v2240_v61, %v2195_v30  ;;  %v2248_v61 = vrot.slane %v2221_v10, 4 }
 0x3c7   : > { %v2197_v27 = vadd.f32 %v3878_v51, %v2136_v46  ;;  %v2198_v2 = vadd.f32 %v3881_v39, %v2137_v6  ;;  %v1976_v21 = vpop.f32.mrf.mxu3  ;;  %v2249_v46 = vrot.slane %v2221_v10, 6  ;;  %v2222_v6 = vld [vmem:[%s3156_s8 + $0x30] sm:$0xff] }
 0x3c8   : > { %v2292_v9 = vadd.f32 %v2219_v50, %v2196_v40  ;;  %2364 = vst [vmem:[#allocation1 + $0x3] ss:$4 sm:$0xff] %v2291_v8  ;;  %v1977_v26 = vadd.f32 %v1976_v21, %v3841_v44 }
 0x3c9   : > { %v2293_v14 = vadd.f32 %v2241_v7, %v2197_v27  ;;  %v2294_v16 = vadd.f32 %v2242_v29, %v2198_v2 }
 0x3ca   : > { %2365 = vst [vmem:[#allocation1 + $0x20] ss:$4 sm:$0xff] %v2292_v9  ;;  %v2112_v1 = vadd.f32 %v3838_v32, %v1977_v26  ;;  %v2250_v9 = vrot.slane %v2222_v6, 2  ;;  %v2251_v26 = vrot.slane %v2222_v6, 4 }
 0x3cb   : > { %2366 = vst [vmem:[#allocation1 + $0x21] ss:$4 sm:$0xff] %v2293_v14  ;;  %v2252_v14 = vrot.slane %v2222_v6, 6 }
 0x3cc   : > { %2367 = vst [vmem:[#allocation1 + $0x22] ss:$4 sm:$0xff] %v2294_v16  ;;  %v2138_v37 = vrot.slane %v2112_v1, 4  ;;  %v2139_v12 = vrot.slane %v2112_v1, 6  ;;  %v2199_v20 = vadd.f32 %v3884_v58, %v2112_v1 }
 0x3ce   : > { %v2200_v4 = vadd.f32 %v3874_v55, %v2138_v37  ;;  %v2201_v44 = vadd.f32 %v3878_v51, %v2139_v12  ;;  %v2295_v63 = vadd.f32 %v2243_v36, %v2199_v20  ;;  %v2223_v37 = vld [vmem:[%s3156_s8 + $0x38] sm:$0xff]  ;;  %s2806_s8 = sshll.u32 %s2977_s21, 3 }
 0x3cf   : > { %v2369_v59 = vld.sshfl [vmem:[#allocation1] sm:$0xff pattern:$0x73625140]  ;;  %v1978_v41 = vpop.f32.mrf.mxu3  ;;  %v2254_v33 = vrot.slane %v2223_v37, 4  ;;  %s2420_s26 = sadd.s32 %s2806_s8, %s2763_s17 }
 0x3d0   : > { %v2296_v62 = vadd.f32 %v2220_v18, %v2200_v4  ;;  %v2297_v45 = vadd.f32 %v2244_v34, %v2201_v44  ;;  %2368 = vst [vmem:[#allocation1 + $0x23] ss:$4 sm:$0xff] %v2295_v63  ;;  %v1979_v32 = vadd.f32 %v1978_v41, %v3847_v19  ;;  %v1920_v34 = vsel %vm797_vm4, %v1909_v17, 0.0  ;;  %s2764_s21 = sshll.u32 %s2420_s26, 3  ;;  %s2919_s26 = scalar_lea.hbm %s4011_s5, 256 }
 0x3d1   : > { %2401 = vst.msk [vmem:[%s3185_s9 + $0x10] sm:$0xff] %vm240_vm0, %v2369_v59  ;;  %s2422_s30 = scalar_lea.hbm %s4011_s5, %s2764_s21 }
 0x3d2   : > { %2371 = vst [vmem:[#allocation1] ss:$4 sm:$0xff] %v2296_v62  ;;  %v2113_v43 = vadd.f32 %v3844_v25, %v1979_v32  ;;  %v2107_v62 = vsel %vm1028_vm5, %v2096_v35, 0.0  ;;  %v2253_v32 = vrot.slane %v2223_v37, 2  ;;  %s2425_s14 = sshll.u32 %s2422_s30, 4  ;;  %s2426_s14 = int_to_ptr.hbm [resolvable:$true] %s2425_s14 }
 0x3d3   : > { %2372 = vst [vmem:[#allocation1 + $0x1] ss:$4 sm:$0xff] %v2297_v45  ;;  %s2913_s15 = sshra.s32 %s2426_s14, 4  ;;  %s2914_s15 = int_to_ptr.hbm [resolvable:$true] %s2913_s15 }
 0x3d4   : > { %v2140_v54 = vrot.slane %v2113_v43, 2  ;;  %v2141_v3 = vrot.slane %v2113_v43, 4  ;;  %v2142_v56 = vrot.slane %v2113_v43, 6  ;;  %v2202_v57 = vadd.f32 %v3881_v39, %v2113_v43  ;;  %s2915_s16 = scalar_lea.hbm %s2914_s15, 64  ;;  %p2920_p7 = scmp.lt.s32.totalorder %s2914_s15, %s4011_s5 }
 0x3d5   : > { %p2916_p4 = scmp.ne.s32.totalorder %s2914_s15, %s2915_s16  ;;  %p2921_p9 = scmp.lt.s32.totalorder %s2919_s26, %s2915_s16 }
 0x3d6   : > { %v2203_v31 = vadd.f32 %v3884_v58, %v2140_v54  ;;  %v2204_v19 = vadd.f32 %v3874_v55, %v2141_v3  ;;  %v2205_v23 = vadd.f32 %v3878_v51, %v2142_v56  ;;  %v2298_v60 = vadd.f32 %v2245_v24, %v2202_v57 }
 0x3d7   : > { %v2370_v11 = vld.sshfl [vmem:[#allocation1 + $0x20] sm:$0xff pattern:$0x73625140]  ;;  %v1981_v13 = vpop.f32.mrf.mxu3  ;;  %v2255_v24 = vrot.slane %v2223_v37, 6  ;;  %p2917_p5 = pnand %p2916_p4, %p3083_p3  ;;  %p2922_p10 = por %p2921_p9, %p2920_p7 }
 0x3d8   : > { %2402 = vst.msk [vmem:[%s3185_s9 + $0x18] sm:$0xff] %vm240_vm0, %v2370_v11  ;;  %v2299_v25 = vadd.f32 %v2246_v47, %v2203_v31  ;;  %v2300_v15 = vadd.f32 %v2221_v10, %v2204_v19  ;;  %v2301_v42 = vadd.f32 %v2247_v5, %v2205_v23  ;;  %v1982_v49 = vadd.f32 %v1981_v13, %v3856_v48 }
 0x3d9   : > { %2373 = vst [vmem:[#allocation1 + $0x2] ss:$4 sm:$0xff] %v2298_v60  ;;  %p2918_p6 = pneg %p2917_p5 }
 0x3da   : > { %2374 = vst [vmem:[#allocation1 + $0x3] ss:$4 sm:$0xff] %v2299_v25  ;;  %v2114_v50 = vadd.f32 %v3850_v38, %v1982_v49 }
 0x3db   : > { %2375 = vst [vmem:[#allocation1 + $0x20] ss:$4 sm:$0xff] %v2300_v15  ;;  %p2923_p11 = pnand %p2922_p10, %p2918_p6 }
 0x3dc   : > { %2376 = vst [vmem:[#allocation1 + $0x21] ss:$4 sm:$0xff] %v2301_v42  ;;  %v2143_v22 = vrot.slane %v2114_v50, 2  ;;  %v2144_v0 = vrot.slane %v2114_v50, 6  ;;  %v2206_v30 = vadd.f32 %v3881_v39, %v2114_v50 }
 0x3de   : > { %v2207_v7 = vadd.f32 %v3884_v58, %v2143_v22  ;;  %v2208_v29 = vadd.f32 %v3874_v55, %v2144_v0  ;;  %v2302_v40 = vadd.f32 %v2248_v61, %v2206_v30 }
 0x3df   : > { %v1983_v8 = vpop.f32.mrf.mxu3 }
 0x3e0   : > { %v2303_v48 = vadd.f32 %v2249_v46, %v2207_v7  ;;  %v2304_v27 = vadd.f32 %v2222_v6, %v2208_v29  ;;  %2377 = vst [vmem:[#allocation1 + $0x22] ss:$4 sm:$0xff] %v2302_v40  ;;  %v1984_v38 = vadd.f32 %v1983_v8, %v3869_v53 }
 0x3e1   : > { %v2379_v2 = vld.sshfl [vmem:[#allocation1] sm:$0xff pattern:$0x73625140] }
 0x3e2   : > { %2378 = vst [vmem:[#allocation1 + $0x23] ss:$4 sm:$0xff] %v2303_v48  ;;  %v2115_v21 = vadd.f32 %v3861_v52, %v1984_v38 }
 0x3e3   : > { %2381 = vst [vmem:[#allocation1] ss:$4 sm:$0xff] %v2304_v27 }
 0x3e4   : > { %v2145_v16 = vrot.slane %v2115_v21, 2  ;;  %v2146_v18 = vrot.slane %v2115_v21, 4  ;;  %v2147_v1 = vrot.slane %v2115_v21, 6  ;;  %v2209_v36 = vadd.f32 %v3878_v51, %v2115_v21  ;;  %2403 = vst.msk [vmem:[%s3185_s9 + $0x20] sm:$0xff] %vm240_vm0, %v2379_v2 }
 0x3e6   : > { %v2210_v53 = vadd.f32 %v3881_v39, %v2145_v16  ;;  %v2211_v12 = vadd.f32 %v3884_v58, %v2146_v18  ;;  %v2212_v52 = vadd.f32 %v3874_v55, %v2147_v1  ;;  %v2305_v20 = vadd.f32 %v2250_v9, %v2209_v36 }
 0x3e7   : > { %v1986_v4 = vpop.f32.mrf.mxu3 }
 0x3e8   : > { %v2306_v44 = vadd.f32 %v2251_v26, %v2210_v53  ;;  %v2307_v63 = vadd.f32 %v2252_v14, %v2211_v12  ;;  %v2308_v59 = vadd.f32 %v2223_v37, %v2212_v52  ;;  %v1987_v41 = vadd.f32 %v1986_v4, %v1920_v34  ;;  %2382 = vst [vmem:[#allocation1 + $0x1] ss:$4 sm:$0xff] %v2305_v20 }
 0x3e9   : > { %v2380_v45 = vld.sshfl [vmem:[#allocation1 + $0x20] sm:$0xff pattern:$0x73625140] }
 0x3ea   : > { %v2116_v55 = vadd.f32 %v2107_v62, %v1987_v41  ;;  %2383 = vst [vmem:[#allocation1 + $0x2] ss:$4 sm:$0xff] %v2306_v44 }
 0x3eb   : > { %2384 = vst [vmem:[#allocation1 + $0x3] ss:$4 sm:$0xff] %v2307_v63 }
 0x3ec   : > { %v2148_v17 = vrot.slane %v2116_v55, 2  ;;  %v2149_v10 = vrot.slane %v2116_v55, 4  ;;  %v2213_v43 = vadd.f32 %v3878_v51, %v2116_v55  ;;  %2385 = vst [vmem:[#allocation1 + $0x20] ss:$4 sm:$0xff] %v2308_v59 }
 0x3ed   : > { %2404 = vst.msk [vmem:[%s3185_s9 + $0x28] sm:$0xff] %vm240_vm0, %v2380_v45 }
 0x3ee   : > { %v2214_v28 = vadd.f32 %v3881_v39, %v2148_v17  ;;  %v2215_v35 = vadd.f32 %v3884_v58, %v2149_v10  ;;  %v2309_v47 = vadd.f32 %v2253_v32, %v2213_v43 }
 0x3ef   : > { %v1988_v5 = vpop.f32.mrf.mxu3 }
 0x3f0   : > { %v2310_v54 = vadd.f32 %v2254_v33, %v2214_v28  ;;  %v2311_v3 = vadd.f32 %v2255_v24, %v2215_v35  ;;  %2386 = vst [vmem:[#allocation1 + $0x21] ss:$4 sm:$0xff] %v2309_v47 }
 0x3f2   : > { %2387 = vst [vmem:[#allocation1 + $0x22] ss:$4 sm:$0xff] %v2310_v54  ;;  %v2389_v51 = vld.sshfl [vmem:[#allocation1] sm:$0xff pattern:$0x73625140] }
 0x3f3   : > { %2388 = vst [vmem:[#allocation1 + $0x23] ss:$4 sm:$0xff] %v2311_v3 }
 0x3f4   : > { %2405 = vst.msk [vmem:[%s3185_s9 + $0x30] sm:$0xff] %vm240_vm0, %v2389_v51 }
 0x3fa   : > { %v2390_v39 = vld.sshfl [vmem:[#allocation1 + $0x20] sm:$0xff pattern:$0x73625140] }
 0x3fb   : > { %2406 = vst.msk [vmem:[%s3185_s9 + $0x38] sm:$0xff] %vm240_vm0, %v2390_v39 }
 0x3fc   : > { %2926 = shalt.err (!%p2923_p11)
}
 0x3fd   : > { %s3000_s9 = smov 128   ;;  %s3001_s27 = smov 8  }
 0x3fe   : > { %2819 = dma.vmem_to_hbm [thread:$0]  (%p3083_p3), %s2424_s13, 1024, %s2426_s14, %s2408_s10, %s3000_s9, %s3000_s9, %s3001_s27  }
 0x3ff PF: > { %p2825_p12 = scmp.ge.s32.totalorder %s2993_s25, 2  ;;  %s2440_s30 = sand.u32 1, %s2965_s18  }
 0x400   : > { %s2441_s12 = scalar_lea.sflag [#allocation5], %s2440_s30 }
 0x401   : > { %p2822_p13 = pnand %p2825_p12, %p3092_p8 }
 0x403   : > { %p2823_p0 = pneg %p2822_p13 }
 0x405   : > { %2960 = dma.done.wait (%p2823_p0), %s2441_s12, 1024  }
 0x406   : > { %2962 = vsyncadd (%p2823_p0), %s2441_s12, 4294966272  ;;  %s18_s25 = sadd.s32 1, %s2993_s25   ;;  %s4016_s18 = smov %s2969_s19 }
 0x407   : > { %p15_p1 = scmp.ge.s32.totalorder %s18_s25, 6   ;;  %s4017_s19 = smov %s2973_s20 }
 0x408   : > { %s4018_s20 = smov %s3101_s11  ;;  %s4019_s21 = smov %s2985_s23 }
 0x409   : > { %s4020_s22 = smov %s2989_s24  ;;  %s4021_s23 = smov %s4024_s28 }
 0x40a   : > { %s4022_s24 = smov %s4028_s29  ;;  %17 = sbr.rel (!%p15_p1) target bundleno = 5 (0x5), region = 129 }
 0x40f   :  { %2447 = vsyncpa [#allocation5], 1 }
 0x410   :  { %2449 = vsyncpa [#allocation5 + $0x1], 1 }

</bundles_post_ra>
